<compile_context>
chip_gen: v5e
topology: v5e:2x2
jax: 0.10.0
libtpu: 0.0.40
codegen_flags: <defaults>
</compile_context>

<pallas_src>
import functools

import jax
import jax.numpy as jnp
from jax import lax
from jax.experimental import pallas as pl
from jax.experimental.pallas import tpu as pltpu


def _round_up(x, m):
    return (x + m - 1) // m * m


def _crf_kernel(*refs, compute_loss):
    # Per batch tile (batch on lanes):
    #   em_ref   : (S, T, TB) float   emissions (any float dtype, cast to f32 on load)
    #   mask_ref : (S, TB)    i32     0/1 prefix mask
    #   lab_ref  : (S, TB)    i32     gold labels              [only when compute_loss]
    #   start_ref: (T, 1)     f32     start transitions
    #   end_ref  : (T, 1)     f32     end transitions
    #   trans_ref: (T, T, 1)  f32     trans_ref[p, c, 0] = transitions[prev=p, cur=c]
    #   dec_ref  : (S, TB)    i32     decoded tags (0 past each length)
    #   llh_ref  : (1, TB)    f32     per-sequence log-likelihood [only when compute_loss]
    #   hist_ref : (S, T, TB) i8/i32  VMEM scratch: Viterbi backpointers
    if compute_loss:
        (em_ref, mask_ref, lab_ref, start_ref, end_ref, trans_ref,
         dec_ref, llh_ref, hist_ref) = refs
    else:
        (em_ref, mask_ref, start_ref, end_ref, trans_ref,
         dec_ref, hist_ref) = refs
        lab_ref = llh_ref = None

    S, T, TB = em_ref.shape
    hdtype = hist_ref.dtype

    start = start_ref[...]                       # (T, 1)
    end = end_ref[...]                           # (T, 1)
    trans = trans_ref[...]                       # (T, T, 1)
    et = jnp.exp(trans)                          # exp(transitions), hoisted out of time loop

    tag_iota = lax.broadcasted_iota(jnp.int32, (T, TB), 0)   # sublane index == tag id
    tag_iota_h = tag_iota.astype(hdtype)

    # ---------------- step 0 ----------------
    em0 = em_ref[0, :, :].astype(jnp.float32)    # (T, TB)
    init = start + em0
    alpha = init                                 # forward (logsumexp) scores
    vit = init                                   # Viterbi (max) scores

    if compute_loss:
        lab0 = lab_ref[0:1, :]                   # (1, TB)
        oh_prev = (tag_iota == lab0).astype(jnp.float32)   # one-hot gold tag, (T, TB)
        oh_last = oh_prev                        # one-hot of last *valid* gold tag
        num_acc = oh_prev * init                 # gold-path score spread over tag sublanes

    # ---------------- forward / Viterbi recursion ----------------
    # TODO(synk): for S >> ~32 switch to lax.fori_loop(..., unroll=4-8) carrying
    # alpha/vit/oh_prev/num_acc to bound code size & vreg live ranges; full unroll is the
    # right choice at these sequence lengths.
    for i in range(1, S):
        em_i = em_ref[i, :, :].astype(jnp.float32)    # (T, TB)
        m_row = mask_ref[i:i + 1, :]                  # (1, TB)
        m_b = m_row == 1

        # logsumexp via factored exp(transitions): ONE exp + ONE log per step.
        a_max = jnp.max(alpha, axis=0, keepdims=True)  # (1, TB) sublane max (XLU is idle here)
        w = jnp.exp(alpha - a_max)                     # (T, TB)

        if compute_loss:
            lab_i = lab_ref[i:i + 1, :]
            oh_i = (tag_iota == lab_i).astype(jnp.float32)

        # Single fused loop over previous tag p: logsumexp accumulation, Viterbi
        # max/argmax, gold-path transition-row pick.  No materialized base[] list.
        s = et[0] * w[0:1, :]                          # (T, TB)
        v_best = trans[0] + vit[0:1, :]
        bp = jnp.zeros((T, TB), hdtype)
        if compute_loss:
            t_prev = oh_prev[0:1, :] * trans[0]        # row labels[i-1] of transitions
        for p in range(1, T):
            tr_p = trans[p]                            # (T, 1)
            s = s + et[p] * w[p:p + 1, :]
            v_p = tr_p + vit[p:p + 1, :]
            gt = v_p > v_best                          # strict '>' keeps first max (argmax rule)
            v_best = jnp.where(gt, v_p, v_best)
            bp = jnp.where(gt, jnp.asarray(p, hdtype), bp)
            if compute_loss:
                t_prev = t_prev + oh_prev[p:p + 1, :] * tr_p

        lse = em_i + a_max + jnp.log(s)
        alpha = jnp.where(m_b, lse, alpha)
        vit = jnp.where(m_b, em_i + v_best, vit)
        # masked steps get identity backpointers so the backtrace just carries the tag
        hist_ref[i, :, :] = jnp.where(m_b, bp, tag_iota_h)

        if compute_loss:
            m_f = m_row.astype(jnp.float32)
            num_acc = num_acc + m_f * oh_i * (t_prev + em_i)
            oh_prev = oh_i
            oh_last = jnp.where(m_b, oh_i, oh_last)

    # ---------------- loss pieces (sublane reductions only here, outside hot loop) -------
    if compute_loss:
        num_acc = num_acc + oh_last * end
        numerator = jnp.sum(num_acc, axis=0, keepdims=True)          # (1, TB)

        final = alpha + end                                          # (T, TB)
        fmax = jnp.max(final, axis=0, keepdims=True)
        denom = fmax + jnp.log(jnp.sum(jnp.exp(final - fmax), axis=0, keepdims=True))

        llh_ref[...] = numerator - denom                             # per-sequence llh

    # ---------------- Viterbi backtrace: one direct row store per step ----------------
    vfinal = vit + end
    vmax = jnp.max(vfinal, axis=0, keepdims=True)
    tag = jnp.min(jnp.where(vfinal >= vmax, tag_iota, jnp.int32(T)),
                  axis=0, keepdims=True)                             # (1, TB) best last tag

    for i in range(S - 1, -1, -1):
        valid = mask_ref[i:i + 1, :] == 1
        dec_ref[i:i + 1, :] = jnp.where(valid, tag, jnp.int32(0))
        if i > 0:
            hist = hist_ref[i, :, :].astype(jnp.int32)               # backpointers of step i
            tag = jnp.max(jnp.where(tag_iota == tag, hist, jnp.int32(0)),
                          axis=0, keepdims=True)


def crf_forward(pred, attention_mask, labels, start_trans, end_trans, transitions,
                *, batch_tile=None, emissions_time_major=False):
    """else-branch of CRF_model.forward.

    labels is None  -> returns decoded (B, S) int32 (CRF.decode).
    labels provided -> returns (decoded, loss) with loss = -crf(pred, labels, mask, 'mean').

    pred: (B, S, T) emissions in any float dtype (kept as-is for the DMA, cast to f32 in
    the kernel), or (S, T, B) if emissions_time_major=True — that skips the wrapper-side
    HBM transpose pass over the largest tensor.
    """
    if emissions_time_major:
        S, T, B = pred.shape
        em_t = pred
    else:
        B, S, T = pred.shape
        # One HBM pass to get batch on the lane axis.  If the producer can emit (S, T, B)
        # directly, pass emissions_time_major=True and this pass disappears.
        em_t = jnp.transpose(pred, (1, 2, 0))                        # (S, T, B)
    if not jnp.issubdtype(em_t.dtype, jnp.floating):
        em_t = em_t.astype(jnp.float32)

    compute_loss = labels is not None

    # Batch tile: lane-dense 128 for large batches (>=256 -> >=2 tiles, so the "parallel"
    # batch axis splits over v7x's two TensorCores; batch_tile=256 is worth a sweep there),
    # else the whole (8-padded) batch.
    if batch_tile is None:
        batch_tile = 128 if B >= 128 else _round_up(B, 8)
    TB = batch_tile
    Bp = _round_up(B, TB)

    em_t = jnp.pad(em_t, ((0, 0), (0, 0), (0, Bp - B)))
    mask_t = jnp.pad(attention_mask.astype(jnp.int32).T, ((0, 0), (0, Bp - B)))
    start_c = start_trans.astype(jnp.float32).reshape(T, 1)
    end_c = end_trans.astype(jnp.float32).reshape(T, 1)
    trans_c = transitions.astype(jnp.float32).reshape(T, T, 1)
    if compute_loss:
        lab_t = jnp.pad(labels.astype(jnp.int32).T, ((0, 0), (0, Bp - B)))

    # Backpointer scratch: pack to int8 only when it is large enough to matter (v7x VMEM),
    # keep int32 for small shapes (zero-risk path).
    hist_dtype = jnp.int8 if (T <= 127 and S * T * TB * 4 > (4 << 20)) else jnp.int32

    # VMEM estimate with real double-buffer counts; only raise the scoped limit when the
    # estimate exceeds the smallest per-generation default, capped with headroom from the
    # actual chip VMEM (v7x only has 64 MiB physical per TensorCore).
    em_bytes = S * T * TB * em_t.dtype.itemsize
    est_vmem = (2 * em_bytes
                + 2 * S * TB * 4 * (3 if compute_loss else 2)   # mask (+labels) + dec
                + 2 * TB * 4                                    # llh
                + S * T * TB * jnp.dtype(hist_dtype).itemsize   # hist scratch
                + (1 << 20))
    cp_kwargs = dict(dimension_semantics=("parallel",))
    if est_vmem > 16 * 1024 * 1024:
        try:
            vmem_cap = pltpu.get_tpu_info().vmem_capacity_bytes
        except Exception:
            vmem_cap = 64 * 1024 * 1024
        cp_kwargs["vmem_limit_bytes"] = int(min(2 * est_vmem, (vmem_cap * 3) // 4))

    kernel = functools.partial(_crf_kernel, compute_loss=compute_loss)

    em_spec = pl.BlockSpec((S, T, TB), lambda i: (0, 0, i))
    sb_spec = pl.BlockSpec((S, TB), lambda i: (0, i))
    in_specs = [em_spec, sb_spec]
    inputs = [em_t, mask_t]
    if compute_loss:
        in_specs.append(sb_spec)
        inputs.append(lab_t)
    in_specs += [pl.BlockSpec((T, 1), lambda i: (0, 0)),
                 pl.BlockSpec((T, 1), lambda i: (0, 0)),
                 pl.BlockSpec((T, T, 1), lambda i: (0, 0, 0))]
    inputs += [start_c, end_c, trans_c]

    dec_shape = jax.ShapeDtypeStruct((S, Bp), jnp.int32)
    dec_spec = pl.BlockSpec((S, TB), lambda i: (0, i))
    if compute_loss:
        out_shape = (dec_shape, jax.ShapeDtypeStruct((1, Bp), jnp.float32))
        out_specs = (dec_spec, pl.BlockSpec((1, TB), lambda i: (0, i)))
    else:
        out_shape = dec_shape
        out_specs = dec_spec

    result = pl.pallas_call(
        kernel,
        grid=(Bp // TB,),
        out_shape=out_shape,
        in_specs=in_specs,
        out_specs=out_specs,
        scratch_shapes=[pltpu.VMEM((S, T, TB), hist_dtype)],   # Viterbi backpointers
        compiler_params=pltpu.CompilerParams(**cp_kwargs),
    )(*inputs)

    if compute_loss:
        dec_t, llh = result
    else:
        dec_t = result
    decoded = dec_t[:, :B].T                                   # (B, S) int32, 0 past length
    if not compute_loss:
        return decoded
    loss = -jnp.mean(llh[0, :B])                               # reduction='mean', negated
    return decoded, loss


# ---------------- pure-JAX reference (torchcrf math) ----------------
def crf_reference(em, mask, labels, start, end, trans):
    B, S, T = em.shape
    maskf = mask.astype(jnp.float32)
    alpha = start[None, :] + em[:, 0, :]
    vit = alpha
    history = []
    for i in range(1, S):
        base = trans[None, :, :] + em[:, i, None, :]          # (B, Tp, Tc)
        lse = jax.nn.logsumexp(base + alpha[:, :, None], axis=1)
        alpha = jnp.where(mask[:, i:i + 1] == 1, lse, alpha)
        sv = base + vit[:, :, None]
        best = jnp.max(sv, axis=1)
        idx = jnp.argmax(sv, axis=1).astype(jnp.int32)
        history.append(jnp.where(mask[:, i:i + 1] == 1, idx,
                                 jnp.arange(T, dtype=jnp.int32)[None, :]))
        vit = jnp.where(mask[:, i:i + 1] == 1, best, vit)
    denom = jax.nn.logsumexp(alpha + end[None, :], axis=1)
    num = start[labels[:, 0]] + jnp.take_along_axis(em[:, 0, :], labels[:, 0:1], axis=1)[:, 0]
    prev = labels[:, 0]
    for i in range(1, S):
        cur = labels[:, i]
        num = num + maskf[:, i] * (trans[prev, cur] +
                                   jnp.take_along_axis(em[:, i, :], cur[:, None], axis=1)[:, 0])
        prev = cur
    seq_end = jnp.sum(mask, axis=1) - 1
    last_tags = jnp.take_along_axis(labels, seq_end[:, None], axis=1)[:, 0]
    num = num + end[last_tags]
    loss = -jnp.mean(num - denom)
    tag = jnp.argmax(vit + end[None, :], axis=1).astype(jnp.int32)
    decoded = jnp.zeros((B, S), jnp.int32)
    for i in range(S - 1, -1, -1):
        decoded = decoded.at[:, i].set(jnp.where(mask[:, i] == 1, tag, 0).astype(jnp.int32))
        if i > 0:
            tag = jnp.take_along_axis(history[i - 1], tag[:, None], axis=1)[:, 0]
    return decoded, loss


if __name__ == "__main__":
    # TODO(synk): the seq_lengths/max_length branch of CRF_model.forward is host-side
    # pack/pad list manipulation (pack_padded_sequence etc.), not kernel work; the
    # else-branch (decode + mean-NLL loss) is implemented here.
    B, S, T = 8, 10, 8   # batch, seq_len, num_labels
    key = jax.random.PRNGKey(0)
    k1, k2, k3, k4, k5, k6 = jax.random.split(key, 6)

    pred = jax.random.normal(k1, (B, S, T), jnp.float32)
    lengths = jax.random.randint(k6, (B,), 1, S + 1, jnp.int32)     # mask[:,0] == 1 always
    attention_mask = (jnp.arange(S)[None, :] < lengths[:, None]).astype(jnp.int32)
    labels = jax.random.randint(k2, (B, S), 0, T, jnp.int32)

    # CRF parameters: torchcrf initializes uniform(-0.1, 0.1)
    start_trans = jax.random.uniform(k3, (T,), jnp.float32, -0.1, 0.1)
    end_trans = jax.random.uniform(k4, (T,), jnp.float32, -0.1, 0.1)
    transitions = jax.random.uniform(k5, (T, T), jnp.float32, -0.1, 0.1)

    # with labels: (decode, loss); without labels: decode-only fast path
    decoded, loss = crf_forward(pred, attention_mask, labels,
                                start_trans, end_trans, transitions)
    decoded_only = crf_forward(pred, attention_mask, None,
                               start_trans, end_trans, transitions)
    jax.block_until_ready((decoded, loss, decoded_only))

    ref_dec, ref_loss = crf_reference(pred, attention_mask, labels,
                                      start_trans, end_trans, transitions)
    assert jnp.allclose(loss, ref_loss, atol=2e-4, rtol=1e-4), (loss, ref_loss)
    assert jnp.array_equal(decoded, ref_dec), (decoded, ref_dec)
    assert jnp.array_equal(decoded_only, ref_dec), (decoded_only, ref_dec)

    print("KERNEL_OK")
</pallas_src>

<mosaic_0001>
module attributes {stable_mosaic.version = 11 : i64} {
  func.func @_crf_kernel(%arg0: i32, %arg1: memref<10x8x8xf32, #tpu.memory_space<vmem>>, %arg2: memref<10x8xi32, #tpu.memory_space<vmem>>, %arg3: memref<10x8xi32, #tpu.memory_space<vmem>>, %arg4: memref<8x1xf32, #tpu.memory_space<vmem>>, %arg5: memref<8x1xf32, #tpu.memory_space<vmem>>, %arg6: memref<8x8x1xf32, #tpu.memory_space<vmem>>, %arg7: memref<10x8xi32, #tpu.memory_space<vmem>>, %arg8: memref<1x8xf32, #tpu.memory_space<vmem>>, %arg9: memref<10x8x8xi32, #tpu.memory_space<vmem>>) attributes {dimension_semantics = [#tpu.dimension_semantics<parallel>], iteration_bounds = array<i64: 1>, scalar_prefetch = 0 : i64, scratch_operands = 1 : i64, tpu.core_type = #tpu.core_type<tc>, window_params = [{transform_indices = @transform_0, window_bounds = array<i64: 10, 8, 8>}, {transform_indices = @transform_1, window_bounds = array<i64: 10, 8>}, {transform_indices = @transform_2, window_bounds = array<i64: 10, 8>}, {pipeline_mode = #tpu.pipeline_mode<synchronous>, transform_indices = @transform_3, window_bounds = array<i64: 8, 1>}, {pipeline_mode = #tpu.pipeline_mode<synchronous>, transform_indices = @transform_4, window_bounds = array<i64: 8, 1>}, {pipeline_mode = #tpu.pipeline_mode<synchronous>, transform_indices = @transform_5, window_bounds = array<i64: 8, 8, 1>}, {transform_indices = @transform_6, window_bounds = array<i64: 10, 8>}, {transform_indices = @transform_7, window_bounds = array<i64: 1, 8>}]} {
    %c0 = arith.constant 0 : index
    %c0_0 = arith.constant 0 : index
    %0 = vector.load %arg4[%c0, %c0_0] : memref<8x1xf32, #tpu.memory_space<vmem>>, vector<8x1xf32>
    %c0_1 = arith.constant 0 : index
    %c0_2 = arith.constant 0 : index
    %1 = vector.load %arg5[%c0_1, %c0_2] : memref<8x1xf32, #tpu.memory_space<vmem>>, vector<8x1xf32>
    %c0_3 = arith.constant 0 : index
    %c0_4 = arith.constant 0 : index
    %c0_5 = arith.constant 0 : index
    %2 = vector.load %arg6[%c0_3, %c0_4, %c0_5] : memref<8x8x1xf32, #tpu.memory_space<vmem>>, vector<8x8x1xf32>
    %3 = math.exp %2 : vector<8x8x1xf32>
    %4 = tpu.iota {dimensions = array<i32: 0>} : vector<8x8xi32>
    %c0_6 = arith.constant 0 : index
    %c0_7 = arith.constant 0 : index
    %c0_8 = arith.constant 0 : index
    %5 = vector.load %arg1[%c0_6, %c0_7, %c0_8] : memref<10x8x8xf32, #tpu.memory_space<vmem>>, vector<1x8x8xf32>
    %6 = vector.shape_cast %5 : vector<1x8x8xf32> to vector<8x8xf32>
    %7 = vector.broadcast %0 : vector<8x1xf32> to vector<8x8xf32>
    %8 = arith.addf %7, %6 : vector<8x8xf32>
    %c0_9 = arith.constant 0 : index
    %c0_10 = arith.constant 0 : index
    %9 = vector.load %arg3[%c0_9, %c0_10] : memref<10x8xi32, #tpu.memory_space<vmem>>, vector<1x8xi32>
    %10 = vector.broadcast %9 : vector<1x8xi32> to vector<8x8xi32>
    %11 = arith.cmpi eq, %4, %10 : vector<8x8xi32>
    %12 = arith.extui %11 : vector<8x8xi1> to vector<8x8xi32>
    %13 = arith.sitofp %12 : vector<8x8xi32> to vector<8x8xf32>
    %14 = arith.mulf %13, %8 : vector<8x8xf32>
    %c1 = arith.constant 1 : index
    %c0_11 = arith.constant 0 : index
    %c0_12 = arith.constant 0 : index
    %15 = vector.load %arg1[%c1, %c0_11, %c0_12] : memref<10x8x8xf32, #tpu.memory_space<vmem>>, vector<1x8x8xf32>
    %16 = vector.shape_cast %15 : vector<1x8x8xf32> to vector<8x8xf32>
    %c1_13 = arith.constant 1 : index
    %c0_14 = arith.constant 0 : index
    %17 = vector.load %arg2[%c1_13, %c0_14] : memref<10x8xi32, #tpu.memory_space<vmem>>, vector<1x8xi32>
    %c1_i32 = arith.constant 1 : i32
    %18 = vector.broadcast %c1_i32 : i32 to vector<1x8xi32>
    %19 = arith.cmpi eq, %17, %18 : vector<1x8xi32>
    %cst = arith.constant dense<0xFF800000> : vector<8xf32>
    %20 = vector.multi_reduction <maximumf>, %8, %cst [0] : vector<8x8xf32> to vector<8xf32>
    %21 = vector.shape_cast %20 : vector<8xf32> to vector<1x8xf32>
    %22 = vector.broadcast %21 : vector<1x8xf32> to vector<8x8xf32>
    %23 = arith.subf %8, %22 : vector<8x8xf32>
    %24 = math.exp %23 : vector<8x8xf32>
    %c1_15 = arith.constant 1 : index
    %c0_16 = arith.constant 0 : index
    %25 = vector.load %arg3[%c1_15, %c0_16] : memref<10x8xi32, #tpu.memory_space<vmem>>, vector<1x8xi32>
    %26 = vector.broadcast %25 : vector<1x8xi32> to vector<8x8xi32>
    %27 = arith.cmpi eq, %4, %26 : vector<8x8xi32>
    %28 = arith.extui %27 : vector<8x8xi1> to vector<8x8xi32>
    %29 = arith.sitofp %28 : vector<8x8xi32> to vector<8x8xf32>
    %30 = vector.extract_strided_slice %3 {offsets = [0, 0, 0], sizes = [1, 8, 1], strides = [1, 1, 1]} : vector<8x8x1xf32> to vector<1x8x1xf32>
    %31 = vector.shape_cast %30 : vector<1x8x1xf32> to vector<8x1xf32>
    %32 = vector.extract_strided_slice %24 {offsets = [0, 0], sizes = [1, 8], strides = [1, 1]} : vector<8x8xf32> to vector<1x8xf32>
    %33 = vector.broadcast %31 : vector<8x1xf32> to vector<8x8xf32>
    %34 = vector.broadcast %32 : vector<1x8xf32> to vector<8x8xf32>
    %35 = arith.mulf %33, %34 : vector<8x8xf32>
    %36 = vector.extract_strided_slice %2 {offsets = [0, 0, 0], sizes = [1, 8, 1], strides = [1, 1, 1]} : vector<8x8x1xf32> to vector<1x8x1xf32>
    %37 = vector.shape_cast %36 : vector<1x8x1xf32> to vector<8x1xf32>
    %38 = vector.extract_strided_slice %8 {offsets = [0, 0], sizes = [1, 8], strides = [1, 1]} : vector<8x8xf32> to vector<1x8xf32>
    %39 = vector.broadcast %37 : vector<8x1xf32> to vector<8x8xf32>
    %40 = vector.broadcast %38 : vector<1x8xf32> to vector<8x8xf32>
    %41 = arith.addf %39, %40 : vector<8x8xf32>
    %c0_i32 = arith.constant 0 : i32
    %42 = vector.broadcast %c0_i32 : i32 to vector<8x8xi32>
    %43 = vector.extract_strided_slice %13 {offsets = [0, 0], sizes = [1, 8], strides = [1, 1]} : vector<8x8xf32> to vector<1x8xf32>
    %44 = vector.extract_strided_slice %2 {offsets = [0, 0, 0], sizes = [1, 8, 1], strides = [1, 1, 1]} : vector<8x8x1xf32> to vector<1x8x1xf32>
    %45 = vector.shape_cast %44 : vector<1x8x1xf32> to vector<8x1xf32>
    %46 = vector.broadcast %43 : vector<1x8xf32> to vector<8x8xf32>
    %47 = vector.broadcast %45 : vector<8x1xf32> to vector<8x8xf32>
    %48 = arith.mulf %46, %47 : vector<8x8xf32>
    %49 = vector.extract_strided_slice %2 {offsets = [1, 0, 0], sizes = [1, 8, 1], strides = [1, 1, 1]} : vector<8x8x1xf32> to vector<1x8x1xf32>
    %50 = vector.shape_cast %49 : vector<1x8x1xf32> to vector<8x1xf32>
    %51 = vector.extract_strided_slice %3 {offsets = [1, 0, 0], sizes = [1, 8, 1], strides = [1, 1, 1]} : vector<8x8x1xf32> to vector<1x8x1xf32>
    %52 = vector.shape_cast %51 : vector<1x8x1xf32> to vector<8x1xf32>
    %53 = vector.extract_strided_slice %24 {offsets = [1, 0], sizes = [1, 8], strides = [1, 1]} : vector<8x8xf32> to vector<1x8xf32>
    %54 = vector.broadcast %52 : vector<8x1xf32> to vector<8x8xf32>
    %55 = vector.broadcast %53 : vector<1x8xf32> to vector<8x8xf32>
    %56 = arith.mulf %54, %55 : vector<8x8xf32>
    %57 = arith.addf %35, %56 : vector<8x8xf32>
    %58 = vector.extract_strided_slice %8 {offsets = [1, 0], sizes = [1, 8], strides = [1, 1]} : vector<8x8xf32> to vector<1x8xf32>
    %59 = vector.broadcast %50 : vector<8x1xf32> to vector<8x8xf32>
    %60 = vector.broadcast %58 : vector<1x8xf32> to vector<8x8xf32>
    %61 = arith.addf %59, %60 : vector<8x8xf32>
    %62 = arith.cmpf ogt, %61, %41 : vector<8x8xf32>
    %63 = arith.select %62, %61, %41 : vector<8x8xi1>, vector<8x8xf32>
    %c1_i32_17 = arith.constant 1 : i32
    %64 = vector.broadcast %c1_i32_17 : i32 to vector<8x8xi32>
    %65 = arith.select %62, %64, %42 : vector<8x8xi1>, vector<8x8xi32>
    %66 = vector.extract_strided_slice %13 {offsets = [1, 0], sizes = [1, 8], strides = [1, 1]} : vector<8x8xf32> to vector<1x8xf32>
    %67 = vector.broadcast %66 : vector<1x8xf32> to vector<8x8xf32>
    %68 = vector.broadcast %50 : vector<8x1xf32> to vector<8x8xf32>
    %69 = arith.mulf %67, %68 : vector<8x8xf32>
    %70 = arith.addf %48, %69 : vector<8x8xf32>
    %71 = vector.extract_strided_slice %2 {offsets = [2, 0, 0], sizes = [1, 8, 1], strides = [1, 1, 1]} : vector<8x8x1xf32> to vector<1x8x1xf32>
    %72 = vector.shape_cast %71 : vector<1x8x1xf32> to vector<8x1xf32>
    %73 = vector.extract_strided_slice %3 {offsets = [2, 0, 0], sizes = [1, 8, 1], strides = [1, 1, 1]} : vector<8x8x1xf32> to vector<1x8x1xf32>
    %74 = vector.shape_cast %73 : vector<1x8x1xf32> to vector<8x1xf32>
    %75 = vector.extract_strided_slice %24 {offsets = [2, 0], sizes = [1, 8], strides = [1, 1]} : vector<8x8xf32> to vector<1x8xf32>
    %76 = vector.broadcast %74 : vector<8x1xf32> to vector<8x8xf32>
    %77 = vector.broadcast %75 : vector<1x8xf32> to vector<8x8xf32>
    %78 = arith.mulf %76, %77 : vector<8x8xf32>
    %79 = arith.addf %57, %78 : vector<8x8xf32>
    %80 = vector.extract_strided_slice %8 {offsets = [2, 0], sizes = [1, 8], strides = [1, 1]} : vector<8x8xf32> to vector<1x8xf32>
    %81 = vector.broadcast %72 : vector<8x1xf32> to vector<8x8xf32>
    %82 = vector.broadcast %80 : vector<1x8xf32> to vector<8x8xf32>
    %83 = arith.addf %81, %82 : vector<8x8xf32>
    %84 = arith.cmpf ogt, %83, %63 : vector<8x8xf32>
    %85 = arith.select %84, %83, %63 : vector<8x8xi1>, vector<8x8xf32>
    %c2_i32 = arith.constant 2 : i32
    %86 = vector.broadcast %c2_i32 : i32 to vector<8x8xi32>
    %87 = arith.select %84, %86, %65 : vector<8x8xi1>, vector<8x8xi32>
    %88 = vector.extract_strided_slice %13 {offsets = [2, 0], sizes = [1, 8], strides = [1, 1]} : vector<8x8xf32> to vector<1x8xf32>
    %89 = vector.broadcast %88 : vector<1x8xf32> to vector<8x8xf32>
    %90 = vector.broadcast %72 : vector<8x1xf32> to vector<8x8xf32>
    %91 = arith.mulf %89, %90 : vector<8x8xf32>
    %92 = arith.addf %70, %91 : vector<8x8xf32>
    %93 = vector.extract_strided_slice %2 {offsets = [3, 0, 0], sizes = [1, 8, 1], strides = [1, 1, 1]} : vector<8x8x1xf32> to vector<1x8x1xf32>
    %94 = vector.shape_cast %93 : vector<1x8x1xf32> to vector<8x1xf32>
    %95 = vector.extract_strided_slice %3 {offsets = [3, 0, 0], sizes = [1, 8, 1], strides = [1, 1, 1]} : vector<8x8x1xf32> to vector<1x8x1xf32>
    %96 = vector.shape_cast %95 : vector<1x8x1xf32> to vector<8x1xf32>
    %97 = vector.extract_strided_slice %24 {offsets = [3, 0], sizes = [1, 8], strides = [1, 1]} : vector<8x8xf32> to vector<1x8xf32>
    %98 = vector.broadcast %96 : vector<8x1xf32> to vector<8x8xf32>
    %99 = vector.broadcast %97 : vector<1x8xf32> to vector<8x8xf32>
    %100 = arith.mulf %98, %99 : vector<8x8xf32>
    %101 = arith.addf %79, %100 : vector<8x8xf32>
    %102 = vector.extract_strided_slice %8 {offsets = [3, 0], sizes = [1, 8], strides = [1, 1]} : vector<8x8xf32> to vector<1x8xf32>
    %103 = vector.broadcast %94 : vector<8x1xf32> to vector<8x8xf32>
    %104 = vector.broadcast %102 : vector<1x8xf32> to vector<8x8xf32>
    %105 = arith.addf %103, %104 : vector<8x8xf32>
    %106 = arith.cmpf ogt, %105, %85 : vector<8x8xf32>
    %107 = arith.select %106, %105, %85 : vector<8x8xi1>, vector<8x8xf32>
    %c3_i32 = arith.constant 3 : i32
    %108 = vector.broadcast %c3_i32 : i32 to vector<8x8xi32>
    %109 = arith.select %106, %108, %87 : vector<8x8xi1>, vector<8x8xi32>
    %110 = vector.extract_strided_slice %13 {offsets = [3, 0], sizes = [1, 8], strides = [1, 1]} : vector<8x8xf32> to vector<1x8xf32>
    %111 = vector.broadcast %110 : vector<1x8xf32> to vector<8x8xf32>
    %112 = vector.broadcast %94 : vector<8x1xf32> to vector<8x8xf32>
    %113 = arith.mulf %111, %112 : vector<8x8xf32>
    %114 = arith.addf %92, %113 : vector<8x8xf32>
    %115 = vector.extract_strided_slice %2 {offsets = [4, 0, 0], sizes = [1, 8, 1], strides = [1, 1, 1]} : vector<8x8x1xf32> to vector<1x8x1xf32>
    %116 = vector.shape_cast %115 : vector<1x8x1xf32> to vector<8x1xf32>
    %117 = vector.extract_strided_slice %3 {offsets = [4, 0, 0], sizes = [1, 8, 1], strides = [1, 1, 1]} : vector<8x8x1xf32> to vector<1x8x1xf32>
    %118 = vector.shape_cast %117 : vector<1x8x1xf32> to vector<8x1xf32>
    %119 = vector.extract_strided_slice %24 {offsets = [4, 0], sizes = [1, 8], strides = [1, 1]} : vector<8x8xf32> to vector<1x8xf32>
    %120 = vector.broadcast %118 : vector<8x1xf32> to vector<8x8xf32>
    %121 = vector.broadcast %119 : vector<1x8xf32> to vector<8x8xf32>
    %122 = arith.mulf %120, %121 : vector<8x8xf32>
    %123 = arith.addf %101, %122 : vector<8x8xf32>
    %124 = vector.extract_strided_slice %8 {offsets = [4, 0], sizes = [1, 8], strides = [1, 1]} : vector<8x8xf32> to vector<1x8xf32>
    %125 = vector.broadcast %116 : vector<8x1xf32> to vector<8x8xf32>
    %126 = vector.broadcast %124 : vector<1x8xf32> to vector<8x8xf32>
    %127 = arith.addf %125, %126 : vector<8x8xf32>
    %128 = arith.cmpf ogt, %127, %107 : vector<8x8xf32>
    %129 = arith.select %128, %127, %107 : vector<8x8xi1>, vector<8x8xf32>
    %c4_i32 = arith.constant 4 : i32
    %130 = vector.broadcast %c4_i32 : i32 to vector<8x8xi32>
    %131 = arith.select %128, %130, %109 : vector<8x8xi1>, vector<8x8xi32>
    %132 = vector.extract_strided_slice %13 {offsets = [4, 0], sizes = [1, 8], strides = [1, 1]} : vector<8x8xf32> to vector<1x8xf32>
    %133 = vector.broadcast %132 : vector<1x8xf32> to vector<8x8xf32>
    %134 = vector.broadcast %116 : vector<8x1xf32> to vector<8x8xf32>
    %135 = arith.mulf %133, %134 : vector<8x8xf32>
    %136 = arith.addf %114, %135 : vector<8x8xf32>
    %137 = vector.extract_strided_slice %2 {offsets = [5, 0, 0], sizes = [1, 8, 1], strides = [1, 1, 1]} : vector<8x8x1xf32> to vector<1x8x1xf32>
    %138 = vector.shape_cast %137 : vector<1x8x1xf32> to vector<8x1xf32>
    %139 = vector.extract_strided_slice %3 {offsets = [5, 0, 0], sizes = [1, 8, 1], strides = [1, 1, 1]} : vector<8x8x1xf32> to vector<1x8x1xf32>
    %140 = vector.shape_cast %139 : vector<1x8x1xf32> to vector<8x1xf32>
    %141 = vector.extract_strided_slice %24 {offsets = [5, 0], sizes = [1, 8], strides = [1, 1]} : vector<8x8xf32> to vector<1x8xf32>
    %142 = vector.broadcast %140 : vector<8x1xf32> to vector<8x8xf32>
    %143 = vector.broadcast %141 : vector<1x8xf32> to vector<8x8xf32>
    %144 = arith.mulf %142, %143 : vector<8x8xf32>
    %145 = arith.addf %123, %144 : vector<8x8xf32>
    %146 = vector.extract_strided_slice %8 {offsets = [5, 0], sizes = [1, 8], strides = [1, 1]} : vector<8x8xf32> to vector<1x8xf32>
    %147 = vector.broadcast %138 : vector<8x1xf32> to vector<8x8xf32>
    %148 = vector.broadcast %146 : vector<1x8xf32> to vector<8x8xf32>
    %149 = arith.addf %147, %148 : vector<8x8xf32>
    %150 = arith.cmpf ogt, %149, %129 : vector<8x8xf32>
    %151 = arith.select %150, %149, %129 : vector<8x8xi1>, vector<8x8xf32>
    %c5_i32 = arith.constant 5 : i32
    %152 = vector.broadcast %c5_i32 : i32 to vector<8x8xi32>
    %153 = arith.select %150, %152, %131 : vector<8x8xi1>, vector<8x8xi32>
    %154 = vector.extract_strided_slice %13 {offsets = [5, 0], sizes = [1, 8], strides = [1, 1]} : vector<8x8xf32> to vector<1x8xf32>
    %155 = vector.broadcast %154 : vector<1x8xf32> to vector<8x8xf32>
    %156 = vector.broadcast %138 : vector<8x1xf32> to vector<8x8xf32>
    %157 = arith.mulf %155, %156 : vector<8x8xf32>
    %158 = arith.addf %136, %157 : vector<8x8xf32>
    %159 = vector.extract_strided_slice %2 {offsets = [6, 0, 0], sizes = [1, 8, 1], strides = [1, 1, 1]} : vector<8x8x1xf32> to vector<1x8x1xf32>
    %160 = vector.shape_cast %159 : vector<1x8x1xf32> to vector<8x1xf32>
    %161 = vector.extract_strided_slice %3 {offsets = [6, 0, 0], sizes = [1, 8, 1], strides = [1, 1, 1]} : vector<8x8x1xf32> to vector<1x8x1xf32>
    %162 = vector.shape_cast %161 : vector<1x8x1xf32> to vector<8x1xf32>
    %163 = vector.extract_strided_slice %24 {offsets = [6, 0], sizes = [1, 8], strides = [1, 1]} : vector<8x8xf32> to vector<1x8xf32>
    %164 = vector.broadcast %162 : vector<8x1xf32> to vector<8x8xf32>
    %165 = vector.broadcast %163 : vector<1x8xf32> to vector<8x8xf32>
    %166 = arith.mulf %164, %165 : vector<8x8xf32>
    %167 = arith.addf %145, %166 : vector<8x8xf32>
    %168 = vector.extract_strided_slice %8 {offsets = [6, 0], sizes = [1, 8], strides = [1, 1]} : vector<8x8xf32> to vector<1x8xf32>
    %169 = vector.broadcast %160 : vector<8x1xf32> to vector<8x8xf32>
    %170 = vector.broadcast %168 : vector<1x8xf32> to vector<8x8xf32>
    %171 = arith.addf %169, %170 : vector<8x8xf32>
    %172 = arith.cmpf ogt, %171, %151 : vector<8x8xf32>
    %173 = arith.select %172, %171, %151 : vector<8x8xi1>, vector<8x8xf32>
    %c6_i32 = arith.constant 6 : i32
    %174 = vector.broadcast %c6_i32 : i32 to vector<8x8xi32>
    %175 = arith.select %172, %174, %153 : vector<8x8xi1>, vector<8x8xi32>
    %176 = vector.extract_strided_slice %13 {offsets = [6, 0], sizes = [1, 8], strides = [1, 1]} : vector<8x8xf32> to vector<1x8xf32>
    %177 = vector.broadcast %176 : vector<1x8xf32> to vector<8x8xf32>
    %178 = vector.broadcast %160 : vector<8x1xf32> to vector<8x8xf32>
    %179 = arith.mulf %177, %178 : vector<8x8xf32>
    %180 = arith.addf %158, %179 : vector<8x8xf32>
    %181 = vector.extract_strided_slice %2 {offsets = [7, 0, 0], sizes = [1, 8, 1], strides = [1, 1, 1]} : vector<8x8x1xf32> to vector<1x8x1xf32>
    %182 = vector.shape_cast %181 : vector<1x8x1xf32> to vector<8x1xf32>
    %183 = vector.extract_strided_slice %3 {offsets = [7, 0, 0], sizes = [1, 8, 1], strides = [1, 1, 1]} : vector<8x8x1xf32> to vector<1x8x1xf32>
    %184 = vector.shape_cast %183 : vector<1x8x1xf32> to vector<8x1xf32>
    %185 = vector.extract_strided_slice %24 {offsets = [7, 0], sizes = [1, 8], strides = [1, 1]} : vector<8x8xf32> to vector<1x8xf32>
    %186 = vector.broadcast %184 : vector<8x1xf32> to vector<8x8xf32>
    %187 = vector.broadcast %185 : vector<1x8xf32> to vector<8x8xf32>
    %188 = arith.mulf %186, %187 : vector<8x8xf32>
    %189 = arith.addf %167, %188 : vector<8x8xf32>
    %190 = vector.extract_strided_slice %8 {offsets = [7, 0], sizes = [1, 8], strides = [1, 1]} : vector<8x8xf32> to vector<1x8xf32>
    %191 = vector.broadcast %182 : vector<8x1xf32> to vector<8x8xf32>
    %192 = vector.broadcast %190 : vector<1x8xf32> to vector<8x8xf32>
    %193 = arith.addf %191, %192 : vector<8x8xf32>
    %194 = arith.cmpf ogt, %193, %173 : vector<8x8xf32>
    %195 = arith.select %194, %193, %173 : vector<8x8xi1>, vector<8x8xf32>
    %c7_i32 = arith.constant 7 : i32
    %196 = vector.broadcast %c7_i32 : i32 to vector<8x8xi32>
    %197 = arith.select %194, %196, %175 : vector<8x8xi1>, vector<8x8xi32>
    %198 = vector.extract_strided_slice %13 {offsets = [7, 0], sizes = [1, 8], strides = [1, 1]} : vector<8x8xf32> to vector<1x8xf32>
    %199 = vector.broadcast %198 : vector<1x8xf32> to vector<8x8xf32>
    %200 = vector.broadcast %182 : vector<8x1xf32> to vector<8x8xf32>
    %201 = arith.mulf %199, %200 : vector<8x8xf32>
    %202 = arith.addf %180, %201 : vector<8x8xf32>
    %203 = vector.broadcast %21 : vector<1x8xf32> to vector<8x8xf32>
    %204 = arith.addf %16, %203 : vector<8x8xf32>
    %205 = math.log %189 : vector<8x8xf32>
    %206 = arith.addf %204, %205 : vector<8x8xf32>
    %207 = vector.shape_cast %19 : vector<1x8xi1> to vector<1x8xi1>
    %208 = vector.broadcast %207 : vector<1x8xi1> to vector<8x8xi1>
    %209 = arith.select %208, %206, %8 : vector<8x8xi1>, vector<8x8xf32>
    %210 = arith.addf %16, %195 : vector<8x8xf32>
    %211 = vector.shape_cast %19 : vector<1x8xi1> to vector<1x8xi1>
    %212 = vector.broadcast %211 : vector<1x8xi1> to vector<8x8xi1>
    %213 = arith.select %212, %210, %8 : vector<8x8xi1>, vector<8x8xf32>
    %214 = vector.shape_cast %19 : vector<1x8xi1> to vector<1x8xi1>
    %215 = vector.broadcast %214 : vector<1x8xi1> to vector<8x8xi1>
    %216 = arith.select %215, %197, %4 : vector<8x8xi1>, vector<8x8xi32>
    %c1_18 = arith.constant 1 : index
    %c0_19 = arith.constant 0 : index
    %c0_20 = arith.constant 0 : index
    %217 = vector.load %arg9[%c1_18, %c0_19, %c0_20] : memref<10x8x8xi32, #tpu.memory_space<vmem>>, vector<1x8x8xi32>
    %218 = vector.shape_cast %217 : vector<1x8x8xi32> to vector<8x8xi32>
    %219 = vector.shape_cast %216 : vector<8x8xi32> to vector<1x8x8xi32>
    tpu.vector_store %arg9[%c1_18, %c0_19, %c0_20], %219 {strides = array<i32>} : memref<10x8x8xi32, #tpu.memory_space<vmem>>, vector<1x8x8xi32>,
    %220 = arith.sitofp %17 : vector<1x8xi32> to vector<1x8xf32>
    %221 = vector.broadcast %220 : vector<1x8xf32> to vector<8x8xf32>
    %222 = arith.mulf %221, %29 : vector<8x8xf32>
    %223 = arith.addf %202, %16 : vector<8x8xf32>
    %224 = arith.mulf %222, %223 : vector<8x8xf32>
    %225 = arith.addf %14, %224 : vector<8x8xf32>
    %226 = vector.shape_cast %19 : vector<1x8xi1> to vector<1x8xi1>
    %227 = vector.broadcast %226 : vector<1x8xi1> to vector<8x8xi1>
    %228 = arith.select %227, %29, %13 : vector<8x8xi1>, vector<8x8xf32>
    %c2 = arith.constant 2 : index
    %c0_21 = arith.constant 0 : index
    %c0_22 = arith.constant 0 : index
    %229 = vector.load %arg1[%c2, %c0_21, %c0_22] : memref<10x8x8xf32, #tpu.memory_space<vmem>>, vector<1x8x8xf32>
    %230 = vector.shape_cast %229 : vector<1x8x8xf32> to vector<8x8xf32>
    %c2_23 = arith.constant 2 : index
    %c0_24 = arith.constant 0 : index
    %231 = vector.load %arg2[%c2_23, %c0_24] : memref<10x8xi32, #tpu.memory_space<vmem>>, vector<1x8xi32>
    %c1_i32_25 = arith.constant 1 : i32
    %232 = vector.broadcast %c1_i32_25 : i32 to vector<1x8xi32>
    %233 = arith.cmpi eq, %231, %232 : vector<1x8xi32>
    %cst_26 = arith.constant dense<0xFF800000> : vector<8xf32>
    %234 = vector.multi_reduction <maximumf>, %209, %cst_26 [0] : vector<8x8xf32> to vector<8xf32>
    %235 = vector.shape_cast %234 : vector<8xf32> to vector<1x8xf32>
    %236 = vector.broadcast %235 : vector<1x8xf32> to vector<8x8xf32>
    %237 = arith.subf %209, %236 : vector<8x8xf32>
    %238 = math.exp %237 : vector<8x8xf32>
    %c2_27 = arith.constant 2 : index
    %c0_28 = arith.constant 0 : index
    %239 = vector.load %arg3[%c2_27, %c0_28] : memref<10x8xi32, #tpu.memory_space<vmem>>, vector<1x8xi32>
    %240 = vector.broadcast %239 : vector<1x8xi32> to vector<8x8xi32>
    %241 = arith.cmpi eq, %4, %240 : vector<8x8xi32>
    %242 = arith.extui %241 : vector<8x8xi1> to vector<8x8xi32>
    %243 = arith.sitofp %242 : vector<8x8xi32> to vector<8x8xf32>
    %244 = vector.extract_strided_slice %3 {offsets = [0, 0, 0], sizes = [1, 8, 1], strides = [1, 1, 1]} : vector<8x8x1xf32> to vector<1x8x1xf32>
    %245 = vector.shape_cast %244 : vector<1x8x1xf32> to vector<8x1xf32>
    %246 = vector.extract_strided_slice %238 {offsets = [0, 0], sizes = [1, 8], strides = [1, 1]} : vector<8x8xf32> to vector<1x8xf32>
    %247 = vector.broadcast %245 : vector<8x1xf32> to vector<8x8xf32>
    %248 = vector.broadcast %246 : vector<1x8xf32> to vector<8x8xf32>
    %249 = arith.mulf %247, %248 : vector<8x8xf32>
    %250 = vector.extract_strided_slice %2 {offsets = [0, 0, 0], sizes = [1, 8, 1], strides = [1, 1, 1]} : vector<8x8x1xf32> to vector<1x8x1xf32>
    %251 = vector.shape_cast %250 : vector<1x8x1xf32> to vector<8x1xf32>
    %252 = vector.extract_strided_slice %213 {offsets = [0, 0], sizes = [1, 8], strides = [1, 1]} : vector<8x8xf32> to vector<1x8xf32>
    %253 = vector.broadcast %251 : vector<8x1xf32> to vector<8x8xf32>
    %254 = vector.broadcast %252 : vector<1x8xf32> to vector<8x8xf32>
    %255 = arith.addf %253, %254 : vector<8x8xf32>
    %c0_i32_29 = arith.constant 0 : i32
    %256 = vector.broadcast %c0_i32_29 : i32 to vector<8x8xi32>
    %257 = vector.extract_strided_slice %29 {offsets = [0, 0], sizes = [1, 8], strides = [1, 1]} : vector<8x8xf32> to vector<1x8xf32>
    %258 = vector.extract_strided_slice %2 {offsets = [0, 0, 0], sizes = [1, 8, 1], strides = [1, 1, 1]} : vector<8x8x1xf32> to vector<1x8x1xf32>
    %259 = vector.shape_cast %258 : vector<1x8x1xf32> to vector<8x1xf32>
    %260 = vector.broadcast %257 : vector<1x8xf32> to vector<8x8xf32>
    %261 = vector.broadcast %259 : vector<8x1xf32> to vector<8x8xf32>
    %262 = arith.mulf %260, %261 : vector<8x8xf32>
    %263 = vector.extract_strided_slice %2 {offsets = [1, 0, 0], sizes = [1, 8, 1], strides = [1, 1, 1]} : vector<8x8x1xf32> to vector<1x8x1xf32>
    %264 = vector.shape_cast %263 : vector<1x8x1xf32> to vector<8x1xf32>
    %265 = vector.extract_strided_slice %3 {offsets = [1, 0, 0], sizes = [1, 8, 1], strides = [1, 1, 1]} : vector<8x8x1xf32> to vector<1x8x1xf32>
    %266 = vector.shape_cast %265 : vector<1x8x1xf32> to vector<8x1xf32>
    %267 = vector.extract_strided_slice %238 {offsets = [1, 0], sizes = [1, 8], strides = [1, 1]} : vector<8x8xf32> to vector<1x8xf32>
    %268 = vector.broadcast %266 : vector<8x1xf32> to vector<8x8xf32>
    %269 = vector.broadcast %267 : vector<1x8xf32> to vector<8x8xf32>
    %270 = arith.mulf %268, %269 : vector<8x8xf32>
    %271 = arith.addf %249, %270 : vector<8x8xf32>
    %272 = vector.extract_strided_slice %213 {offsets = [1, 0], sizes = [1, 8], strides = [1, 1]} : vector<8x8xf32> to vector<1x8xf32>
    %273 = vector.broadcast %264 : vector<8x1xf32> to vector<8x8xf32>
    %274 = vector.broadcast %272 : vector<1x8xf32> to vector<8x8xf32>
    %275 = arith.addf %273, %274 : vector<8x8xf32>
    %276 = arith.cmpf ogt, %275, %255 : vector<8x8xf32>
    %277 = arith.select %276, %275, %255 : vector<8x8xi1>, vector<8x8xf32>
    %c1_i32_30 = arith.constant 1 : i32
    %278 = vector.broadcast %c1_i32_30 : i32 to vector<8x8xi32>
    %279 = arith.select %276, %278, %256 : vector<8x8xi1>, vector<8x8xi32>
    %280 = vector.extract_strided_slice %29 {offsets = [1, 0], sizes = [1, 8], strides = [1, 1]} : vector<8x8xf32> to vector<1x8xf32>
    %281 = vector.broadcast %280 : vector<1x8xf32> to vector<8x8xf32>
    %282 = vector.broadcast %264 : vector<8x1xf32> to vector<8x8xf32>
    %283 = arith.mulf %281, %282 : vector<8x8xf32>
    %284 = arith.addf %262, %283 : vector<8x8xf32>
    %285 = vector.extract_strided_slice %2 {offsets = [2, 0, 0], sizes = [1, 8, 1], strides = [1, 1, 1]} : vector<8x8x1xf32> to vector<1x8x1xf32>
    %286 = vector.shape_cast %285 : vector<1x8x1xf32> to vector<8x1xf32>
    %287 = vector.extract_strided_slice %3 {offsets = [2, 0, 0], sizes = [1, 8, 1], strides = [1, 1, 1]} : vector<8x8x1xf32> to vector<1x8x1xf32>
    %288 = vector.shape_cast %287 : vector<1x8x1xf32> to vector<8x1xf32>
    %289 = vector.extract_strided_slice %238 {offsets = [2, 0], sizes = [1, 8], strides = [1, 1]} : vector<8x8xf32> to vector<1x8xf32>
    %290 = vector.broadcast %288 : vector<8x1xf32> to vector<8x8xf32>
    %291 = vector.broadcast %289 : vector<1x8xf32> to vector<8x8xf32>
    %292 = arith.mulf %290, %291 : vector<8x8xf32>
    %293 = arith.addf %271, %292 : vector<8x8xf32>
    %294 = vector.extract_strided_slice %213 {offsets = [2, 0], sizes = [1, 8], strides = [1, 1]} : vector<8x8xf32> to vector<1x8xf32>
    %295 = vector.broadcast %286 : vector<8x1xf32> to vector<8x8xf32>
    %296 = vector.broadcast %294 : vector<1x8xf32> to vector<8x8xf32>
    %297 = arith.addf %295, %296 : vector<8x8xf32>
    %298 = arith.cmpf ogt, %297, %277 : vector<8x8xf32>
    %299 = arith.select %298, %297, %277 : vector<8x8xi1>, vector<8x8xf32>
    %c2_i32_31 = arith.constant 2 : i32
    %300 = vector.broadcast %c2_i32_31 : i32 to vector<8x8xi32>
    %301 = arith.select %298, %300, %279 : vector<8x8xi1>, vector<8x8xi32>
    %302 = vector.extract_strided_slice %29 {offsets = [2, 0], sizes = [1, 8], strides = [1, 1]} : vector<8x8xf32> to vector<1x8xf32>
    %303 = vector.broadcast %302 : vector<1x8xf32> to vector<8x8xf32>
    %304 = vector.broadcast %286 : vector<8x1xf32> to vector<8x8xf32>
    %305 = arith.mulf %303, %304 : vector<8x8xf32>
    %306 = arith.addf %284, %305 : vector<8x8xf32>
    %307 = vector.extract_strided_slice %2 {offsets = [3, 0, 0], sizes = [1, 8, 1], strides = [1, 1, 1]} : vector<8x8x1xf32> to vector<1x8x1xf32>
    %308 = vector.shape_cast %307 : vector<1x8x1xf32> to vector<8x1xf32>
    %309 = vector.extract_strided_slice %3 {offsets = [3, 0, 0], sizes = [1, 8, 1], strides = [1, 1, 1]} : vector<8x8x1xf32> to vector<1x8x1xf32>
    %310 = vector.shape_cast %309 : vector<1x8x1xf32> to vector<8x1xf32>
    %311 = vector.extract_strided_slice %238 {offsets = [3, 0], sizes = [1, 8], strides = [1, 1]} : vector<8x8xf32> to vector<1x8xf32>
    %312 = vector.broadcast %310 : vector<8x1xf32> to vector<8x8xf32>
    %313 = vector.broadcast %311 : vector<1x8xf32> to vector<8x8xf32>
    %314 = arith.mulf %312, %313 : vector<8x8xf32>
    %315 = arith.addf %293, %314 : vector<8x8xf32>
    %316 = vector.extract_strided_slice %213 {offsets = [3, 0], sizes = [1, 8], strides = [1, 1]} : vector<8x8xf32> to vector<1x8xf32>
    %317 = vector.broadcast %308 : vector<8x1xf32> to vector<8x8xf32>
    %318 = vector.broadcast %316 : vector<1x8xf32> to vector<8x8xf32>
    %319 = arith.addf %317, %318 : vector<8x8xf32>
    %320 = arith.cmpf ogt, %319, %299 : vector<8x8xf32>
    %321 = arith.select %320, %319, %299 : vector<8x8xi1>, vector<8x8xf32>
    %c3_i32_32 = arith.constant 3 : i32
    %322 = vector.broadcast %c3_i32_32 : i32 to vector<8x8xi32>
    %323 = arith.select %320, %322, %301 : vector<8x8xi1>, vector<8x8xi32>
    %324 = vector.extract_strided_slice %29 {offsets = [3, 0], sizes = [1, 8], strides = [1, 1]} : vector<8x8xf32> to vector<1x8xf32>
    %325 = vector.broadcast %324 : vector<1x8xf32> to vector<8x8xf32>
    %326 = vector.broadcast %308 : vector<8x1xf32> to vector<8x8xf32>
    %327 = arith.mulf %325, %326 : vector<8x8xf32>
    %328 = arith.addf %306, %327 : vector<8x8xf32>
    %329 = vector.extract_strided_slice %2 {offsets = [4, 0, 0], sizes = [1, 8, 1], strides = [1, 1, 1]} : vector<8x8x1xf32> to vector<1x8x1xf32>
    %330 = vector.shape_cast %329 : vector<1x8x1xf32> to vector<8x1xf32>
    %331 = vector.extract_strided_slice %3 {offsets = [4, 0, 0], sizes = [1, 8, 1], strides = [1, 1, 1]} : vector<8x8x1xf32> to vector<1x8x1xf32>
    %332 = vector.shape_cast %331 : vector<1x8x1xf32> to vector<8x1xf32>
    %333 = vector.extract_strided_slice %238 {offsets = [4, 0], sizes = [1, 8], strides = [1, 1]} : vector<8x8xf32> to vector<1x8xf32>
    %334 = vector.broadcast %332 : vector<8x1xf32> to vector<8x8xf32>
    %335 = vector.broadcast %333 : vector<1x8xf32> to vector<8x8xf32>
    %336 = arith.mulf %334, %335 : vector<8x8xf32>
    %337 = arith.addf %315, %336 : vector<8x8xf32>
    %338 = vector.extract_strided_slice %213 {offsets = [4, 0], sizes = [1, 8], strides = [1, 1]} : vector<8x8xf32> to vector<1x8xf32>
    %339 = vector.broadcast %330 : vector<8x1xf32> to vector<8x8xf32>
    %340 = vector.broadcast %338 : vector<1x8xf32> to vector<8x8xf32>
    %341 = arith.addf %339, %340 : vector<8x8xf32>
    %342 = arith.cmpf ogt, %341, %321 : vector<8x8xf32>
    %343 = arith.select %342, %341, %321 : vector<8x8xi1>, vector<8x8xf32>
    %c4_i32_33 = arith.constant 4 : i32
    %344 = vector.broadcast %c4_i32_33 : i32 to vector<8x8xi32>
    %345 = arith.select %342, %344, %323 : vector<8x8xi1>, vector<8x8xi32>
    %346 = vector.extract_strided_slice %29 {offsets = [4, 0], sizes = [1, 8], strides = [1, 1]} : vector<8x8xf32> to vector<1x8xf32>
    %347 = vector.broadcast %346 : vector<1x8xf32> to vector<8x8xf32>
    %348 = vector.broadcast %330 : vector<8x1xf32> to vector<8x8xf32>
    %349 = arith.mulf %347, %348 : vector<8x8xf32>
    %350 = arith.addf %328, %349 : vector<8x8xf32>
    %351 = vector.extract_strided_slice %2 {offsets = [5, 0, 0], sizes = [1, 8, 1], strides = [1, 1, 1]} : vector<8x8x1xf32> to vector<1x8x1xf32>
    %352 = vector.shape_cast %351 : vector<1x8x1xf32> to vector<8x1xf32>
    %353 = vector.extract_strided_slice %3 {offsets = [5, 0, 0], sizes = [1, 8, 1], strides = [1, 1, 1]} : vector<8x8x1xf32> to vector<1x8x1xf32>
    %354 = vector.shape_cast %353 : vector<1x8x1xf32> to vector<8x1xf32>
    %355 = vector.extract_strided_slice %238 {offsets = [5, 0], sizes = [1, 8], strides = [1, 1]} : vector<8x8xf32> to vector<1x8xf32>
    %356 = vector.broadcast %354 : vector<8x1xf32> to vector<8x8xf32>
    %357 = vector.broadcast %355 : vector<1x8xf32> to vector<8x8xf32>
    %358 = arith.mulf %356, %357 : vector<8x8xf32>
    %359 = arith.addf %337, %358 : vector<8x8xf32>
    %360 = vector.extract_strided_slice %213 {offsets = [5, 0], sizes = [1, 8], strides = [1, 1]} : vector<8x8xf32> to vector<1x8xf32>
    %361 = vector.broadcast %352 : vector<8x1xf32> to vector<8x8xf32>
    %362 = vector.broadcast %360 : vector<1x8xf32> to vector<8x8xf32>
    %363 = arith.addf %361, %362 : vector<8x8xf32>
    %364 = arith.cmpf ogt, %363, %343 : vector<8x8xf32>
    %365 = arith.select %364, %363, %343 : vector<8x8xi1>, vector<8x8xf32>
    %c5_i32_34 = arith.constant 5 : i32
    %366 = vector.broadcast %c5_i32_34 : i32 to vector<8x8xi32>
    %367 = arith.select %364, %366, %345 : vector<8x8xi1>, vector<8x8xi32>
    %368 = vector.extract_strided_slice %29 {offsets = [5, 0], sizes = [1, 8], strides = [1, 1]} : vector<8x8xf32> to vector<1x8xf32>
    %369 = vector.broadcast %368 : vector<1x8xf32> to vector<8x8xf32>
    %370 = vector.broadcast %352 : vector<8x1xf32> to vector<8x8xf32>
    %371 = arith.mulf %369, %370 : vector<8x8xf32>
    %372 = arith.addf %350, %371 : vector<8x8xf32>
    %373 = vector.extract_strided_slice %2 {offsets = [6, 0, 0], sizes = [1, 8, 1], strides = [1, 1, 1]} : vector<8x8x1xf32> to vector<1x8x1xf32>
    %374 = vector.shape_cast %373 : vector<1x8x1xf32> to vector<8x1xf32>
    %375 = vector.extract_strided_slice %3 {offsets = [6, 0, 0], sizes = [1, 8, 1], strides = [1, 1, 1]} : vector<8x8x1xf32> to vector<1x8x1xf32>
    %376 = vector.shape_cast %375 : vector<1x8x1xf32> to vector<8x1xf32>
    %377 = vector.extract_strided_slice %238 {offsets = [6, 0], sizes = [1, 8], strides = [1, 1]} : vector<8x8xf32> to vector<1x8xf32>
    %378 = vector.broadcast %376 : vector<8x1xf32> to vector<8x8xf32>
    %379 = vector.broadcast %377 : vector<1x8xf32> to vector<8x8xf32>
    %380 = arith.mulf %378, %379 : vector<8x8xf32>
    %381 = arith.addf %359, %380 : vector<8x8xf32>
    %382 = vector.extract_strided_slice %213 {offsets = [6, 0], sizes = [1, 8], strides = [1, 1]} : vector<8x8xf32> to vector<1x8xf32>
    %383 = vector.broadcast %374 : vector<8x1xf32> to vector<8x8xf32>
    %384 = vector.broadcast %382 : vector<1x8xf32> to vector<8x8xf32>
    %385 = arith.addf %383, %384 : vector<8x8xf32>
    %386 = arith.cmpf ogt, %385, %365 : vector<8x8xf32>
    %387 = arith.select %386, %385, %365 : vector<8x8xi1>, vector<8x8xf32>
    %c6_i32_35 = arith.constant 6 : i32
    %388 = vector.broadcast %c6_i32_35 : i32 to vector<8x8xi32>
    %389 = arith.select %386, %388, %367 : vector<8x8xi1>, vector<8x8xi32>
    %390 = vector.extract_strided_slice %29 {offsets = [6, 0], sizes = [1, 8], strides = [1, 1]} : vector<8x8xf32> to vector<1x8xf32>
    %391 = vector.broadcast %390 : vector<1x8xf32> to vector<8x8xf32>
    %392 = vector.broadcast %374 : vector<8x1xf32> to vector<8x8xf32>
    %393 = arith.mulf %391, %392 : vector<8x8xf32>
    %394 = arith.addf %372, %393 : vector<8x8xf32>
    %395 = vector.extract_strided_slice %2 {offsets = [7, 0, 0], sizes = [1, 8, 1], strides = [1, 1, 1]} : vector<8x8x1xf32> to vector<1x8x1xf32>
    %396 = vector.shape_cast %395 : vector<1x8x1xf32> to vector<8x1xf32>
    %397 = vector.extract_strided_slice %3 {offsets = [7, 0, 0], sizes = [1, 8, 1], strides = [1, 1, 1]} : vector<8x8x1xf32> to vector<1x8x1xf32>
    %398 = vector.shape_cast %397 : vector<1x8x1xf32> to vector<8x1xf32>
    %399 = vector.extract_strided_slice %238 {offsets = [7, 0], sizes = [1, 8], strides = [1, 1]} : vector<8x8xf32> to vector<1x8xf32>
    %400 = vector.broadcast %398 : vector<8x1xf32> to vector<8x8xf32>
    %401 = vector.broadcast %399 : vector<1x8xf32> to vector<8x8xf32>
    %402 = arith.mulf %400, %401 : vector<8x8xf32>
    %403 = arith.addf %381, %402 : vector<8x8xf32>
    %404 = vector.extract_strided_slice %213 {offsets = [7, 0], sizes = [1, 8], strides = [1, 1]} : vector<8x8xf32> to vector<1x8xf32>
    %405 = vector.broadcast %396 : vector<8x1xf32> to vector<8x8xf32>
    %406 = vector.broadcast %404 : vector<1x8xf32> to vector<8x8xf32>
    %407 = arith.addf %405, %406 : vector<8x8xf32>
    %408 = arith.cmpf ogt, %407, %387 : vector<8x8xf32>
    %409 = arith.select %408, %407, %387 : vector<8x8xi1>, vector<8x8xf32>
    %c7_i32_36 = arith.constant 7 : i32
    %410 = vector.broadcast %c7_i32_36 : i32 to vector<8x8xi32>
    %411 = arith.select %408, %410, %389 : vector<8x8xi1>, vector<8x8xi32>
    %412 = vector.extract_strided_slice %29 {offsets = [7, 0], sizes = [1, 8], strides = [1, 1]} : vector<8x8xf32> to vector<1x8xf32>
    %413 = vector.broadcast %412 : vector<1x8xf32> to vector<8x8xf32>
    %414 = vector.broadcast %396 : vector<8x1xf32> to vector<8x8xf32>
    %415 = arith.mulf %413, %414 : vector<8x8xf32>
    %416 = arith.addf %394, %415 : vector<8x8xf32>
    %417 = vector.broadcast %235 : vector<1x8xf32> to vector<8x8xf32>
    %418 = arith.addf %230, %417 : vector<8x8xf32>
    %419 = math.log %403 : vector<8x8xf32>
    %420 = arith.addf %418, %419 : vector<8x8xf32>
    %421 = vector.shape_cast %233 : vector<1x8xi1> to vector<1x8xi1>
    %422 = vector.broadcast %421 : vector<1x8xi1> to vector<8x8xi1>
    %423 = arith.select %422, %420, %209 : vector<8x8xi1>, vector<8x8xf32>
    %424 = arith.addf %230, %409 : vector<8x8xf32>
    %425 = vector.shape_cast %233 : vector<1x8xi1> to vector<1x8xi1>
    %426 = vector.broadcast %425 : vector<1x8xi1> to vector<8x8xi1>
    %427 = arith.select %426, %424, %213 : vector<8x8xi1>, vector<8x8xf32>
    %428 = vector.shape_cast %233 : vector<1x8xi1> to vector<1x8xi1>
    %429 = vector.broadcast %428 : vector<1x8xi1> to vector<8x8xi1>
    %430 = arith.select %429, %411, %4 : vector<8x8xi1>, vector<8x8xi32>
    %c2_37 = arith.constant 2 : index
    %c0_38 = arith.constant 0 : index
    %c0_39 = arith.constant 0 : index
    %431 = vector.load %arg9[%c2_37, %c0_38, %c0_39] : memref<10x8x8xi32, #tpu.memory_space<vmem>>, vector<1x8x8xi32>
    %432 = vector.shape_cast %431 : vector<1x8x8xi32> to vector<8x8xi32>
    %433 = vector.shape_cast %430 : vector<8x8xi32> to vector<1x8x8xi32>
    tpu.vector_store %arg9[%c2_37, %c0_38, %c0_39], %433 {strides = array<i32>} : memref<10x8x8xi32, #tpu.memory_space<vmem>>, vector<1x8x8xi32>,
    %434 = arith.sitofp %231 : vector<1x8xi32> to vector<1x8xf32>
    %435 = vector.broadcast %434 : vector<1x8xf32> to vector<8x8xf32>
    %436 = arith.mulf %435, %243 : vector<8x8xf32>
    %437 = arith.addf %416, %230 : vector<8x8xf32>
    %438 = arith.mulf %436, %437 : vector<8x8xf32>
    %439 = arith.addf %225, %438 : vector<8x8xf32>
    %440 = vector.shape_cast %233 : vector<1x8xi1> to vector<1x8xi1>
    %441 = vector.broadcast %440 : vector<1x8xi1> to vector<8x8xi1>
    %442 = arith.select %441, %243, %228 : vector<8x8xi1>, vector<8x8xf32>
    %c3 = arith.constant 3 : index
    %c0_40 = arith.constant 0 : index
    %c0_41 = arith.constant 0 : index
    %443 = vector.load %arg1[%c3, %c0_40, %c0_41] : memref<10x8x8xf32, #tpu.memory_space<vmem>>, vector<1x8x8xf32>
    %444 = vector.shape_cast %443 : vector<1x8x8xf32> to vector<8x8xf32>
    %c3_42 = arith.constant 3 : index
    %c0_43 = arith.constant 0 : index
    %445 = vector.load %arg2[%c3_42, %c0_43] : memref<10x8xi32, #tpu.memory_space<vmem>>, vector<1x8xi32>
    %c1_i32_44 = arith.constant 1 : i32
    %446 = vector.broadcast %c1_i32_44 : i32 to vector<1x8xi32>
    %447 = arith.cmpi eq, %445, %446 : vector<1x8xi32>
    %cst_45 = arith.constant dense<0xFF800000> : vector<8xf32>
    %448 = vector.multi_reduction <maximumf>, %423, %cst_45 [0] : vector<8x8xf32> to vector<8xf32>
    %449 = vector.shape_cast %448 : vector<8xf32> to vector<1x8xf32>
    %450 = vector.broadcast %449 : vector<1x8xf32> to vector<8x8xf32>
    %451 = arith.subf %423, %450 : vector<8x8xf32>
    %452 = math.exp %451 : vector<8x8xf32>
    %c3_46 = arith.constant 3 : index
    %c0_47 = arith.constant 0 : index
    %453 = vector.load %arg3[%c3_46, %c0_47] : memref<10x8xi32, #tpu.memory_space<vmem>>, vector<1x8xi32>
    %454 = vector.broadcast %453 : vector<1x8xi32> to vector<8x8xi32>
    %455 = arith.cmpi eq, %4, %454 : vector<8x8xi32>
    %456 = arith.extui %455 : vector<8x8xi1> to vector<8x8xi32>
    %457 = arith.sitofp %456 : vector<8x8xi32> to vector<8x8xf32>
    %458 = vector.extract_strided_slice %3 {offsets = [0, 0, 0], sizes = [1, 8, 1], strides = [1, 1, 1]} : vector<8x8x1xf32> to vector<1x8x1xf32>
    %459 = vector.shape_cast %458 : vector<1x8x1xf32> to vector<8x1xf32>
    %460 = vector.extract_strided_slice %452 {offsets = [0, 0], sizes = [1, 8], strides = [1, 1]} : vector<8x8xf32> to vector<1x8xf32>
    %461 = vector.broadcast %459 : vector<8x1xf32> to vector<8x8xf32>
    %462 = vector.broadcast %460 : vector<1x8xf32> to vector<8x8xf32>
    %463 = arith.mulf %461, %462 : vector<8x8xf32>
    %464 = vector.extract_strided_slice %2 {offsets = [0, 0, 0], sizes = [1, 8, 1], strides = [1, 1, 1]} : vector<8x8x1xf32> to vector<1x8x1xf32>
    %465 = vector.shape_cast %464 : vector<1x8x1xf32> to vector<8x1xf32>
    %466 = vector.extract_strided_slice %427 {offsets = [0, 0], sizes = [1, 8], strides = [1, 1]} : vector<8x8xf32> to vector<1x8xf32>
    %467 = vector.broadcast %465 : vector<8x1xf32> to vector<8x8xf32>
    %468 = vector.broadcast %466 : vector<1x8xf32> to vector<8x8xf32>
    %469 = arith.addf %467, %468 : vector<8x8xf32>
    %c0_i32_48 = arith.constant 0 : i32
    %470 = vector.broadcast %c0_i32_48 : i32 to vector<8x8xi32>
    %471 = vector.extract_strided_slice %243 {offsets = [0, 0], sizes = [1, 8], strides = [1, 1]} : vector<8x8xf32> to vector<1x8xf32>
    %472 = vector.extract_strided_slice %2 {offsets = [0, 0, 0], sizes = [1, 8, 1], strides = [1, 1, 1]} : vector<8x8x1xf32> to vector<1x8x1xf32>
    %473 = vector.shape_cast %472 : vector<1x8x1xf32> to vector<8x1xf32>
    %474 = vector.broadcast %471 : vector<1x8xf32> to vector<8x8xf32>
    %475 = vector.broadcast %473 : vector<8x1xf32> to vector<8x8xf32>
    %476 = arith.mulf %474, %475 : vector<8x8xf32>
    %477 = vector.extract_strided_slice %2 {offsets = [1, 0, 0], sizes = [1, 8, 1], strides = [1, 1, 1]} : vector<8x8x1xf32> to vector<1x8x1xf32>
    %478 = vector.shape_cast %477 : vector<1x8x1xf32> to vector<8x1xf32>
    %479 = vector.extract_strided_slice %3 {offsets = [1, 0, 0], sizes = [1, 8, 1], strides = [1, 1, 1]} : vector<8x8x1xf32> to vector<1x8x1xf32>
    %480 = vector.shape_cast %479 : vector<1x8x1xf32> to vector<8x1xf32>
    %481 = vector.extract_strided_slice %452 {offsets = [1, 0], sizes = [1, 8], strides = [1, 1]} : vector<8x8xf32> to vector<1x8xf32>
    %482 = vector.broadcast %480 : vector<8x1xf32> to vector<8x8xf32>
    %483 = vector.broadcast %481 : vector<1x8xf32> to vector<8x8xf32>
    %484 = arith.mulf %482, %483 : vector<8x8xf32>
    %485 = arith.addf %463, %484 : vector<8x8xf32>
    %486 = vector.extract_strided_slice %427 {offsets = [1, 0], sizes = [1, 8], strides = [1, 1]} : vector<8x8xf32> to vector<1x8xf32>
    %487 = vector.broadcast %478 : vector<8x1xf32> to vector<8x8xf32>
    %488 = vector.broadcast %486 : vector<1x8xf32> to vector<8x8xf32>
    %489 = arith.addf %487, %488 : vector<8x8xf32>
    %490 = arith.cmpf ogt, %489, %469 : vector<8x8xf32>
    %491 = arith.select %490, %489, %469 : vector<8x8xi1>, vector<8x8xf32>
    %c1_i32_49 = arith.constant 1 : i32
    %492 = vector.broadcast %c1_i32_49 : i32 to vector<8x8xi32>
    %493 = arith.select %490, %492, %470 : vector<8x8xi1>, vector<8x8xi32>
    %494 = vector.extract_strided_slice %243 {offsets = [1, 0], sizes = [1, 8], strides = [1, 1]} : vector<8x8xf32> to vector<1x8xf32>
    %495 = vector.broadcast %494 : vector<1x8xf32> to vector<8x8xf32>
    %496 = vector.broadcast %478 : vector<8x1xf32> to vector<8x8xf32>
    %497 = arith.mulf %495, %496 : vector<8x8xf32>
    %498 = arith.addf %476, %497 : vector<8x8xf32>
    %499 = vector.extract_strided_slice %2 {offsets = [2, 0, 0], sizes = [1, 8, 1], strides = [1, 1, 1]} : vector<8x8x1xf32> to vector<1x8x1xf32>
    %500 = vector.shape_cast %499 : vector<1x8x1xf32> to vector<8x1xf32>
    %501 = vector.extract_strided_slice %3 {offsets = [2, 0, 0], sizes = [1, 8, 1], strides = [1, 1, 1]} : vector<8x8x1xf32> to vector<1x8x1xf32>
    %502 = vector.shape_cast %501 : vector<1x8x1xf32> to vector<8x1xf32>
    %503 = vector.extract_strided_slice %452 {offsets = [2, 0], sizes = [1, 8], strides = [1, 1]} : vector<8x8xf32> to vector<1x8xf32>
    %504 = vector.broadcast %502 : vector<8x1xf32> to vector<8x8xf32>
    %505 = vector.broadcast %503 : vector<1x8xf32> to vector<8x8xf32>
    %506 = arith.mulf %504, %505 : vector<8x8xf32>
    %507 = arith.addf %485, %506 : vector<8x8xf32>
    %508 = vector.extract_strided_slice %427 {offsets = [2, 0], sizes = [1, 8], strides = [1, 1]} : vector<8x8xf32> to vector<1x8xf32>
    %509 = vector.broadcast %500 : vector<8x1xf32> to vector<8x8xf32>
    %510 = vector.broadcast %508 : vector<1x8xf32> to vector<8x8xf32>
    %511 = arith.addf %509, %510 : vector<8x8xf32>
    %512 = arith.cmpf ogt, %511, %491 : vector<8x8xf32>
    %513 = arith.select %512, %511, %491 : vector<8x8xi1>, vector<8x8xf32>
    %c2_i32_50 = arith.constant 2 : i32
    %514 = vector.broadcast %c2_i32_50 : i32 to vector<8x8xi32>
    %515 = arith.select %512, %514, %493 : vector<8x8xi1>, vector<8x8xi32>
    %516 = vector.extract_strided_slice %243 {offsets = [2, 0], sizes = [1, 8], strides = [1, 1]} : vector<8x8xf32> to vector<1x8xf32>
    %517 = vector.broadcast %516 : vector<1x8xf32> to vector<8x8xf32>
    %518 = vector.broadcast %500 : vector<8x1xf32> to vector<8x8xf32>
    %519 = arith.mulf %517, %518 : vector<8x8xf32>
    %520 = arith.addf %498, %519 : vector<8x8xf32>
    %521 = vector.extract_strided_slice %2 {offsets = [3, 0, 0], sizes = [1, 8, 1], strides = [1, 1, 1]} : vector<8x8x1xf32> to vector<1x8x1xf32>
    %522 = vector.shape_cast %521 : vector<1x8x1xf32> to vector<8x1xf32>
    %523 = vector.extract_strided_slice %3 {offsets = [3, 0, 0], sizes = [1, 8, 1], strides = [1, 1, 1]} : vector<8x8x1xf32> to vector<1x8x1xf32>
    %524 = vector.shape_cast %523 : vector<1x8x1xf32> to vector<8x1xf32>
    %525 = vector.extract_strided_slice %452 {offsets = [3, 0], sizes = [1, 8], strides = [1, 1]} : vector<8x8xf32> to vector<1x8xf32>
    %526 = vector.broadcast %524 : vector<8x1xf32> to vector<8x8xf32>
    %527 = vector.broadcast %525 : vector<1x8xf32> to vector<8x8xf32>
    %528 = arith.mulf %526, %527 : vector<8x8xf32>
    %529 = arith.addf %507, %528 : vector<8x8xf32>
    %530 = vector.extract_strided_slice %427 {offsets = [3, 0], sizes = [1, 8], strides = [1, 1]} : vector<8x8xf32> to vector<1x8xf32>
    %531 = vector.broadcast %522 : vector<8x1xf32> to vector<8x8xf32>
    %532 = vector.broadcast %530 : vector<1x8xf32> to vector<8x8xf32>
    %533 = arith.addf %531, %532 : vector<8x8xf32>
    %534 = arith.cmpf ogt, %533, %513 : vector<8x8xf32>
    %535 = arith.select %534, %533, %513 : vector<8x8xi1>, vector<8x8xf32>
    %c3_i32_51 = arith.constant 3 : i32
    %536 = vector.broadcast %c3_i32_51 : i32 to vector<8x8xi32>
    %537 = arith.select %534, %536, %515 : vector<8x8xi1>, vector<8x8xi32>
    %538 = vector.extract_strided_slice %243 {offsets = [3, 0], sizes = [1, 8], strides = [1, 1]} : vector<8x8xf32> to vector<1x8xf32>
    %539 = vector.broadcast %538 : vector<1x8xf32> to vector<8x8xf32>
    %540 = vector.broadcast %522 : vector<8x1xf32> to vector<8x8xf32>
    %541 = arith.mulf %539, %540 : vector<8x8xf32>
    %542 = arith.addf %520, %541 : vector<8x8xf32>
    %543 = vector.extract_strided_slice %2 {offsets = [4, 0, 0], sizes = [1, 8, 1], strides = [1, 1, 1]} : vector<8x8x1xf32> to vector<1x8x1xf32>
    %544 = vector.shape_cast %543 : vector<1x8x1xf32> to vector<8x1xf32>
    %545 = vector.extract_strided_slice %3 {offsets = [4, 0, 0], sizes = [1, 8, 1], strides = [1, 1, 1]} : vector<8x8x1xf32> to vector<1x8x1xf32>
    %546 = vector.shape_cast %545 : vector<1x8x1xf32> to vector<8x1xf32>
    %547 = vector.extract_strided_slice %452 {offsets = [4, 0], sizes = [1, 8], strides = [1, 1]} : vector<8x8xf32> to vector<1x8xf32>
    %548 = vector.broadcast %546 : vector<8x1xf32> to vector<8x8xf32>
    %549 = vector.broadcast %547 : vector<1x8xf32> to vector<8x8xf32>
    %550 = arith.mulf %548, %549 : vector<8x8xf32>
    %551 = arith.addf %529, %550 : vector<8x8xf32>
    %552 = vector.extract_strided_slice %427 {offsets = [4, 0], sizes = [1, 8], strides = [1, 1]} : vector<8x8xf32> to vector<1x8xf32>
    %553 = vector.broadcast %544 : vector<8x1xf32> to vector<8x8xf32>
    %554 = vector.broadcast %552 : vector<1x8xf32> to vector<8x8xf32>
    %555 = arith.addf %553, %554 : vector<8x8xf32>
    %556 = arith.cmpf ogt, %555, %535 : vector<8x8xf32>
    %557 = arith.select %556, %555, %535 : vector<8x8xi1>, vector<8x8xf32>
    %c4_i32_52 = arith.constant 4 : i32
    %558 = vector.broadcast %c4_i32_52 : i32 to vector<8x8xi32>
    %559 = arith.select %556, %558, %537 : vector<8x8xi1>, vector<8x8xi32>
    %560 = vector.extract_strided_slice %243 {offsets = [4, 0], sizes = [1, 8], strides = [1, 1]} : vector<8x8xf32> to vector<1x8xf32>
    %561 = vector.broadcast %560 : vector<1x8xf32> to vector<8x8xf32>
    %562 = vector.broadcast %544 : vector<8x1xf32> to vector<8x8xf32>
    %563 = arith.mulf %561, %562 : vector<8x8xf32>
    %564 = arith.addf %542, %563 : vector<8x8xf32>
    %565 = vector.extract_strided_slice %2 {offsets = [5, 0, 0], sizes = [1, 8, 1], strides = [1, 1, 1]} : vector<8x8x1xf32> to vector<1x8x1xf32>
    %566 = vector.shape_cast %565 : vector<1x8x1xf32> to vector<8x1xf32>
    %567 = vector.extract_strided_slice %3 {offsets = [5, 0, 0], sizes = [1, 8, 1], strides = [1, 1, 1]} : vector<8x8x1xf32> to vector<1x8x1xf32>
    %568 = vector.shape_cast %567 : vector<1x8x1xf32> to vector<8x1xf32>
    %569 = vector.extract_strided_slice %452 {offsets = [5, 0], sizes = [1, 8], strides = [1, 1]} : vector<8x8xf32> to vector<1x8xf32>
    %570 = vector.broadcast %568 : vector<8x1xf32> to vector<8x8xf32>
    %571 = vector.broadcast %569 : vector<1x8xf32> to vector<8x8xf32>
    %572 = arith.mulf %570, %571 : vector<8x8xf32>
    %573 = arith.addf %551, %572 : vector<8x8xf32>
    %574 = vector.extract_strided_slice %427 {offsets = [5, 0], sizes = [1, 8], strides = [1, 1]} : vector<8x8xf32> to vector<1x8xf32>
    %575 = vector.broadcast %566 : vector<8x1xf32> to vector<8x8xf32>
    %576 = vector.broadcast %574 : vector<1x8xf32> to vector<8x8xf32>
    %577 = arith.addf %575, %576 : vector<8x8xf32>
    %578 = arith.cmpf ogt, %577, %557 : vector<8x8xf32>
    %579 = arith.select %578, %577, %557 : vector<8x8xi1>, vector<8x8xf32>
    %c5_i32_53 = arith.constant 5 : i32
    %580 = vector.broadcast %c5_i32_53 : i32 to vector<8x8xi32>
    %581 = arith.select %578, %580, %559 : vector<8x8xi1>, vector<8x8xi32>
    %582 = vector.extract_strided_slice %243 {offsets = [5, 0], sizes = [1, 8], strides = [1, 1]} : vector<8x8xf32> to vector<1x8xf32>
    %583 = vector.broadcast %582 : vector<1x8xf32> to vector<8x8xf32>
    %584 = vector.broadcast %566 : vector<8x1xf32> to vector<8x8xf32>
    %585 = arith.mulf %583, %584 : vector<8x8xf32>
    %586 = arith.addf %564, %585 : vector<8x8xf32>
    %587 = vector.extract_strided_slice %2 {offsets = [6, 0, 0], sizes = [1, 8, 1], strides = [1, 1, 1]} : vector<8x8x1xf32> to vector<1x8x1xf32>
    %588 = vector.shape_cast %587 : vector<1x8x1xf32> to vector<8x1xf32>
    %589 = vector.extract_strided_slice %3 {offsets = [6, 0, 0], sizes = [1, 8, 1], strides = [1, 1, 1]} : vector<8x8x1xf32> to vector<1x8x1xf32>
    %590 = vector.shape_cast %589 : vector<1x8x1xf32> to vector<8x1xf32>
    %591 = vector.extract_strided_slice %452 {offsets = [6, 0], sizes = [1, 8], strides = [1, 1]} : vector<8x8xf32> to vector<1x8xf32>
    %592 = vector.broadcast %590 : vector<8x1xf32> to vector<8x8xf32>
    %593 = vector.broadcast %591 : vector<1x8xf32> to vector<8x8xf32>
    %594 = arith.mulf %592, %593 : vector<8x8xf32>
    %595 = arith.addf %573, %594 : vector<8x8xf32>
    %596 = vector.extract_strided_slice %427 {offsets = [6, 0], sizes = [1, 8], strides = [1, 1]} : vector<8x8xf32> to vector<1x8xf32>
    %597 = vector.broadcast %588 : vector<8x1xf32> to vector<8x8xf32>
    %598 = vector.broadcast %596 : vector<1x8xf32> to vector<8x8xf32>
    %599 = arith.addf %597, %598 : vector<8x8xf32>
    %600 = arith.cmpf ogt, %599, %579 : vector<8x8xf32>
    %601 = arith.select %600, %599, %579 : vector<8x8xi1>, vector<8x8xf32>
    %c6_i32_54 = arith.constant 6 : i32
    %602 = vector.broadcast %c6_i32_54 : i32 to vector<8x8xi32>
    %603 = arith.select %600, %602, %581 : vector<8x8xi1>, vector<8x8xi32>
    %604 = vector.extract_strided_slice %243 {offsets = [6, 0], sizes = [1, 8], strides = [1, 1]} : vector<8x8xf32> to vector<1x8xf32>
    %605 = vector.broadcast %604 : vector<1x8xf32> to vector<8x8xf32>
    %606 = vector.broadcast %588 : vector<8x1xf32> to vector<8x8xf32>
    %607 = arith.mulf %605, %606 : vector<8x8xf32>
    %608 = arith.addf %586, %607 : vector<8x8xf32>
    %609 = vector.extract_strided_slice %2 {offsets = [7, 0, 0], sizes = [1, 8, 1], strides = [1, 1, 1]} : vector<8x8x1xf32> to vector<1x8x1xf32>
    %610 = vector.shape_cast %609 : vector<1x8x1xf32> to vector<8x1xf32>
    %611 = vector.extract_strided_slice %3 {offsets = [7, 0, 0], sizes = [1, 8, 1], strides = [1, 1, 1]} : vector<8x8x1xf32> to vector<1x8x1xf32>
    %612 = vector.shape_cast %611 : vector<1x8x1xf32> to vector<8x1xf32>
    %613 = vector.extract_strided_slice %452 {offsets = [7, 0], sizes = [1, 8], strides = [1, 1]} : vector<8x8xf32> to vector<1x8xf32>
    %614 = vector.broadcast %612 : vector<8x1xf32> to vector<8x8xf32>
    %615 = vector.broadcast %613 : vector<1x8xf32> to vector<8x8xf32>
    %616 = arith.mulf %614, %615 : vector<8x8xf32>
    %617 = arith.addf %595, %616 : vector<8x8xf32>
    %618 = vector.extract_strided_slice %427 {offsets = [7, 0], sizes = [1, 8], strides = [1, 1]} : vector<8x8xf32> to vector<1x8xf32>
    %619 = vector.broadcast %610 : vector<8x1xf32> to vector<8x8xf32>
    %620 = vector.broadcast %618 : vector<1x8xf32> to vector<8x8xf32>
    %621 = arith.addf %619, %620 : vector<8x8xf32>
    %622 = arith.cmpf ogt, %621, %601 : vector<8x8xf32>
    %623 = arith.select %622, %621, %601 : vector<8x8xi1>, vector<8x8xf32>
    %c7_i32_55 = arith.constant 7 : i32
    %624 = vector.broadcast %c7_i32_55 : i32 to vector<8x8xi32>
    %625 = arith.select %622, %624, %603 : vector<8x8xi1>, vector<8x8xi32>
    %626 = vector.extract_strided_slice %243 {offsets = [7, 0], sizes = [1, 8], strides = [1, 1]} : vector<8x8xf32> to vector<1x8xf32>
    %627 = vector.broadcast %626 : vector<1x8xf32> to vector<8x8xf32>
    %628 = vector.broadcast %610 : vector<8x1xf32> to vector<8x8xf32>
    %629 = arith.mulf %627, %628 : vector<8x8xf32>
    %630 = arith.addf %608, %629 : vector<8x8xf32>
    %631 = vector.broadcast %449 : vector<1x8xf32> to vector<8x8xf32>
    %632 = arith.addf %444, %631 : vector<8x8xf32>
    %633 = math.log %617 : vector<8x8xf32>
    %634 = arith.addf %632, %633 : vector<8x8xf32>
    %635 = vector.shape_cast %447 : vector<1x8xi1> to vector<1x8xi1>
    %636 = vector.broadcast %635 : vector<1x8xi1> to vector<8x8xi1>
    %637 = arith.select %636, %634, %423 : vector<8x8xi1>, vector<8x8xf32>
    %638 = arith.addf %444, %623 : vector<8x8xf32>
    %639 = vector.shape_cast %447 : vector<1x8xi1> to vector<1x8xi1>
    %640 = vector.broadcast %639 : vector<1x8xi1> to vector<8x8xi1>
    %641 = arith.select %640, %638, %427 : vector<8x8xi1>, vector<8x8xf32>
    %642 = vector.shape_cast %447 : vector<1x8xi1> to vector<1x8xi1>
    %643 = vector.broadcast %642 : vector<1x8xi1> to vector<8x8xi1>
    %644 = arith.select %643, %625, %4 : vector<8x8xi1>, vector<8x8xi32>
    %c3_56 = arith.constant 3 : index
    %c0_57 = arith.constant 0 : index
    %c0_58 = arith.constant 0 : index
    %645 = vector.load %arg9[%c3_56, %c0_57, %c0_58] : memref<10x8x8xi32, #tpu.memory_space<vmem>>, vector<1x8x8xi32>
    %646 = vector.shape_cast %645 : vector<1x8x8xi32> to vector<8x8xi32>
    %647 = vector.shape_cast %644 : vector<8x8xi32> to vector<1x8x8xi32>
    tpu.vector_store %arg9[%c3_56, %c0_57, %c0_58], %647 {strides = array<i32>} : memref<10x8x8xi32, #tpu.memory_space<vmem>>, vector<1x8x8xi32>,
    %648 = arith.sitofp %445 : vector<1x8xi32> to vector<1x8xf32>
    %649 = vector.broadcast %648 : vector<1x8xf32> to vector<8x8xf32>
    %650 = arith.mulf %649, %457 : vector<8x8xf32>
    %651 = arith.addf %630, %444 : vector<8x8xf32>
    %652 = arith.mulf %650, %651 : vector<8x8xf32>
    %653 = arith.addf %439, %652 : vector<8x8xf32>
    %654 = vector.shape_cast %447 : vector<1x8xi1> to vector<1x8xi1>
    %655 = vector.broadcast %654 : vector<1x8xi1> to vector<8x8xi1>
    %656 = arith.select %655, %457, %442 : vector<8x8xi1>, vector<8x8xf32>
    %c4 = arith.constant 4 : index
    %c0_59 = arith.constant 0 : index
    %c0_60 = arith.constant 0 : index
    %657 = vector.load %arg1[%c4, %c0_59, %c0_60] : memref<10x8x8xf32, #tpu.memory_space<vmem>>, vector<1x8x8xf32>
    %658 = vector.shape_cast %657 : vector<1x8x8xf32> to vector<8x8xf32>
    %c4_61 = arith.constant 4 : index
    %c0_62 = arith.constant 0 : index
    %659 = vector.load %arg2[%c4_61, %c0_62] : memref<10x8xi32, #tpu.memory_space<vmem>>, vector<1x8xi32>
    %c1_i32_63 = arith.constant 1 : i32
    %660 = vector.broadcast %c1_i32_63 : i32 to vector<1x8xi32>
    %661 = arith.cmpi eq, %659, %660 : vector<1x8xi32>
    %cst_64 = arith.constant dense<0xFF800000> : vector<8xf32>
    %662 = vector.multi_reduction <maximumf>, %637, %cst_64 [0] : vector<8x8xf32> to vector<8xf32>
    %663 = vector.shape_cast %662 : vector<8xf32> to vector<1x8xf32>
    %664 = vector.broadcast %663 : vector<1x8xf32> to vector<8x8xf32>
    %665 = arith.subf %637, %664 : vector<8x8xf32>
    %666 = math.exp %665 : vector<8x8xf32>
    %c4_65 = arith.constant 4 : index
    %c0_66 = arith.constant 0 : index
    %667 = vector.load %arg3[%c4_65, %c0_66] : memref<10x8xi32, #tpu.memory_space<vmem>>, vector<1x8xi32>
    %668 = vector.broadcast %667 : vector<1x8xi32> to vector<8x8xi32>
    %669 = arith.cmpi eq, %4, %668 : vector<8x8xi32>
    %670 = arith.extui %669 : vector<8x8xi1> to vector<8x8xi32>
    %671 = arith.sitofp %670 : vector<8x8xi32> to vector<8x8xf32>
    %672 = vector.extract_strided_slice %3 {offsets = [0, 0, 0], sizes = [1, 8, 1], strides = [1, 1, 1]} : vector<8x8x1xf32> to vector<1x8x1xf32>
    %673 = vector.shape_cast %672 : vector<1x8x1xf32> to vector<8x1xf32>
    %674 = vector.extract_strided_slice %666 {offsets = [0, 0], sizes = [1, 8], strides = [1, 1]} : vector<8x8xf32> to vector<1x8xf32>
    %675 = vector.broadcast %673 : vector<8x1xf32> to vector<8x8xf32>
    %676 = vector.broadcast %674 : vector<1x8xf32> to vector<8x8xf32>
    %677 = arith.mulf %675, %676 : vector<8x8xf32>
    %678 = vector.extract_strided_slice %2 {offsets = [0, 0, 0], sizes = [1, 8, 1], strides = [1, 1, 1]} : vector<8x8x1xf32> to vector<1x8x1xf32>
    %679 = vector.shape_cast %678 : vector<1x8x1xf32> to vector<8x1xf32>
    %680 = vector.extract_strided_slice %641 {offsets = [0, 0], sizes = [1, 8], strides = [1, 1]} : vector<8x8xf32> to vector<1x8xf32>
    %681 = vector.broadcast %679 : vector<8x1xf32> to vector<8x8xf32>
    %682 = vector.broadcast %680 : vector<1x8xf32> to vector<8x8xf32>
    %683 = arith.addf %681, %682 : vector<8x8xf32>
    %c0_i32_67 = arith.constant 0 : i32
    %684 = vector.broadcast %c0_i32_67 : i32 to vector<8x8xi32>
    %685 = vector.extract_strided_slice %457 {offsets = [0, 0], sizes = [1, 8], strides = [1, 1]} : vector<8x8xf32> to vector<1x8xf32>
    %686 = vector.extract_strided_slice %2 {offsets = [0, 0, 0], sizes = [1, 8, 1], strides = [1, 1, 1]} : vector<8x8x1xf32> to vector<1x8x1xf32>
    %687 = vector.shape_cast %686 : vector<1x8x1xf32> to vector<8x1xf32>
    %688 = vector.broadcast %685 : vector<1x8xf32> to vector<8x8xf32>
    %689 = vector.broadcast %687 : vector<8x1xf32> to vector<8x8xf32>
    %690 = arith.mulf %688, %689 : vector<8x8xf32>
    %691 = vector.extract_strided_slice %2 {offsets = [1, 0, 0], sizes = [1, 8, 1], strides = [1, 1, 1]} : vector<8x8x1xf32> to vector<1x8x1xf32>
    %692 = vector.shape_cast %691 : vector<1x8x1xf32> to vector<8x1xf32>
    %693 = vector.extract_strided_slice %3 {offsets = [1, 0, 0], sizes = [1, 8, 1], strides = [1, 1, 1]} : vector<8x8x1xf32> to vector<1x8x1xf32>
    %694 = vector.shape_cast %693 : vector<1x8x1xf32> to vector<8x1xf32>
    %695 = vector.extract_strided_slice %666 {offsets = [1, 0], sizes = [1, 8], strides = [1, 1]} : vector<8x8xf32> to vector<1x8xf32>
    %696 = vector.broadcast %694 : vector<8x1xf32> to vector<8x8xf32>
    %697 = vector.broadcast %695 : vector<1x8xf32> to vector<8x8xf32>
    %698 = arith.mulf %696, %697 : vector<8x8xf32>
    %699 = arith.addf %677, %698 : vector<8x8xf32>
    %700 = vector.extract_strided_slice %641 {offsets = [1, 0], sizes = [1, 8], strides = [1, 1]} : vector<8x8xf32> to vector<1x8xf32>
    %701 = vector.broadcast %692 : vector<8x1xf32> to vector<8x8xf32>
    %702 = vector.broadcast %700 : vector<1x8xf32> to vector<8x8xf32>
    %703 = arith.addf %701, %702 : vector<8x8xf32>
    %704 = arith.cmpf ogt, %703, %683 : vector<8x8xf32>
    %705 = arith.select %704, %703, %683 : vector<8x8xi1>, vector<8x8xf32>
    %c1_i32_68 = arith.constant 1 : i32
    %706 = vector.broadcast %c1_i32_68 : i32 to vector<8x8xi32>
    %707 = arith.select %704, %706, %684 : vector<8x8xi1>, vector<8x8xi32>
    %708 = vector.extract_strided_slice %457 {offsets = [1, 0], sizes = [1, 8], strides = [1, 1]} : vector<8x8xf32> to vector<1x8xf32>
    %709 = vector.broadcast %708 : vector<1x8xf32> to vector<8x8xf32>
    %710 = vector.broadcast %692 : vector<8x1xf32> to vector<8x8xf32>
    %711 = arith.mulf %709, %710 : vector<8x8xf32>
    %712 = arith.addf %690, %711 : vector<8x8xf32>
    %713 = vector.extract_strided_slice %2 {offsets = [2, 0, 0], sizes = [1, 8, 1], strides = [1, 1, 1]} : vector<8x8x1xf32> to vector<1x8x1xf32>
    %714 = vector.shape_cast %713 : vector<1x8x1xf32> to vector<8x1xf32>
    %715 = vector.extract_strided_slice %3 {offsets = [2, 0, 0], sizes = [1, 8, 1], strides = [1, 1, 1]} : vector<8x8x1xf32> to vector<1x8x1xf32>
    %716 = vector.shape_cast %715 : vector<1x8x1xf32> to vector<8x1xf32>
    %717 = vector.extract_strided_slice %666 {offsets = [2, 0], sizes = [1, 8], strides = [1, 1]} : vector<8x8xf32> to vector<1x8xf32>
    %718 = vector.broadcast %716 : vector<8x1xf32> to vector<8x8xf32>
    %719 = vector.broadcast %717 : vector<1x8xf32> to vector<8x8xf32>
    %720 = arith.mulf %718, %719 : vector<8x8xf32>
    %721 = arith.addf %699, %720 : vector<8x8xf32>
    %722 = vector.extract_strided_slice %641 {offsets = [2, 0], sizes = [1, 8], strides = [1, 1]} : vector<8x8xf32> to vector<1x8xf32>
    %723 = vector.broadcast %714 : vector<8x1xf32> to vector<8x8xf32>
    %724 = vector.broadcast %722 : vector<1x8xf32> to vector<8x8xf32>
    %725 = arith.addf %723, %724 : vector<8x8xf32>
    %726 = arith.cmpf ogt, %725, %705 : vector<8x8xf32>
    %727 = arith.select %726, %725, %705 : vector<8x8xi1>, vector<8x8xf32>
    %c2_i32_69 = arith.constant 2 : i32
    %728 = vector.broadcast %c2_i32_69 : i32 to vector<8x8xi32>
    %729 = arith.select %726, %728, %707 : vector<8x8xi1>, vector<8x8xi32>
    %730 = vector.extract_strided_slice %457 {offsets = [2, 0], sizes = [1, 8], strides = [1, 1]} : vector<8x8xf32> to vector<1x8xf32>
    %731 = vector.broadcast %730 : vector<1x8xf32> to vector<8x8xf32>
    %732 = vector.broadcast %714 : vector<8x1xf32> to vector<8x8xf32>
    %733 = arith.mulf %731, %732 : vector<8x8xf32>
    %734 = arith.addf %712, %733 : vector<8x8xf32>
    %735 = vector.extract_strided_slice %2 {offsets = [3, 0, 0], sizes = [1, 8, 1], strides = [1, 1, 1]} : vector<8x8x1xf32> to vector<1x8x1xf32>
    %736 = vector.shape_cast %735 : vector<1x8x1xf32> to vector<8x1xf32>
    %737 = vector.extract_strided_slice %3 {offsets = [3, 0, 0], sizes = [1, 8, 1], strides = [1, 1, 1]} : vector<8x8x1xf32> to vector<1x8x1xf32>
    %738 = vector.shape_cast %737 : vector<1x8x1xf32> to vector<8x1xf32>
    %739 = vector.extract_strided_slice %666 {offsets = [3, 0], sizes = [1, 8], strides = [1, 1]} : vector<8x8xf32> to vector<1x8xf32>
    %740 = vector.broadcast %738 : vector<8x1xf32> to vector<8x8xf32>
    %741 = vector.broadcast %739 : vector<1x8xf32> to vector<8x8xf32>
    %742 = arith.mulf %740, %741 : vector<8x8xf32>
    %743 = arith.addf %721, %742 : vector<8x8xf32>
    %744 = vector.extract_strided_slice %641 {offsets = [3, 0], sizes = [1, 8], strides = [1, 1]} : vector<8x8xf32> to vector<1x8xf32>
    %745 = vector.broadcast %736 : vector<8x1xf32> to vector<8x8xf32>
    %746 = vector.broadcast %744 : vector<1x8xf32> to vector<8x8xf32>
    %747 = arith.addf %745, %746 : vector<8x8xf32>
    %748 = arith.cmpf ogt, %747, %727 : vector<8x8xf32>
    %749 = arith.select %748, %747, %727 : vector<8x8xi1>, vector<8x8xf32>
    %c3_i32_70 = arith.constant 3 : i32
    %750 = vector.broadcast %c3_i32_70 : i32 to vector<8x8xi32>
    %751 = arith.select %748, %750, %729 : vector<8x8xi1>, vector<8x8xi32>
    %752 = vector.extract_strided_slice %457 {offsets = [3, 0], sizes = [1, 8], strides = [1, 1]} : vector<8x8xf32> to vector<1x8xf32>
    %753 = vector.broadcast %752 : vector<1x8xf32> to vector<8x8xf32>
    %754 = vector.broadcast %736 : vector<8x1xf32> to vector<8x8xf32>
    %755 = arith.mulf %753, %754 : vector<8x8xf32>
    %756 = arith.addf %734, %755 : vector<8x8xf32>
    %757 = vector.extract_strided_slice %2 {offsets = [4, 0, 0], sizes = [1, 8, 1], strides = [1, 1, 1]} : vector<8x8x1xf32> to vector<1x8x1xf32>
    %758 = vector.shape_cast %757 : vector<1x8x1xf32> to vector<8x1xf32>
    %759 = vector.extract_strided_slice %3 {offsets = [4, 0, 0], sizes = [1, 8, 1], strides = [1, 1, 1]} : vector<8x8x1xf32> to vector<1x8x1xf32>
    %760 = vector.shape_cast %759 : vector<1x8x1xf32> to vector<8x1xf32>
    %761 = vector.extract_strided_slice %666 {offsets = [4, 0], sizes = [1, 8], strides = [1, 1]} : vector<8x8xf32> to vector<1x8xf32>
    %762 = vector.broadcast %760 : vector<8x1xf32> to vector<8x8xf32>
    %763 = vector.broadcast %761 : vector<1x8xf32> to vector<8x8xf32>
    %764 = arith.mulf %762, %763 : vector<8x8xf32>
    %765 = arith.addf %743, %764 : vector<8x8xf32>
    %766 = vector.extract_strided_slice %641 {offsets = [4, 0], sizes = [1, 8], strides = [1, 1]} : vector<8x8xf32> to vector<1x8xf32>
    %767 = vector.broadcast %758 : vector<8x1xf32> to vector<8x8xf32>
    %768 = vector.broadcast %766 : vector<1x8xf32> to vector<8x8xf32>
    %769 = arith.addf %767, %768 : vector<8x8xf32>
    %770 = arith.cmpf ogt, %769, %749 : vector<8x8xf32>
    %771 = arith.select %770, %769, %749 : vector<8x8xi1>, vector<8x8xf32>
    %c4_i32_71 = arith.constant 4 : i32
    %772 = vector.broadcast %c4_i32_71 : i32 to vector<8x8xi32>
    %773 = arith.select %770, %772, %751 : vector<8x8xi1>, vector<8x8xi32>
    %774 = vector.extract_strided_slice %457 {offsets = [4, 0], sizes = [1, 8], strides = [1, 1]} : vector<8x8xf32> to vector<1x8xf32>
    %775 = vector.broadcast %774 : vector<1x8xf32> to vector<8x8xf32>
    %776 = vector.broadcast %758 : vector<8x1xf32> to vector<8x8xf32>
    %777 = arith.mulf %775, %776 : vector<8x8xf32>
    %778 = arith.addf %756, %777 : vector<8x8xf32>
    %779 = vector.extract_strided_slice %2 {offsets = [5, 0, 0], sizes = [1, 8, 1], strides = [1, 1, 1]} : vector<8x8x1xf32> to vector<1x8x1xf32>
    %780 = vector.shape_cast %779 : vector<1x8x1xf32> to vector<8x1xf32>
    %781 = vector.extract_strided_slice %3 {offsets = [5, 0, 0], sizes = [1, 8, 1], strides = [1, 1, 1]} : vector<8x8x1xf32> to vector<1x8x1xf32>
    %782 = vector.shape_cast %781 : vector<1x8x1xf32> to vector<8x1xf32>
    %783 = vector.extract_strided_slice %666 {offsets = [5, 0], sizes = [1, 8], strides = [1, 1]} : vector<8x8xf32> to vector<1x8xf32>
    %784 = vector.broadcast %782 : vector<8x1xf32> to vector<8x8xf32>
    %785 = vector.broadcast %783 : vector<1x8xf32> to vector<8x8xf32>
    %786 = arith.mulf %784, %785 : vector<8x8xf32>
    %787 = arith.addf %765, %786 : vector<8x8xf32>
    %788 = vector.extract_strided_slice %641 {offsets = [5, 0], sizes = [1, 8], strides = [1, 1]} : vector<8x8xf32> to vector<1x8xf32>
    %789 = vector.broadcast %780 : vector<8x1xf32> to vector<8x8xf32>
    %790 = vector.broadcast %788 : vector<1x8xf32> to vector<8x8xf32>
    %791 = arith.addf %789, %790 : vector<8x8xf32>
    %792 = arith.cmpf ogt, %791, %771 : vector<8x8xf32>
    %793 = arith.select %792, %791, %771 : vector<8x8xi1>, vector<8x8xf32>
    %c5_i32_72 = arith.constant 5 : i32
    %794 = vector.broadcast %c5_i32_72 : i32 to vector<8x8xi32>
    %795 = arith.select %792, %794, %773 : vector<8x8xi1>, vector<8x8xi32>
    %796 = vector.extract_strided_slice %457 {offsets = [5, 0], sizes = [1, 8], strides = [1, 1]} : vector<8x8xf32> to vector<1x8xf32>
    %797 = vector.broadcast %796 : vector<1x8xf32> to vector<8x8xf32>
    %798 = vector.broadcast %780 : vector<8x1xf32> to vector<8x8xf32>
    %799 = arith.mulf %797, %798 : vector<8x8xf32>
    %800 = arith.addf %778, %799 : vector<8x8xf32>
    %801 = vector.extract_strided_slice %2 {offsets = [6, 0, 0], sizes = [1, 8, 1], strides = [1, 1, 1]} : vector<8x8x1xf32> to vector<1x8x1xf32>
    %802 = vector.shape_cast %801 : vector<1x8x1xf32> to vector<8x1xf32>
    %803 = vector.extract_strided_slice %3 {offsets = [6, 0, 0], sizes = [1, 8, 1], strides = [1, 1, 1]} : vector<8x8x1xf32> to vector<1x8x1xf32>
    %804 = vector.shape_cast %803 : vector<1x8x1xf32> to vector<8x1xf32>
    %805 = vector.extract_strided_slice %666 {offsets = [6, 0], sizes = [1, 8], strides = [1, 1]} : vector<8x8xf32> to vector<1x8xf32>
    %806 = vector.broadcast %804 : vector<8x1xf32> to vector<8x8xf32>
    %807 = vector.broadcast %805 : vector<1x8xf32> to vector<8x8xf32>
    %808 = arith.mulf %806, %807 : vector<8x8xf32>
    %809 = arith.addf %787, %808 : vector<8x8xf32>
    %810 = vector.extract_strided_slice %641 {offsets = [6, 0], sizes = [1, 8], strides = [1, 1]} : vector<8x8xf32> to vector<1x8xf32>
    %811 = vector.broadcast %802 : vector<8x1xf32> to vector<8x8xf32>
    %812 = vector.broadcast %810 : vector<1x8xf32> to vector<8x8xf32>
    %813 = arith.addf %811, %812 : vector<8x8xf32>
    %814 = arith.cmpf ogt, %813, %793 : vector<8x8xf32>
    %815 = arith.select %814, %813, %793 : vector<8x8xi1>, vector<8x8xf32>
    %c6_i32_73 = arith.constant 6 : i32
    %816 = vector.broadcast %c6_i32_73 : i32 to vector<8x8xi32>
    %817 = arith.select %814, %816, %795 : vector<8x8xi1>, vector<8x8xi32>
    %818 = vector.extract_strided_slice %457 {offsets = [6, 0], sizes = [1, 8], strides = [1, 1]} : vector<8x8xf32> to vector<1x8xf32>
    %819 = vector.broadcast %818 : vector<1x8xf32> to vector<8x8xf32>
    %820 = vector.broadcast %802 : vector<8x1xf32> to vector<8x8xf32>
    %821 = arith.mulf %819, %820 : vector<8x8xf32>
    %822 = arith.addf %800, %821 : vector<8x8xf32>
    %823 = vector.extract_strided_slice %2 {offsets = [7, 0, 0], sizes = [1, 8, 1], strides = [1, 1, 1]} : vector<8x8x1xf32> to vector<1x8x1xf32>
    %824 = vector.shape_cast %823 : vector<1x8x1xf32> to vector<8x1xf32>
    %825 = vector.extract_strided_slice %3 {offsets = [7, 0, 0], sizes = [1, 8, 1], strides = [1, 1, 1]} : vector<8x8x1xf32> to vector<1x8x1xf32>
    %826 = vector.shape_cast %825 : vector<1x8x1xf32> to vector<8x1xf32>
    %827 = vector.extract_strided_slice %666 {offsets = [7, 0], sizes = [1, 8], strides = [1, 1]} : vector<8x8xf32> to vector<1x8xf32>
    %828 = vector.broadcast %826 : vector<8x1xf32> to vector<8x8xf32>
    %829 = vector.broadcast %827 : vector<1x8xf32> to vector<8x8xf32>
    %830 = arith.mulf %828, %829 : vector<8x8xf32>
    %831 = arith.addf %809, %830 : vector<8x8xf32>
    %832 = vector.extract_strided_slice %641 {offsets = [7, 0], sizes = [1, 8], strides = [1, 1]} : vector<8x8xf32> to vector<1x8xf32>
    %833 = vector.broadcast %824 : vector<8x1xf32> to vector<8x8xf32>
    %834 = vector.broadcast %832 : vector<1x8xf32> to vector<8x8xf32>
    %835 = arith.addf %833, %834 : vector<8x8xf32>
    %836 = arith.cmpf ogt, %835, %815 : vector<8x8xf32>
    %837 = arith.select %836, %835, %815 : vector<8x8xi1>, vector<8x8xf32>
    %c7_i32_74 = arith.constant 7 : i32
    %838 = vector.broadcast %c7_i32_74 : i32 to vector<8x8xi32>
    %839 = arith.select %836, %838, %817 : vector<8x8xi1>, vector<8x8xi32>
    %840 = vector.extract_strided_slice %457 {offsets = [7, 0], sizes = [1, 8], strides = [1, 1]} : vector<8x8xf32> to vector<1x8xf32>
    %841 = vector.broadcast %840 : vector<1x8xf32> to vector<8x8xf32>
    %842 = vector.broadcast %824 : vector<8x1xf32> to vector<8x8xf32>
    %843 = arith.mulf %841, %842 : vector<8x8xf32>
    %844 = arith.addf %822, %843 : vector<8x8xf32>
    %845 = vector.broadcast %663 : vector<1x8xf32> to vector<8x8xf32>
    %846 = arith.addf %658, %845 : vector<8x8xf32>
    %847 = math.log %831 : vector<8x8xf32>
    %848 = arith.addf %846, %847 : vector<8x8xf32>
    %849 = vector.shape_cast %661 : vector<1x8xi1> to vector<1x8xi1>
    %850 = vector.broadcast %849 : vector<1x8xi1> to vector<8x8xi1>
    %851 = arith.select %850, %848, %637 : vector<8x8xi1>, vector<8x8xf32>
    %852 = arith.addf %658, %837 : vector<8x8xf32>
    %853 = vector.shape_cast %661 : vector<1x8xi1> to vector<1x8xi1>
    %854 = vector.broadcast %853 : vector<1x8xi1> to vector<8x8xi1>
    %855 = arith.select %854, %852, %641 : vector<8x8xi1>, vector<8x8xf32>
    %856 = vector.shape_cast %661 : vector<1x8xi1> to vector<1x8xi1>
    %857 = vector.broadcast %856 : vector<1x8xi1> to vector<8x8xi1>
    %858 = arith.select %857, %839, %4 : vector<8x8xi1>, vector<8x8xi32>
    %c4_75 = arith.constant 4 : index
    %c0_76 = arith.constant 0 : index
    %c0_77 = arith.constant 0 : index
    %859 = vector.load %arg9[%c4_75, %c0_76, %c0_77] : memref<10x8x8xi32, #tpu.memory_space<vmem>>, vector<1x8x8xi32>
    %860 = vector.shape_cast %859 : vector<1x8x8xi32> to vector<8x8xi32>
    %861 = vector.shape_cast %858 : vector<8x8xi32> to vector<1x8x8xi32>
    tpu.vector_store %arg9[%c4_75, %c0_76, %c0_77], %861 {strides = array<i32>} : memref<10x8x8xi32, #tpu.memory_space<vmem>>, vector<1x8x8xi32>,
    %862 = arith.sitofp %659 : vector<1x8xi32> to vector<1x8xf32>
    %863 = vector.broadcast %862 : vector<1x8xf32> to vector<8x8xf32>
    %864 = arith.mulf %863, %671 : vector<8x8xf32>
    %865 = arith.addf %844, %658 : vector<8x8xf32>
    %866 = arith.mulf %864, %865 : vector<8x8xf32>
    %867 = arith.addf %653, %866 : vector<8x8xf32>
    %868 = vector.shape_cast %661 : vector<1x8xi1> to vector<1x8xi1>
    %869 = vector.broadcast %868 : vector<1x8xi1> to vector<8x8xi1>
    %870 = arith.select %869, %671, %656 : vector<8x8xi1>, vector<8x8xf32>
    %c5 = arith.constant 5 : index
    %c0_78 = arith.constant 0 : index
    %c0_79 = arith.constant 0 : index
    %871 = vector.load %arg1[%c5, %c0_78, %c0_79] : memref<10x8x8xf32, #tpu.memory_space<vmem>>, vector<1x8x8xf32>
    %872 = vector.shape_cast %871 : vector<1x8x8xf32> to vector<8x8xf32>
    %c5_80 = arith.constant 5 : index
    %c0_81 = arith.constant 0 : index
    %873 = vector.load %arg2[%c5_80, %c0_81] : memref<10x8xi32, #tpu.memory_space<vmem>>, vector<1x8xi32>
    %c1_i32_82 = arith.constant 1 : i32
    %874 = vector.broadcast %c1_i32_82 : i32 to vector<1x8xi32>
    %875 = arith.cmpi eq, %873, %874 : vector<1x8xi32>
    %cst_83 = arith.constant dense<0xFF800000> : vector<8xf32>
    %876 = vector.multi_reduction <maximumf>, %851, %cst_83 [0] : vector<8x8xf32> to vector<8xf32>
    %877 = vector.shape_cast %876 : vector<8xf32> to vector<1x8xf32>
    %878 = vector.broadcast %877 : vector<1x8xf32> to vector<8x8xf32>
    %879 = arith.subf %851, %878 : vector<8x8xf32>
    %880 = math.exp %879 : vector<8x8xf32>
    %c5_84 = arith.constant 5 : index
    %c0_85 = arith.constant 0 : index
    %881 = vector.load %arg3[%c5_84, %c0_85] : memref<10x8xi32, #tpu.memory_space<vmem>>, vector<1x8xi32>
    %882 = vector.broadcast %881 : vector<1x8xi32> to vector<8x8xi32>
    %883 = arith.cmpi eq, %4, %882 : vector<8x8xi32>
    %884 = arith.extui %883 : vector<8x8xi1> to vector<8x8xi32>
    %885 = arith.sitofp %884 : vector<8x8xi32> to vector<8x8xf32>
    %886 = vector.extract_strided_slice %3 {offsets = [0, 0, 0], sizes = [1, 8, 1], strides = [1, 1, 1]} : vector<8x8x1xf32> to vector<1x8x1xf32>
    %887 = vector.shape_cast %886 : vector<1x8x1xf32> to vector<8x1xf32>
    %888 = vector.extract_strided_slice %880 {offsets = [0, 0], sizes = [1, 8], strides = [1, 1]} : vector<8x8xf32> to vector<1x8xf32>
    %889 = vector.broadcast %887 : vector<8x1xf32> to vector<8x8xf32>
    %890 = vector.broadcast %888 : vector<1x8xf32> to vector<8x8xf32>
    %891 = arith.mulf %889, %890 : vector<8x8xf32>
    %892 = vector.extract_strided_slice %2 {offsets = [0, 0, 0], sizes = [1, 8, 1], strides = [1, 1, 1]} : vector<8x8x1xf32> to vector<1x8x1xf32>
    %893 = vector.shape_cast %892 : vector<1x8x1xf32> to vector<8x1xf32>
    %894 = vector.extract_strided_slice %855 {offsets = [0, 0], sizes = [1, 8], strides = [1, 1]} : vector<8x8xf32> to vector<1x8xf32>
    %895 = vector.broadcast %893 : vector<8x1xf32> to vector<8x8xf32>
    %896 = vector.broadcast %894 : vector<1x8xf32> to vector<8x8xf32>
    %897 = arith.addf %895, %896 : vector<8x8xf32>
    %c0_i32_86 = arith.constant 0 : i32
    %898 = vector.broadcast %c0_i32_86 : i32 to vector<8x8xi32>
    %899 = vector.extract_strided_slice %671 {offsets = [0, 0], sizes = [1, 8], strides = [1, 1]} : vector<8x8xf32> to vector<1x8xf32>
    %900 = vector.extract_strided_slice %2 {offsets = [0, 0, 0], sizes = [1, 8, 1], strides = [1, 1, 1]} : vector<8x8x1xf32> to vector<1x8x1xf32>
    %901 = vector.shape_cast %900 : vector<1x8x1xf32> to vector<8x1xf32>
    %902 = vector.broadcast %899 : vector<1x8xf32> to vector<8x8xf32>
    %903 = vector.broadcast %901 : vector<8x1xf32> to vector<8x8xf32>
    %904 = arith.mulf %902, %903 : vector<8x8xf32>
    %905 = vector.extract_strided_slice %2 {offsets = [1, 0, 0], sizes = [1, 8, 1], strides = [1, 1, 1]} : vector<8x8x1xf32> to vector<1x8x1xf32>
    %906 = vector.shape_cast %905 : vector<1x8x1xf32> to vector<8x1xf32>
    %907 = vector.extract_strided_slice %3 {offsets = [1, 0, 0], sizes = [1, 8, 1], strides = [1, 1, 1]} : vector<8x8x1xf32> to vector<1x8x1xf32>
    %908 = vector.shape_cast %907 : vector<1x8x1xf32> to vector<8x1xf32>
    %909 = vector.extract_strided_slice %880 {offsets = [1, 0], sizes = [1, 8], strides = [1, 1]} : vector<8x8xf32> to vector<1x8xf32>
    %910 = vector.broadcast %908 : vector<8x1xf32> to vector<8x8xf32>
    %911 = vector.broadcast %909 : vector<1x8xf32> to vector<8x8xf32>
    %912 = arith.mulf %910, %911 : vector<8x8xf32>
    %913 = arith.addf %891, %912 : vector<8x8xf32>
    %914 = vector.extract_strided_slice %855 {offsets = [1, 0], sizes = [1, 8], strides = [1, 1]} : vector<8x8xf32> to vector<1x8xf32>
    %915 = vector.broadcast %906 : vector<8x1xf32> to vector<8x8xf32>
    %916 = vector.broadcast %914 : vector<1x8xf32> to vector<8x8xf32>
    %917 = arith.addf %915, %916 : vector<8x8xf32>
    %918 = arith.cmpf ogt, %917, %897 : vector<8x8xf32>
    %919 = arith.select %918, %917, %897 : vector<8x8xi1>, vector<8x8xf32>
    %c1_i32_87 = arith.constant 1 : i32
    %920 = vector.broadcast %c1_i32_87 : i32 to vector<8x8xi32>
    %921 = arith.select %918, %920, %898 : vector<8x8xi1>, vector<8x8xi32>
    %922 = vector.extract_strided_slice %671 {offsets = [1, 0], sizes = [1, 8], strides = [1, 1]} : vector<8x8xf32> to vector<1x8xf32>
    %923 = vector.broadcast %922 : vector<1x8xf32> to vector<8x8xf32>
    %924 = vector.broadcast %906 : vector<8x1xf32> to vector<8x8xf32>
    %925 = arith.mulf %923, %924 : vector<8x8xf32>
    %926 = arith.addf %904, %925 : vector<8x8xf32>
    %927 = vector.extract_strided_slice %2 {offsets = [2, 0, 0], sizes = [1, 8, 1], strides = [1, 1, 1]} : vector<8x8x1xf32> to vector<1x8x1xf32>
    %928 = vector.shape_cast %927 : vector<1x8x1xf32> to vector<8x1xf32>
    %929 = vector.extract_strided_slice %3 {offsets = [2, 0, 0], sizes = [1, 8, 1], strides = [1, 1, 1]} : vector<8x8x1xf32> to vector<1x8x1xf32>
    %930 = vector.shape_cast %929 : vector<1x8x1xf32> to vector<8x1xf32>
    %931 = vector.extract_strided_slice %880 {offsets = [2, 0], sizes = [1, 8], strides = [1, 1]} : vector<8x8xf32> to vector<1x8xf32>
    %932 = vector.broadcast %930 : vector<8x1xf32> to vector<8x8xf32>
    %933 = vector.broadcast %931 : vector<1x8xf32> to vector<8x8xf32>
    %934 = arith.mulf %932, %933 : vector<8x8xf32>
    %935 = arith.addf %913, %934 : vector<8x8xf32>
    %936 = vector.extract_strided_slice %855 {offsets = [2, 0], sizes = [1, 8], strides = [1, 1]} : vector<8x8xf32> to vector<1x8xf32>
    %937 = vector.broadcast %928 : vector<8x1xf32> to vector<8x8xf32>
    %938 = vector.broadcast %936 : vector<1x8xf32> to vector<8x8xf32>
    %939 = arith.addf %937, %938 : vector<8x8xf32>
    %940 = arith.cmpf ogt, %939, %919 : vector<8x8xf32>
    %941 = arith.select %940, %939, %919 : vector<8x8xi1>, vector<8x8xf32>
    %c2_i32_88 = arith.constant 2 : i32
    %942 = vector.broadcast %c2_i32_88 : i32 to vector<8x8xi32>
    %943 = arith.select %940, %942, %921 : vector<8x8xi1>, vector<8x8xi32>
    %944 = vector.extract_strided_slice %671 {offsets = [2, 0], sizes = [1, 8], strides = [1, 1]} : vector<8x8xf32> to vector<1x8xf32>
    %945 = vector.broadcast %944 : vector<1x8xf32> to vector<8x8xf32>
    %946 = vector.broadcast %928 : vector<8x1xf32> to vector<8x8xf32>
    %947 = arith.mulf %945, %946 : vector<8x8xf32>
    %948 = arith.addf %926, %947 : vector<8x8xf32>
    %949 = vector.extract_strided_slice %2 {offsets = [3, 0, 0], sizes = [1, 8, 1], strides = [1, 1, 1]} : vector<8x8x1xf32> to vector<1x8x1xf32>
    %950 = vector.shape_cast %949 : vector<1x8x1xf32> to vector<8x1xf32>
    %951 = vector.extract_strided_slice %3 {offsets = [3, 0, 0], sizes = [1, 8, 1], strides = [1, 1, 1]} : vector<8x8x1xf32> to vector<1x8x1xf32>
    %952 = vector.shape_cast %951 : vector<1x8x1xf32> to vector<8x1xf32>
    %953 = vector.extract_strided_slice %880 {offsets = [3, 0], sizes = [1, 8], strides = [1, 1]} : vector<8x8xf32> to vector<1x8xf32>
    %954 = vector.broadcast %952 : vector<8x1xf32> to vector<8x8xf32>
    %955 = vector.broadcast %953 : vector<1x8xf32> to vector<8x8xf32>
    %956 = arith.mulf %954, %955 : vector<8x8xf32>
    %957 = arith.addf %935, %956 : vector<8x8xf32>
    %958 = vector.extract_strided_slice %855 {offsets = [3, 0], sizes = [1, 8], strides = [1, 1]} : vector<8x8xf32> to vector<1x8xf32>
    %959 = vector.broadcast %950 : vector<8x1xf32> to vector<8x8xf32>
    %960 = vector.broadcast %958 : vector<1x8xf32> to vector<8x8xf32>
    %961 = arith.addf %959, %960 : vector<8x8xf32>
    %962 = arith.cmpf ogt, %961, %941 : vector<8x8xf32>
    %963 = arith.select %962, %961, %941 : vector<8x8xi1>, vector<8x8xf32>
    %c3_i32_89 = arith.constant 3 : i32
    %964 = vector.broadcast %c3_i32_89 : i32 to vector<8x8xi32>
    %965 = arith.select %962, %964, %943 : vector<8x8xi1>, vector<8x8xi32>
    %966 = vector.extract_strided_slice %671 {offsets = [3, 0], sizes = [1, 8], strides = [1, 1]} : vector<8x8xf32> to vector<1x8xf32>
    %967 = vector.broadcast %966 : vector<1x8xf32> to vector<8x8xf32>
    %968 = vector.broadcast %950 : vector<8x1xf32> to vector<8x8xf32>
    %969 = arith.mulf %967, %968 : vector<8x8xf32>
    %970 = arith.addf %948, %969 : vector<8x8xf32>
    %971 = vector.extract_strided_slice %2 {offsets = [4, 0, 0], sizes = [1, 8, 1], strides = [1, 1, 1]} : vector<8x8x1xf32> to vector<1x8x1xf32>
    %972 = vector.shape_cast %971 : vector<1x8x1xf32> to vector<8x1xf32>
    %973 = vector.extract_strided_slice %3 {offsets = [4, 0, 0], sizes = [1, 8, 1], strides = [1, 1, 1]} : vector<8x8x1xf32> to vector<1x8x1xf32>
    %974 = vector.shape_cast %973 : vector<1x8x1xf32> to vector<8x1xf32>
    %975 = vector.extract_strided_slice %880 {offsets = [4, 0], sizes = [1, 8], strides = [1, 1]} : vector<8x8xf32> to vector<1x8xf32>
    %976 = vector.broadcast %974 : vector<8x1xf32> to vector<8x8xf32>
    %977 = vector.broadcast %975 : vector<1x8xf32> to vector<8x8xf32>
    %978 = arith.mulf %976, %977 : vector<8x8xf32>
    %979 = arith.addf %957, %978 : vector<8x8xf32>
    %980 = vector.extract_strided_slice %855 {offsets = [4, 0], sizes = [1, 8], strides = [1, 1]} : vector<8x8xf32> to vector<1x8xf32>
    %981 = vector.broadcast %972 : vector<8x1xf32> to vector<8x8xf32>
    %982 = vector.broadcast %980 : vector<1x8xf32> to vector<8x8xf32>
    %983 = arith.addf %981, %982 : vector<8x8xf32>
    %984 = arith.cmpf ogt, %983, %963 : vector<8x8xf32>
    %985 = arith.select %984, %983, %963 : vector<8x8xi1>, vector<8x8xf32>
    %c4_i32_90 = arith.constant 4 : i32
    %986 = vector.broadcast %c4_i32_90 : i32 to vector<8x8xi32>
    %987 = arith.select %984, %986, %965 : vector<8x8xi1>, vector<8x8xi32>
    %988 = vector.extract_strided_slice %671 {offsets = [4, 0], sizes = [1, 8], strides = [1, 1]} : vector<8x8xf32> to vector<1x8xf32>
    %989 = vector.broadcast %988 : vector<1x8xf32> to vector<8x8xf32>
    %990 = vector.broadcast %972 : vector<8x1xf32> to vector<8x8xf32>
    %991 = arith.mulf %989, %990 : vector<8x8xf32>
    %992 = arith.addf %970, %991 : vector<8x8xf32>
    %993 = vector.extract_strided_slice %2 {offsets = [5, 0, 0], sizes = [1, 8, 1], strides = [1, 1, 1]} : vector<8x8x1xf32> to vector<1x8x1xf32>
    %994 = vector.shape_cast %993 : vector<1x8x1xf32> to vector<8x1xf32>
    %995 = vector.extract_strided_slice %3 {offsets = [5, 0, 0], sizes = [1, 8, 1], strides = [1, 1, 1]} : vector<8x8x1xf32> to vector<1x8x1xf32>
    %996 = vector.shape_cast %995 : vector<1x8x1xf32> to vector<8x1xf32>
    %997 = vector.extract_strided_slice %880 {offsets = [5, 0], sizes = [1, 8], strides = [1, 1]} : vector<8x8xf32> to vector<1x8xf32>
    %998 = vector.broadcast %996 : vector<8x1xf32> to vector<8x8xf32>
    %999 = vector.broadcast %997 : vector<1x8xf32> to vector<8x8xf32>
    %1000 = arith.mulf %998, %999 : vector<8x8xf32>
    %1001 = arith.addf %979, %1000 : vector<8x8xf32>
    %1002 = vector.extract_strided_slice %855 {offsets = [5, 0], sizes = [1, 8], strides = [1, 1]} : vector<8x8xf32> to vector<1x8xf32>
    %1003 = vector.broadcast %994 : vector<8x1xf32> to vector<8x8xf32>
    %1004 = vector.broadcast %1002 : vector<1x8xf32> to vector<8x8xf32>
    %1005 = arith.addf %1003, %1004 : vector<8x8xf32>
    %1006 = arith.cmpf ogt, %1005, %985 : vector<8x8xf32>
    %1007 = arith.select %1006, %1005, %985 : vector<8x8xi1>, vector<8x8xf32>
    %c5_i32_91 = arith.constant 5 : i32
    %1008 = vector.broadcast %c5_i32_91 : i32 to vector<8x8xi32>
    %1009 = arith.select %1006, %1008, %987 : vector<8x8xi1>, vector<8x8xi32>
    %1010 = vector.extract_strided_slice %671 {offsets = [5, 0], sizes = [1, 8], strides = [1, 1]} : vector<8x8xf32> to vector<1x8xf32>
    %1011 = vector.broadcast %1010 : vector<1x8xf32> to vector<8x8xf32>
    %1012 = vector.broadcast %994 : vector<8x1xf32> to vector<8x8xf32>
    %1013 = arith.mulf %1011, %1012 : vector<8x8xf32>
    %1014 = arith.addf %992, %1013 : vector<8x8xf32>
    %1015 = vector.extract_strided_slice %2 {offsets = [6, 0, 0], sizes = [1, 8, 1], strides = [1, 1, 1]} : vector<8x8x1xf32> to vector<1x8x1xf32>
    %1016 = vector.shape_cast %1015 : vector<1x8x1xf32> to vector<8x1xf32>
    %1017 = vector.extract_strided_slice %3 {offsets = [6, 0, 0], sizes = [1, 8, 1], strides = [1, 1, 1]} : vector<8x8x1xf32> to vector<1x8x1xf32>
    %1018 = vector.shape_cast %1017 : vector<1x8x1xf32> to vector<8x1xf32>
    %1019 = vector.extract_strided_slice %880 {offsets = [6, 0], sizes = [1, 8], strides = [1, 1]} : vector<8x8xf32> to vector<1x8xf32>
    %1020 = vector.broadcast %1018 : vector<8x1xf32> to vector<8x8xf32>
    %1021 = vector.broadcast %1019 : vector<1x8xf32> to vector<8x8xf32>
    %1022 = arith.mulf %1020, %1021 : vector<8x8xf32>
    %1023 = arith.addf %1001, %1022 : vector<8x8xf32>
    %1024 = vector.extract_strided_slice %855 {offsets = [6, 0], sizes = [1, 8], strides = [1, 1]} : vector<8x8xf32> to vector<1x8xf32>
    %1025 = vector.broadcast %1016 : vector<8x1xf32> to vector<8x8xf32>
    %1026 = vector.broadcast %1024 : vector<1x8xf32> to vector<8x8xf32>
    %1027 = arith.addf %1025, %1026 : vector<8x8xf32>
    %1028 = arith.cmpf ogt, %1027, %1007 : vector<8x8xf32>
    %1029 = arith.select %1028, %1027, %1007 : vector<8x8xi1>, vector<8x8xf32>
    %c6_i32_92 = arith.constant 6 : i32
    %1030 = vector.broadcast %c6_i32_92 : i32 to vector<8x8xi32>
    %1031 = arith.select %1028, %1030, %1009 : vector<8x8xi1>, vector<8x8xi32>
    %1032 = vector.extract_strided_slice %671 {offsets = [6, 0], sizes = [1, 8], strides = [1, 1]} : vector<8x8xf32> to vector<1x8xf32>
    %1033 = vector.broadcast %1032 : vector<1x8xf32> to vector<8x8xf32>
    %1034 = vector.broadcast %1016 : vector<8x1xf32> to vector<8x8xf32>
    %1035 = arith.mulf %1033, %1034 : vector<8x8xf32>
    %1036 = arith.addf %1014, %1035 : vector<8x8xf32>
    %1037 = vector.extract_strided_slice %2 {offsets = [7, 0, 0], sizes = [1, 8, 1], strides = [1, 1, 1]} : vector<8x8x1xf32> to vector<1x8x1xf32>
    %1038 = vector.shape_cast %1037 : vector<1x8x1xf32> to vector<8x1xf32>
    %1039 = vector.extract_strided_slice %3 {offsets = [7, 0, 0], sizes = [1, 8, 1], strides = [1, 1, 1]} : vector<8x8x1xf32> to vector<1x8x1xf32>
    %1040 = vector.shape_cast %1039 : vector<1x8x1xf32> to vector<8x1xf32>
    %1041 = vector.extract_strided_slice %880 {offsets = [7, 0], sizes = [1, 8], strides = [1, 1]} : vector<8x8xf32> to vector<1x8xf32>
    %1042 = vector.broadcast %1040 : vector<8x1xf32> to vector<8x8xf32>
    %1043 = vector.broadcast %1041 : vector<1x8xf32> to vector<8x8xf32>
    %1044 = arith.mulf %1042, %1043 : vector<8x8xf32>
    %1045 = arith.addf %1023, %1044 : vector<8x8xf32>
    %1046 = vector.extract_strided_slice %855 {offsets = [7, 0], sizes = [1, 8], strides = [1, 1]} : vector<8x8xf32> to vector<1x8xf32>
    %1047 = vector.broadcast %1038 : vector<8x1xf32> to vector<8x8xf32>
    %1048 = vector.broadcast %1046 : vector<1x8xf32> to vector<8x8xf32>
    %1049 = arith.addf %1047, %1048 : vector<8x8xf32>
    %1050 = arith.cmpf ogt, %1049, %1029 : vector<8x8xf32>
    %1051 = arith.select %1050, %1049, %1029 : vector<8x8xi1>, vector<8x8xf32>
    %c7_i32_93 = arith.constant 7 : i32
    %1052 = vector.broadcast %c7_i32_93 : i32 to vector<8x8xi32>
    %1053 = arith.select %1050, %1052, %1031 : vector<8x8xi1>, vector<8x8xi32>
    %1054 = vector.extract_strided_slice %671 {offsets = [7, 0], sizes = [1, 8], strides = [1, 1]} : vector<8x8xf32> to vector<1x8xf32>
    %1055 = vector.broadcast %1054 : vector<1x8xf32> to vector<8x8xf32>
    %1056 = vector.broadcast %1038 : vector<8x1xf32> to vector<8x8xf32>
    %1057 = arith.mulf %1055, %1056 : vector<8x8xf32>
    %1058 = arith.addf %1036, %1057 : vector<8x8xf32>
    %1059 = vector.broadcast %877 : vector<1x8xf32> to vector<8x8xf32>
    %1060 = arith.addf %872, %1059 : vector<8x8xf32>
    %1061 = math.log %1045 : vector<8x8xf32>
    %1062 = arith.addf %1060, %1061 : vector<8x8xf32>
    %1063 = vector.shape_cast %875 : vector<1x8xi1> to vector<1x8xi1>
    %1064 = vector.broadcast %1063 : vector<1x8xi1> to vector<8x8xi1>
    %1065 = arith.select %1064, %1062, %851 : vector<8x8xi1>, vector<8x8xf32>
    %1066 = arith.addf %872, %1051 : vector<8x8xf32>
    %1067 = vector.shape_cast %875 : vector<1x8xi1> to vector<1x8xi1>
    %1068 = vector.broadcast %1067 : vector<1x8xi1> to vector<8x8xi1>
    %1069 = arith.select %1068, %1066, %855 : vector<8x8xi1>, vector<8x8xf32>
    %1070 = vector.shape_cast %875 : vector<1x8xi1> to vector<1x8xi1>
    %1071 = vector.broadcast %1070 : vector<1x8xi1> to vector<8x8xi1>
    %1072 = arith.select %1071, %1053, %4 : vector<8x8xi1>, vector<8x8xi32>
    %c5_94 = arith.constant 5 : index
    %c0_95 = arith.constant 0 : index
    %c0_96 = arith.constant 0 : index
    %1073 = vector.load %arg9[%c5_94, %c0_95, %c0_96] : memref<10x8x8xi32, #tpu.memory_space<vmem>>, vector<1x8x8xi32>
    %1074 = vector.shape_cast %1073 : vector<1x8x8xi32> to vector<8x8xi32>
    %1075 = vector.shape_cast %1072 : vector<8x8xi32> to vector<1x8x8xi32>
    tpu.vector_store %arg9[%c5_94, %c0_95, %c0_96], %1075 {strides = array<i32>} : memref<10x8x8xi32, #tpu.memory_space<vmem>>, vector<1x8x8xi32>,
    %1076 = arith.sitofp %873 : vector<1x8xi32> to vector<1x8xf32>
    %1077 = vector.broadcast %1076 : vector<1x8xf32> to vector<8x8xf32>
    %1078 = arith.mulf %1077, %885 : vector<8x8xf32>
    %1079 = arith.addf %1058, %872 : vector<8x8xf32>
    %1080 = arith.mulf %1078, %1079 : vector<8x8xf32>
    %1081 = arith.addf %867, %1080 : vector<8x8xf32>
    %1082 = vector.shape_cast %875 : vector<1x8xi1> to vector<1x8xi1>
    %1083 = vector.broadcast %1082 : vector<1x8xi1> to vector<8x8xi1>
    %1084 = arith.select %1083, %885, %870 : vector<8x8xi1>, vector<8x8xf32>
    %c6 = arith.constant 6 : index
    %c0_97 = arith.constant 0 : index
    %c0_98 = arith.constant 0 : index
    %1085 = vector.load %arg1[%c6, %c0_97, %c0_98] : memref<10x8x8xf32, #tpu.memory_space<vmem>>, vector<1x8x8xf32>
    %1086 = vector.shape_cast %1085 : vector<1x8x8xf32> to vector<8x8xf32>
    %c6_99 = arith.constant 6 : index
    %c0_100 = arith.constant 0 : index
    %1087 = vector.load %arg2[%c6_99, %c0_100] : memref<10x8xi32, #tpu.memory_space<vmem>>, vector<1x8xi32>
    %c1_i32_101 = arith.constant 1 : i32
    %1088 = vector.broadcast %c1_i32_101 : i32 to vector<1x8xi32>
    %1089 = arith.cmpi eq, %1087, %1088 : vector<1x8xi32>
    %cst_102 = arith.constant dense<0xFF800000> : vector<8xf32>
    %1090 = vector.multi_reduction <maximumf>, %1065, %cst_102 [0] : vector<8x8xf32> to vector<8xf32>
    %1091 = vector.shape_cast %1090 : vector<8xf32> to vector<1x8xf32>
    %1092 = vector.broadcast %1091 : vector<1x8xf32> to vector<8x8xf32>
    %1093 = arith.subf %1065, %1092 : vector<8x8xf32>
    %1094 = math.exp %1093 : vector<8x8xf32>
    %c6_103 = arith.constant 6 : index
    %c0_104 = arith.constant 0 : index
    %1095 = vector.load %arg3[%c6_103, %c0_104] : memref<10x8xi32, #tpu.memory_space<vmem>>, vector<1x8xi32>
    %1096 = vector.broadcast %1095 : vector<1x8xi32> to vector<8x8xi32>
    %1097 = arith.cmpi eq, %4, %1096 : vector<8x8xi32>
    %1098 = arith.extui %1097 : vector<8x8xi1> to vector<8x8xi32>
    %1099 = arith.sitofp %1098 : vector<8x8xi32> to vector<8x8xf32>
    %1100 = vector.extract_strided_slice %3 {offsets = [0, 0, 0], sizes = [1, 8, 1], strides = [1, 1, 1]} : vector<8x8x1xf32> to vector<1x8x1xf32>
    %1101 = vector.shape_cast %1100 : vector<1x8x1xf32> to vector<8x1xf32>
    %1102 = vector.extract_strided_slice %1094 {offsets = [0, 0], sizes = [1, 8], strides = [1, 1]} : vector<8x8xf32> to vector<1x8xf32>
    %1103 = vector.broadcast %1101 : vector<8x1xf32> to vector<8x8xf32>
    %1104 = vector.broadcast %1102 : vector<1x8xf32> to vector<8x8xf32>
    %1105 = arith.mulf %1103, %1104 : vector<8x8xf32>
    %1106 = vector.extract_strided_slice %2 {offsets = [0, 0, 0], sizes = [1, 8, 1], strides = [1, 1, 1]} : vector<8x8x1xf32> to vector<1x8x1xf32>
    %1107 = vector.shape_cast %1106 : vector<1x8x1xf32> to vector<8x1xf32>
    %1108 = vector.extract_strided_slice %1069 {offsets = [0, 0], sizes = [1, 8], strides = [1, 1]} : vector<8x8xf32> to vector<1x8xf32>
    %1109 = vector.broadcast %1107 : vector<8x1xf32> to vector<8x8xf32>
    %1110 = vector.broadcast %1108 : vector<1x8xf32> to vector<8x8xf32>
    %1111 = arith.addf %1109, %1110 : vector<8x8xf32>
    %c0_i32_105 = arith.constant 0 : i32
    %1112 = vector.broadcast %c0_i32_105 : i32 to vector<8x8xi32>
    %1113 = vector.extract_strided_slice %885 {offsets = [0, 0], sizes = [1, 8], strides = [1, 1]} : vector<8x8xf32> to vector<1x8xf32>
    %1114 = vector.extract_strided_slice %2 {offsets = [0, 0, 0], sizes = [1, 8, 1], strides = [1, 1, 1]} : vector<8x8x1xf32> to vector<1x8x1xf32>
    %1115 = vector.shape_cast %1114 : vector<1x8x1xf32> to vector<8x1xf32>
    %1116 = vector.broadcast %1113 : vector<1x8xf32> to vector<8x8xf32>
    %1117 = vector.broadcast %1115 : vector<8x1xf32> to vector<8x8xf32>
    %1118 = arith.mulf %1116, %1117 : vector<8x8xf32>
    %1119 = vector.extract_strided_slice %2 {offsets = [1, 0, 0], sizes = [1, 8, 1], strides = [1, 1, 1]} : vector<8x8x1xf32> to vector<1x8x1xf32>
    %1120 = vector.shape_cast %1119 : vector<1x8x1xf32> to vector<8x1xf32>
    %1121 = vector.extract_strided_slice %3 {offsets = [1, 0, 0], sizes = [1, 8, 1], strides = [1, 1, 1]} : vector<8x8x1xf32> to vector<1x8x1xf32>
    %1122 = vector.shape_cast %1121 : vector<1x8x1xf32> to vector<8x1xf32>
    %1123 = vector.extract_strided_slice %1094 {offsets = [1, 0], sizes = [1, 8], strides = [1, 1]} : vector<8x8xf32> to vector<1x8xf32>
    %1124 = vector.broadcast %1122 : vector<8x1xf32> to vector<8x8xf32>
    %1125 = vector.broadcast %1123 : vector<1x8xf32> to vector<8x8xf32>
    %1126 = arith.mulf %1124, %1125 : vector<8x8xf32>
    %1127 = arith.addf %1105, %1126 : vector<8x8xf32>
    %1128 = vector.extract_strided_slice %1069 {offsets = [1, 0], sizes = [1, 8], strides = [1, 1]} : vector<8x8xf32> to vector<1x8xf32>
    %1129 = vector.broadcast %1120 : vector<8x1xf32> to vector<8x8xf32>
    %1130 = vector.broadcast %1128 : vector<1x8xf32> to vector<8x8xf32>
    %1131 = arith.addf %1129, %1130 : vector<8x8xf32>
    %1132 = arith.cmpf ogt, %1131, %1111 : vector<8x8xf32>
    %1133 = arith.select %1132, %1131, %1111 : vector<8x8xi1>, vector<8x8xf32>
    %c1_i32_106 = arith.constant 1 : i32
    %1134 = vector.broadcast %c1_i32_106 : i32 to vector<8x8xi32>
    %1135 = arith.select %1132, %1134, %1112 : vector<8x8xi1>, vector<8x8xi32>
    %1136 = vector.extract_strided_slice %885 {offsets = [1, 0], sizes = [1, 8], strides = [1, 1]} : vector<8x8xf32> to vector<1x8xf32>
    %1137 = vector.broadcast %1136 : vector<1x8xf32> to vector<8x8xf32>
    %1138 = vector.broadcast %1120 : vector<8x1xf32> to vector<8x8xf32>
    %1139 = arith.mulf %1137, %1138 : vector<8x8xf32>
    %1140 = arith.addf %1118, %1139 : vector<8x8xf32>
    %1141 = vector.extract_strided_slice %2 {offsets = [2, 0, 0], sizes = [1, 8, 1], strides = [1, 1, 1]} : vector<8x8x1xf32> to vector<1x8x1xf32>
    %1142 = vector.shape_cast %1141 : vector<1x8x1xf32> to vector<8x1xf32>
    %1143 = vector.extract_strided_slice %3 {offsets = [2, 0, 0], sizes = [1, 8, 1], strides = [1, 1, 1]} : vector<8x8x1xf32> to vector<1x8x1xf32>
    %1144 = vector.shape_cast %1143 : vector<1x8x1xf32> to vector<8x1xf32>
    %1145 = vector.extract_strided_slice %1094 {offsets = [2, 0], sizes = [1, 8], strides = [1, 1]} : vector<8x8xf32> to vector<1x8xf32>
    %1146 = vector.broadcast %1144 : vector<8x1xf32> to vector<8x8xf32>
    %1147 = vector.broadcast %1145 : vector<1x8xf32> to vector<8x8xf32>
    %1148 = arith.mulf %1146, %1147 : vector<8x8xf32>
    %1149 = arith.addf %1127, %1148 : vector<8x8xf32>
    %1150 = vector.extract_strided_slice %1069 {offsets = [2, 0], sizes = [1, 8], strides = [1, 1]} : vector<8x8xf32> to vector<1x8xf32>
    %1151 = vector.broadcast %1142 : vector<8x1xf32> to vector<8x8xf32>
    %1152 = vector.broadcast %1150 : vector<1x8xf32> to vector<8x8xf32>
    %1153 = arith.addf %1151, %1152 : vector<8x8xf32>
    %1154 = arith.cmpf ogt, %1153, %1133 : vector<8x8xf32>
    %1155 = arith.select %1154, %1153, %1133 : vector<8x8xi1>, vector<8x8xf32>
    %c2_i32_107 = arith.constant 2 : i32
    %1156 = vector.broadcast %c2_i32_107 : i32 to vector<8x8xi32>
    %1157 = arith.select %1154, %1156, %1135 : vector<8x8xi1>, vector<8x8xi32>
    %1158 = vector.extract_strided_slice %885 {offsets = [2, 0], sizes = [1, 8], strides = [1, 1]} : vector<8x8xf32> to vector<1x8xf32>
    %1159 = vector.broadcast %1158 : vector<1x8xf32> to vector<8x8xf32>
    %1160 = vector.broadcast %1142 : vector<8x1xf32> to vector<8x8xf32>
    %1161 = arith.mulf %1159, %1160 : vector<8x8xf32>
    %1162 = arith.addf %1140, %1161 : vector<8x8xf32>
    %1163 = vector.extract_strided_slice %2 {offsets = [3, 0, 0], sizes = [1, 8, 1], strides = [1, 1, 1]} : vector<8x8x1xf32> to vector<1x8x1xf32>
    %1164 = vector.shape_cast %1163 : vector<1x8x1xf32> to vector<8x1xf32>
    %1165 = vector.extract_strided_slice %3 {offsets = [3, 0, 0], sizes = [1, 8, 1], strides = [1, 1, 1]} : vector<8x8x1xf32> to vector<1x8x1xf32>
    %1166 = vector.shape_cast %1165 : vector<1x8x1xf32> to vector<8x1xf32>
    %1167 = vector.extract_strided_slice %1094 {offsets = [3, 0], sizes = [1, 8], strides = [1, 1]} : vector<8x8xf32> to vector<1x8xf32>
    %1168 = vector.broadcast %1166 : vector<8x1xf32> to vector<8x8xf32>
    %1169 = vector.broadcast %1167 : vector<1x8xf32> to vector<8x8xf32>
    %1170 = arith.mulf %1168, %1169 : vector<8x8xf32>
    %1171 = arith.addf %1149, %1170 : vector<8x8xf32>
    %1172 = vector.extract_strided_slice %1069 {offsets = [3, 0], sizes = [1, 8], strides = [1, 1]} : vector<8x8xf32> to vector<1x8xf32>
    %1173 = vector.broadcast %1164 : vector<8x1xf32> to vector<8x8xf32>
    %1174 = vector.broadcast %1172 : vector<1x8xf32> to vector<8x8xf32>
    %1175 = arith.addf %1173, %1174 : vector<8x8xf32>
    %1176 = arith.cmpf ogt, %1175, %1155 : vector<8x8xf32>
    %1177 = arith.select %1176, %1175, %1155 : vector<8x8xi1>, vector<8x8xf32>
    %c3_i32_108 = arith.constant 3 : i32
    %1178 = vector.broadcast %c3_i32_108 : i32 to vector<8x8xi32>
    %1179 = arith.select %1176, %1178, %1157 : vector<8x8xi1>, vector<8x8xi32>
    %1180 = vector.extract_strided_slice %885 {offsets = [3, 0], sizes = [1, 8], strides = [1, 1]} : vector<8x8xf32> to vector<1x8xf32>
    %1181 = vector.broadcast %1180 : vector<1x8xf32> to vector<8x8xf32>
    %1182 = vector.broadcast %1164 : vector<8x1xf32> to vector<8x8xf32>
    %1183 = arith.mulf %1181, %1182 : vector<8x8xf32>
    %1184 = arith.addf %1162, %1183 : vector<8x8xf32>
    %1185 = vector.extract_strided_slice %2 {offsets = [4, 0, 0], sizes = [1, 8, 1], strides = [1, 1, 1]} : vector<8x8x1xf32> to vector<1x8x1xf32>
    %1186 = vector.shape_cast %1185 : vector<1x8x1xf32> to vector<8x1xf32>
    %1187 = vector.extract_strided_slice %3 {offsets = [4, 0, 0], sizes = [1, 8, 1], strides = [1, 1, 1]} : vector<8x8x1xf32> to vector<1x8x1xf32>
    %1188 = vector.shape_cast %1187 : vector<1x8x1xf32> to vector<8x1xf32>
    %1189 = vector.extract_strided_slice %1094 {offsets = [4, 0], sizes = [1, 8], strides = [1, 1]} : vector<8x8xf32> to vector<1x8xf32>
    %1190 = vector.broadcast %1188 : vector<8x1xf32> to vector<8x8xf32>
    %1191 = vector.broadcast %1189 : vector<1x8xf32> to vector<8x8xf32>
    %1192 = arith.mulf %1190, %1191 : vector<8x8xf32>
    %1193 = arith.addf %1171, %1192 : vector<8x8xf32>
    %1194 = vector.extract_strided_slice %1069 {offsets = [4, 0], sizes = [1, 8], strides = [1, 1]} : vector<8x8xf32> to vector<1x8xf32>
    %1195 = vector.broadcast %1186 : vector<8x1xf32> to vector<8x8xf32>
    %1196 = vector.broadcast %1194 : vector<1x8xf32> to vector<8x8xf32>
    %1197 = arith.addf %1195, %1196 : vector<8x8xf32>
    %1198 = arith.cmpf ogt, %1197, %1177 : vector<8x8xf32>
    %1199 = arith.select %1198, %1197, %1177 : vector<8x8xi1>, vector<8x8xf32>
    %c4_i32_109 = arith.constant 4 : i32
    %1200 = vector.broadcast %c4_i32_109 : i32 to vector<8x8xi32>
    %1201 = arith.select %1198, %1200, %1179 : vector<8x8xi1>, vector<8x8xi32>
    %1202 = vector.extract_strided_slice %885 {offsets = [4, 0], sizes = [1, 8], strides = [1, 1]} : vector<8x8xf32> to vector<1x8xf32>
    %1203 = vector.broadcast %1202 : vector<1x8xf32> to vector<8x8xf32>
    %1204 = vector.broadcast %1186 : vector<8x1xf32> to vector<8x8xf32>
    %1205 = arith.mulf %1203, %1204 : vector<8x8xf32>
    %1206 = arith.addf %1184, %1205 : vector<8x8xf32>
    %1207 = vector.extract_strided_slice %2 {offsets = [5, 0, 0], sizes = [1, 8, 1], strides = [1, 1, 1]} : vector<8x8x1xf32> to vector<1x8x1xf32>
    %1208 = vector.shape_cast %1207 : vector<1x8x1xf32> to vector<8x1xf32>
    %1209 = vector.extract_strided_slice %3 {offsets = [5, 0, 0], sizes = [1, 8, 1], strides = [1, 1, 1]} : vector<8x8x1xf32> to vector<1x8x1xf32>
    %1210 = vector.shape_cast %1209 : vector<1x8x1xf32> to vector<8x1xf32>
    %1211 = vector.extract_strided_slice %1094 {offsets = [5, 0], sizes = [1, 8], strides = [1, 1]} : vector<8x8xf32> to vector<1x8xf32>
    %1212 = vector.broadcast %1210 : vector<8x1xf32> to vector<8x8xf32>
    %1213 = vector.broadcast %1211 : vector<1x8xf32> to vector<8x8xf32>
    %1214 = arith.mulf %1212, %1213 : vector<8x8xf32>
    %1215 = arith.addf %1193, %1214 : vector<8x8xf32>
    %1216 = vector.extract_strided_slice %1069 {offsets = [5, 0], sizes = [1, 8], strides = [1, 1]} : vector<8x8xf32> to vector<1x8xf32>
    %1217 = vector.broadcast %1208 : vector<8x1xf32> to vector<8x8xf32>
    %1218 = vector.broadcast %1216 : vector<1x8xf32> to vector<8x8xf32>
    %1219 = arith.addf %1217, %1218 : vector<8x8xf32>
    %1220 = arith.cmpf ogt, %1219, %1199 : vector<8x8xf32>
    %1221 = arith.select %1220, %1219, %1199 : vector<8x8xi1>, vector<8x8xf32>
    %c5_i32_110 = arith.constant 5 : i32
    %1222 = vector.broadcast %c5_i32_110 : i32 to vector<8x8xi32>
    %1223 = arith.select %1220, %1222, %1201 : vector<8x8xi1>, vector<8x8xi32>
    %1224 = vector.extract_strided_slice %885 {offsets = [5, 0], sizes = [1, 8], strides = [1, 1]} : vector<8x8xf32> to vector<1x8xf32>
    %1225 = vector.broadcast %1224 : vector<1x8xf32> to vector<8x8xf32>
    %1226 = vector.broadcast %1208 : vector<8x1xf32> to vector<8x8xf32>
    %1227 = arith.mulf %1225, %1226 : vector<8x8xf32>
    %1228 = arith.addf %1206, %1227 : vector<8x8xf32>
    %1229 = vector.extract_strided_slice %2 {offsets = [6, 0, 0], sizes = [1, 8, 1], strides = [1, 1, 1]} : vector<8x8x1xf32> to vector<1x8x1xf32>
    %1230 = vector.shape_cast %1229 : vector<1x8x1xf32> to vector<8x1xf32>
    %1231 = vector.extract_strided_slice %3 {offsets = [6, 0, 0], sizes = [1, 8, 1], strides = [1, 1, 1]} : vector<8x8x1xf32> to vector<1x8x1xf32>
    %1232 = vector.shape_cast %1231 : vector<1x8x1xf32> to vector<8x1xf32>
    %1233 = vector.extract_strided_slice %1094 {offsets = [6, 0], sizes = [1, 8], strides = [1, 1]} : vector<8x8xf32> to vector<1x8xf32>
    %1234 = vector.broadcast %1232 : vector<8x1xf32> to vector<8x8xf32>
    %1235 = vector.broadcast %1233 : vector<1x8xf32> to vector<8x8xf32>
    %1236 = arith.mulf %1234, %1235 : vector<8x8xf32>
    %1237 = arith.addf %1215, %1236 : vector<8x8xf32>
    %1238 = vector.extract_strided_slice %1069 {offsets = [6, 0], sizes = [1, 8], strides = [1, 1]} : vector<8x8xf32> to vector<1x8xf32>
    %1239 = vector.broadcast %1230 : vector<8x1xf32> to vector<8x8xf32>
    %1240 = vector.broadcast %1238 : vector<1x8xf32> to vector<8x8xf32>
    %1241 = arith.addf %1239, %1240 : vector<8x8xf32>
    %1242 = arith.cmpf ogt, %1241, %1221 : vector<8x8xf32>
    %1243 = arith.select %1242, %1241, %1221 : vector<8x8xi1>, vector<8x8xf32>
    %c6_i32_111 = arith.constant 6 : i32
    %1244 = vector.broadcast %c6_i32_111 : i32 to vector<8x8xi32>
    %1245 = arith.select %1242, %1244, %1223 : vector<8x8xi1>, vector<8x8xi32>
    %1246 = vector.extract_strided_slice %885 {offsets = [6, 0], sizes = [1, 8], strides = [1, 1]} : vector<8x8xf32> to vector<1x8xf32>
    %1247 = vector.broadcast %1246 : vector<1x8xf32> to vector<8x8xf32>
    %1248 = vector.broadcast %1230 : vector<8x1xf32> to vector<8x8xf32>
    %1249 = arith.mulf %1247, %1248 : vector<8x8xf32>
    %1250 = arith.addf %1228, %1249 : vector<8x8xf32>
    %1251 = vector.extract_strided_slice %2 {offsets = [7, 0, 0], sizes = [1, 8, 1], strides = [1, 1, 1]} : vector<8x8x1xf32> to vector<1x8x1xf32>
    %1252 = vector.shape_cast %1251 : vector<1x8x1xf32> to vector<8x1xf32>
    %1253 = vector.extract_strided_slice %3 {offsets = [7, 0, 0], sizes = [1, 8, 1], strides = [1, 1, 1]} : vector<8x8x1xf32> to vector<1x8x1xf32>
    %1254 = vector.shape_cast %1253 : vector<1x8x1xf32> to vector<8x1xf32>
    %1255 = vector.extract_strided_slice %1094 {offsets = [7, 0], sizes = [1, 8], strides = [1, 1]} : vector<8x8xf32> to vector<1x8xf32>
    %1256 = vector.broadcast %1254 : vector<8x1xf32> to vector<8x8xf32>
    %1257 = vector.broadcast %1255 : vector<1x8xf32> to vector<8x8xf32>
    %1258 = arith.mulf %1256, %1257 : vector<8x8xf32>
    %1259 = arith.addf %1237, %1258 : vector<8x8xf32>
    %1260 = vector.extract_strided_slice %1069 {offsets = [7, 0], sizes = [1, 8], strides = [1, 1]} : vector<8x8xf32> to vector<1x8xf32>
    %1261 = vector.broadcast %1252 : vector<8x1xf32> to vector<8x8xf32>
    %1262 = vector.broadcast %1260 : vector<1x8xf32> to vector<8x8xf32>
    %1263 = arith.addf %1261, %1262 : vector<8x8xf32>
    %1264 = arith.cmpf ogt, %1263, %1243 : vector<8x8xf32>
    %1265 = arith.select %1264, %1263, %1243 : vector<8x8xi1>, vector<8x8xf32>
    %c7_i32_112 = arith.constant 7 : i32
    %1266 = vector.broadcast %c7_i32_112 : i32 to vector<8x8xi32>
    %1267 = arith.select %1264, %1266, %1245 : vector<8x8xi1>, vector<8x8xi32>
    %1268 = vector.extract_strided_slice %885 {offsets = [7, 0], sizes = [1, 8], strides = [1, 1]} : vector<8x8xf32> to vector<1x8xf32>
    %1269 = vector.broadcast %1268 : vector<1x8xf32> to vector<8x8xf32>
    %1270 = vector.broadcast %1252 : vector<8x1xf32> to vector<8x8xf32>
    %1271 = arith.mulf %1269, %1270 : vector<8x8xf32>
    %1272 = arith.addf %1250, %1271 : vector<8x8xf32>
    %1273 = vector.broadcast %1091 : vector<1x8xf32> to vector<8x8xf32>
    %1274 = arith.addf %1086, %1273 : vector<8x8xf32>
    %1275 = math.log %1259 : vector<8x8xf32>
    %1276 = arith.addf %1274, %1275 : vector<8x8xf32>
    %1277 = vector.shape_cast %1089 : vector<1x8xi1> to vector<1x8xi1>
    %1278 = vector.broadcast %1277 : vector<1x8xi1> to vector<8x8xi1>
    %1279 = arith.select %1278, %1276, %1065 : vector<8x8xi1>, vector<8x8xf32>
    %1280 = arith.addf %1086, %1265 : vector<8x8xf32>
    %1281 = vector.shape_cast %1089 : vector<1x8xi1> to vector<1x8xi1>
    %1282 = vector.broadcast %1281 : vector<1x8xi1> to vector<8x8xi1>
    %1283 = arith.select %1282, %1280, %1069 : vector<8x8xi1>, vector<8x8xf32>
    %1284 = vector.shape_cast %1089 : vector<1x8xi1> to vector<1x8xi1>
    %1285 = vector.broadcast %1284 : vector<1x8xi1> to vector<8x8xi1>
    %1286 = arith.select %1285, %1267, %4 : vector<8x8xi1>, vector<8x8xi32>
    %c6_113 = arith.constant 6 : index
    %c0_114 = arith.constant 0 : index
    %c0_115 = arith.constant 0 : index
    %1287 = vector.load %arg9[%c6_113, %c0_114, %c0_115] : memref<10x8x8xi32, #tpu.memory_space<vmem>>, vector<1x8x8xi32>
    %1288 = vector.shape_cast %1287 : vector<1x8x8xi32> to vector<8x8xi32>
    %1289 = vector.shape_cast %1286 : vector<8x8xi32> to vector<1x8x8xi32>
    tpu.vector_store %arg9[%c6_113, %c0_114, %c0_115], %1289 {strides = array<i32>} : memref<10x8x8xi32, #tpu.memory_space<vmem>>, vector<1x8x8xi32>,
    %1290 = arith.sitofp %1087 : vector<1x8xi32> to vector<1x8xf32>
    %1291 = vector.broadcast %1290 : vector<1x8xf32> to vector<8x8xf32>
    %1292 = arith.mulf %1291, %1099 : vector<8x8xf32>
    %1293 = arith.addf %1272, %1086 : vector<8x8xf32>
    %1294 = arith.mulf %1292, %1293 : vector<8x8xf32>
    %1295 = arith.addf %1081, %1294 : vector<8x8xf32>
    %1296 = vector.shape_cast %1089 : vector<1x8xi1> to vector<1x8xi1>
    %1297 = vector.broadcast %1296 : vector<1x8xi1> to vector<8x8xi1>
    %1298 = arith.select %1297, %1099, %1084 : vector<8x8xi1>, vector<8x8xf32>
    %c7 = arith.constant 7 : index
    %c0_116 = arith.constant 0 : index
    %c0_117 = arith.constant 0 : index
    %1299 = vector.load %arg1[%c7, %c0_116, %c0_117] : memref<10x8x8xf32, #tpu.memory_space<vmem>>, vector<1x8x8xf32>
    %1300 = vector.shape_cast %1299 : vector<1x8x8xf32> to vector<8x8xf32>
    %c7_118 = arith.constant 7 : index
    %c0_119 = arith.constant 0 : index
    %1301 = vector.load %arg2[%c7_118, %c0_119] : memref<10x8xi32, #tpu.memory_space<vmem>>, vector<1x8xi32>
    %c1_i32_120 = arith.constant 1 : i32
    %1302 = vector.broadcast %c1_i32_120 : i32 to vector<1x8xi32>
    %1303 = arith.cmpi eq, %1301, %1302 : vector<1x8xi32>
    %cst_121 = arith.constant dense<0xFF800000> : vector<8xf32>
    %1304 = vector.multi_reduction <maximumf>, %1279, %cst_121 [0] : vector<8x8xf32> to vector<8xf32>
    %1305 = vector.shape_cast %1304 : vector<8xf32> to vector<1x8xf32>
    %1306 = vector.broadcast %1305 : vector<1x8xf32> to vector<8x8xf32>
    %1307 = arith.subf %1279, %1306 : vector<8x8xf32>
    %1308 = math.exp %1307 : vector<8x8xf32>
    %c7_122 = arith.constant 7 : index
    %c0_123 = arith.constant 0 : index
    %1309 = vector.load %arg3[%c7_122, %c0_123] : memref<10x8xi32, #tpu.memory_space<vmem>>, vector<1x8xi32>
    %1310 = vector.broadcast %1309 : vector<1x8xi32> to vector<8x8xi32>
    %1311 = arith.cmpi eq, %4, %1310 : vector<8x8xi32>
    %1312 = arith.extui %1311 : vector<8x8xi1> to vector<8x8xi32>
    %1313 = arith.sitofp %1312 : vector<8x8xi32> to vector<8x8xf32>
    %1314 = vector.extract_strided_slice %3 {offsets = [0, 0, 0], sizes = [1, 8, 1], strides = [1, 1, 1]} : vector<8x8x1xf32> to vector<1x8x1xf32>
    %1315 = vector.shape_cast %1314 : vector<1x8x1xf32> to vector<8x1xf32>
    %1316 = vector.extract_strided_slice %1308 {offsets = [0, 0], sizes = [1, 8], strides = [1, 1]} : vector<8x8xf32> to vector<1x8xf32>
    %1317 = vector.broadcast %1315 : vector<8x1xf32> to vector<8x8xf32>
    %1318 = vector.broadcast %1316 : vector<1x8xf32> to vector<8x8xf32>
    %1319 = arith.mulf %1317, %1318 : vector<8x8xf32>
    %1320 = vector.extract_strided_slice %2 {offsets = [0, 0, 0], sizes = [1, 8, 1], strides = [1, 1, 1]} : vector<8x8x1xf32> to vector<1x8x1xf32>
    %1321 = vector.shape_cast %1320 : vector<1x8x1xf32> to vector<8x1xf32>
    %1322 = vector.extract_strided_slice %1283 {offsets = [0, 0], sizes = [1, 8], strides = [1, 1]} : vector<8x8xf32> to vector<1x8xf32>
    %1323 = vector.broadcast %1321 : vector<8x1xf32> to vector<8x8xf32>
    %1324 = vector.broadcast %1322 : vector<1x8xf32> to vector<8x8xf32>
    %1325 = arith.addf %1323, %1324 : vector<8x8xf32>
    %c0_i32_124 = arith.constant 0 : i32
    %1326 = vector.broadcast %c0_i32_124 : i32 to vector<8x8xi32>
    %1327 = vector.extract_strided_slice %1099 {offsets = [0, 0], sizes = [1, 8], strides = [1, 1]} : vector<8x8xf32> to vector<1x8xf32>
    %1328 = vector.extract_strided_slice %2 {offsets = [0, 0, 0], sizes = [1, 8, 1], strides = [1, 1, 1]} : vector<8x8x1xf32> to vector<1x8x1xf32>
    %1329 = vector.shape_cast %1328 : vector<1x8x1xf32> to vector<8x1xf32>
    %1330 = vector.broadcast %1327 : vector<1x8xf32> to vector<8x8xf32>
    %1331 = vector.broadcast %1329 : vector<8x1xf32> to vector<8x8xf32>
    %1332 = arith.mulf %1330, %1331 : vector<8x8xf32>
    %1333 = vector.extract_strided_slice %2 {offsets = [1, 0, 0], sizes = [1, 8, 1], strides = [1, 1, 1]} : vector<8x8x1xf32> to vector<1x8x1xf32>
    %1334 = vector.shape_cast %1333 : vector<1x8x1xf32> to vector<8x1xf32>
    %1335 = vector.extract_strided_slice %3 {offsets = [1, 0, 0], sizes = [1, 8, 1], strides = [1, 1, 1]} : vector<8x8x1xf32> to vector<1x8x1xf32>
    %1336 = vector.shape_cast %1335 : vector<1x8x1xf32> to vector<8x1xf32>
    %1337 = vector.extract_strided_slice %1308 {offsets = [1, 0], sizes = [1, 8], strides = [1, 1]} : vector<8x8xf32> to vector<1x8xf32>
    %1338 = vector.broadcast %1336 : vector<8x1xf32> to vector<8x8xf32>
    %1339 = vector.broadcast %1337 : vector<1x8xf32> to vector<8x8xf32>
    %1340 = arith.mulf %1338, %1339 : vector<8x8xf32>
    %1341 = arith.addf %1319, %1340 : vector<8x8xf32>
    %1342 = vector.extract_strided_slice %1283 {offsets = [1, 0], sizes = [1, 8], strides = [1, 1]} : vector<8x8xf32> to vector<1x8xf32>
    %1343 = vector.broadcast %1334 : vector<8x1xf32> to vector<8x8xf32>
    %1344 = vector.broadcast %1342 : vector<1x8xf32> to vector<8x8xf32>
    %1345 = arith.addf %1343, %1344 : vector<8x8xf32>
    %1346 = arith.cmpf ogt, %1345, %1325 : vector<8x8xf32>
    %1347 = arith.select %1346, %1345, %1325 : vector<8x8xi1>, vector<8x8xf32>
    %c1_i32_125 = arith.constant 1 : i32
    %1348 = vector.broadcast %c1_i32_125 : i32 to vector<8x8xi32>
    %1349 = arith.select %1346, %1348, %1326 : vector<8x8xi1>, vector<8x8xi32>
    %1350 = vector.extract_strided_slice %1099 {offsets = [1, 0], sizes = [1, 8], strides = [1, 1]} : vector<8x8xf32> to vector<1x8xf32>
    %1351 = vector.broadcast %1350 : vector<1x8xf32> to vector<8x8xf32>
    %1352 = vector.broadcast %1334 : vector<8x1xf32> to vector<8x8xf32>
    %1353 = arith.mulf %1351, %1352 : vector<8x8xf32>
    %1354 = arith.addf %1332, %1353 : vector<8x8xf32>
    %1355 = vector.extract_strided_slice %2 {offsets = [2, 0, 0], sizes = [1, 8, 1], strides = [1, 1, 1]} : vector<8x8x1xf32> to vector<1x8x1xf32>
    %1356 = vector.shape_cast %1355 : vector<1x8x1xf32> to vector<8x1xf32>
    %1357 = vector.extract_strided_slice %3 {offsets = [2, 0, 0], sizes = [1, 8, 1], strides = [1, 1, 1]} : vector<8x8x1xf32> to vector<1x8x1xf32>
    %1358 = vector.shape_cast %1357 : vector<1x8x1xf32> to vector<8x1xf32>
    %1359 = vector.extract_strided_slice %1308 {offsets = [2, 0], sizes = [1, 8], strides = [1, 1]} : vector<8x8xf32> to vector<1x8xf32>
    %1360 = vector.broadcast %1358 : vector<8x1xf32> to vector<8x8xf32>
    %1361 = vector.broadcast %1359 : vector<1x8xf32> to vector<8x8xf32>
    %1362 = arith.mulf %1360, %1361 : vector<8x8xf32>
    %1363 = arith.addf %1341, %1362 : vector<8x8xf32>
    %1364 = vector.extract_strided_slice %1283 {offsets = [2, 0], sizes = [1, 8], strides = [1, 1]} : vector<8x8xf32> to vector<1x8xf32>
    %1365 = vector.broadcast %1356 : vector<8x1xf32> to vector<8x8xf32>
    %1366 = vector.broadcast %1364 : vector<1x8xf32> to vector<8x8xf32>
    %1367 = arith.addf %1365, %1366 : vector<8x8xf32>
    %1368 = arith.cmpf ogt, %1367, %1347 : vector<8x8xf32>
    %1369 = arith.select %1368, %1367, %1347 : vector<8x8xi1>, vector<8x8xf32>
    %c2_i32_126 = arith.constant 2 : i32
    %1370 = vector.broadcast %c2_i32_126 : i32 to vector<8x8xi32>
    %1371 = arith.select %1368, %1370, %1349 : vector<8x8xi1>, vector<8x8xi32>
    %1372 = vector.extract_strided_slice %1099 {offsets = [2, 0], sizes = [1, 8], strides = [1, 1]} : vector<8x8xf32> to vector<1x8xf32>
    %1373 = vector.broadcast %1372 : vector<1x8xf32> to vector<8x8xf32>
    %1374 = vector.broadcast %1356 : vector<8x1xf32> to vector<8x8xf32>
    %1375 = arith.mulf %1373, %1374 : vector<8x8xf32>
    %1376 = arith.addf %1354, %1375 : vector<8x8xf32>
    %1377 = vector.extract_strided_slice %2 {offsets = [3, 0, 0], sizes = [1, 8, 1], strides = [1, 1, 1]} : vector<8x8x1xf32> to vector<1x8x1xf32>
    %1378 = vector.shape_cast %1377 : vector<1x8x1xf32> to vector<8x1xf32>
    %1379 = vector.extract_strided_slice %3 {offsets = [3, 0, 0], sizes = [1, 8, 1], strides = [1, 1, 1]} : vector<8x8x1xf32> to vector<1x8x1xf32>
    %1380 = vector.shape_cast %1379 : vector<1x8x1xf32> to vector<8x1xf32>
    %1381 = vector.extract_strided_slice %1308 {offsets = [3, 0], sizes = [1, 8], strides = [1, 1]} : vector<8x8xf32> to vector<1x8xf32>
    %1382 = vector.broadcast %1380 : vector<8x1xf32> to vector<8x8xf32>
    %1383 = vector.broadcast %1381 : vector<1x8xf32> to vector<8x8xf32>
    %1384 = arith.mulf %1382, %1383 : vector<8x8xf32>
    %1385 = arith.addf %1363, %1384 : vector<8x8xf32>
    %1386 = vector.extract_strided_slice %1283 {offsets = [3, 0], sizes = [1, 8], strides = [1, 1]} : vector<8x8xf32> to vector<1x8xf32>
    %1387 = vector.broadcast %1378 : vector<8x1xf32> to vector<8x8xf32>
    %1388 = vector.broadcast %1386 : vector<1x8xf32> to vector<8x8xf32>
    %1389 = arith.addf %1387, %1388 : vector<8x8xf32>
    %1390 = arith.cmpf ogt, %1389, %1369 : vector<8x8xf32>
    %1391 = arith.select %1390, %1389, %1369 : vector<8x8xi1>, vector<8x8xf32>
    %c3_i32_127 = arith.constant 3 : i32
    %1392 = vector.broadcast %c3_i32_127 : i32 to vector<8x8xi32>
    %1393 = arith.select %1390, %1392, %1371 : vector<8x8xi1>, vector<8x8xi32>
    %1394 = vector.extract_strided_slice %1099 {offsets = [3, 0], sizes = [1, 8], strides = [1, 1]} : vector<8x8xf32> to vector<1x8xf32>
    %1395 = vector.broadcast %1394 : vector<1x8xf32> to vector<8x8xf32>
    %1396 = vector.broadcast %1378 : vector<8x1xf32> to vector<8x8xf32>
    %1397 = arith.mulf %1395, %1396 : vector<8x8xf32>
    %1398 = arith.addf %1376, %1397 : vector<8x8xf32>
    %1399 = vector.extract_strided_slice %2 {offsets = [4, 0, 0], sizes = [1, 8, 1], strides = [1, 1, 1]} : vector<8x8x1xf32> to vector<1x8x1xf32>
    %1400 = vector.shape_cast %1399 : vector<1x8x1xf32> to vector<8x1xf32>
    %1401 = vector.extract_strided_slice %3 {offsets = [4, 0, 0], sizes = [1, 8, 1], strides = [1, 1, 1]} : vector<8x8x1xf32> to vector<1x8x1xf32>
    %1402 = vector.shape_cast %1401 : vector<1x8x1xf32> to vector<8x1xf32>
    %1403 = vector.extract_strided_slice %1308 {offsets = [4, 0], sizes = [1, 8], strides = [1, 1]} : vector<8x8xf32> to vector<1x8xf32>
    %1404 = vector.broadcast %1402 : vector<8x1xf32> to vector<8x8xf32>
    %1405 = vector.broadcast %1403 : vector<1x8xf32> to vector<8x8xf32>
    %1406 = arith.mulf %1404, %1405 : vector<8x8xf32>
    %1407 = arith.addf %1385, %1406 : vector<8x8xf32>
    %1408 = vector.extract_strided_slice %1283 {offsets = [4, 0], sizes = [1, 8], strides = [1, 1]} : vector<8x8xf32> to vector<1x8xf32>
    %1409 = vector.broadcast %1400 : vector<8x1xf32> to vector<8x8xf32>
    %1410 = vector.broadcast %1408 : vector<1x8xf32> to vector<8x8xf32>
    %1411 = arith.addf %1409, %1410 : vector<8x8xf32>
    %1412 = arith.cmpf ogt, %1411, %1391 : vector<8x8xf32>
    %1413 = arith.select %1412, %1411, %1391 : vector<8x8xi1>, vector<8x8xf32>
    %c4_i32_128 = arith.constant 4 : i32
    %1414 = vector.broadcast %c4_i32_128 : i32 to vector<8x8xi32>
    %1415 = arith.select %1412, %1414, %1393 : vector<8x8xi1>, vector<8x8xi32>
    %1416 = vector.extract_strided_slice %1099 {offsets = [4, 0], sizes = [1, 8], strides = [1, 1]} : vector<8x8xf32> to vector<1x8xf32>
    %1417 = vector.broadcast %1416 : vector<1x8xf32> to vector<8x8xf32>
    %1418 = vector.broadcast %1400 : vector<8x1xf32> to vector<8x8xf32>
    %1419 = arith.mulf %1417, %1418 : vector<8x8xf32>
    %1420 = arith.addf %1398, %1419 : vector<8x8xf32>
    %1421 = vector.extract_strided_slice %2 {offsets = [5, 0, 0], sizes = [1, 8, 1], strides = [1, 1, 1]} : vector<8x8x1xf32> to vector<1x8x1xf32>
    %1422 = vector.shape_cast %1421 : vector<1x8x1xf32> to vector<8x1xf32>
    %1423 = vector.extract_strided_slice %3 {offsets = [5, 0, 0], sizes = [1, 8, 1], strides = [1, 1, 1]} : vector<8x8x1xf32> to vector<1x8x1xf32>
    %1424 = vector.shape_cast %1423 : vector<1x8x1xf32> to vector<8x1xf32>
    %1425 = vector.extract_strided_slice %1308 {offsets = [5, 0], sizes = [1, 8], strides = [1, 1]} : vector<8x8xf32> to vector<1x8xf32>
    %1426 = vector.broadcast %1424 : vector<8x1xf32> to vector<8x8xf32>
    %1427 = vector.broadcast %1425 : vector<1x8xf32> to vector<8x8xf32>
    %1428 = arith.mulf %1426, %1427 : vector<8x8xf32>
    %1429 = arith.addf %1407, %1428 : vector<8x8xf32>
    %1430 = vector.extract_strided_slice %1283 {offsets = [5, 0], sizes = [1, 8], strides = [1, 1]} : vector<8x8xf32> to vector<1x8xf32>
    %1431 = vector.broadcast %1422 : vector<8x1xf32> to vector<8x8xf32>
    %1432 = vector.broadcast %1430 : vector<1x8xf32> to vector<8x8xf32>
    %1433 = arith.addf %1431, %1432 : vector<8x8xf32>
    %1434 = arith.cmpf ogt, %1433, %1413 : vector<8x8xf32>
    %1435 = arith.select %1434, %1433, %1413 : vector<8x8xi1>, vector<8x8xf32>
    %c5_i32_129 = arith.constant 5 : i32
    %1436 = vector.broadcast %c5_i32_129 : i32 to vector<8x8xi32>
    %1437 = arith.select %1434, %1436, %1415 : vector<8x8xi1>, vector<8x8xi32>
    %1438 = vector.extract_strided_slice %1099 {offsets = [5, 0], sizes = [1, 8], strides = [1, 1]} : vector<8x8xf32> to vector<1x8xf32>
    %1439 = vector.broadcast %1438 : vector<1x8xf32> to vector<8x8xf32>
    %1440 = vector.broadcast %1422 : vector<8x1xf32> to vector<8x8xf32>
    %1441 = arith.mulf %1439, %1440 : vector<8x8xf32>
    %1442 = arith.addf %1420, %1441 : vector<8x8xf32>
    %1443 = vector.extract_strided_slice %2 {offsets = [6, 0, 0], sizes = [1, 8, 1], strides = [1, 1, 1]} : vector<8x8x1xf32> to vector<1x8x1xf32>
    %1444 = vector.shape_cast %1443 : vector<1x8x1xf32> to vector<8x1xf32>
    %1445 = vector.extract_strided_slice %3 {offsets = [6, 0, 0], sizes = [1, 8, 1], strides = [1, 1, 1]} : vector<8x8x1xf32> to vector<1x8x1xf32>
    %1446 = vector.shape_cast %1445 : vector<1x8x1xf32> to vector<8x1xf32>
    %1447 = vector.extract_strided_slice %1308 {offsets = [6, 0], sizes = [1, 8], strides = [1, 1]} : vector<8x8xf32> to vector<1x8xf32>
    %1448 = vector.broadcast %1446 : vector<8x1xf32> to vector<8x8xf32>
    %1449 = vector.broadcast %1447 : vector<1x8xf32> to vector<8x8xf32>
    %1450 = arith.mulf %1448, %1449 : vector<8x8xf32>
    %1451 = arith.addf %1429, %1450 : vector<8x8xf32>
    %1452 = vector.extract_strided_slice %1283 {offsets = [6, 0], sizes = [1, 8], strides = [1, 1]} : vector<8x8xf32> to vector<1x8xf32>
    %1453 = vector.broadcast %1444 : vector<8x1xf32> to vector<8x8xf32>
    %1454 = vector.broadcast %1452 : vector<1x8xf32> to vector<8x8xf32>
    %1455 = arith.addf %1453, %1454 : vector<8x8xf32>
    %1456 = arith.cmpf ogt, %1455, %1435 : vector<8x8xf32>
    %1457 = arith.select %1456, %1455, %1435 : vector<8x8xi1>, vector<8x8xf32>
    %c6_i32_130 = arith.constant 6 : i32
    %1458 = vector.broadcast %c6_i32_130 : i32 to vector<8x8xi32>
    %1459 = arith.select %1456, %1458, %1437 : vector<8x8xi1>, vector<8x8xi32>
    %1460 = vector.extract_strided_slice %1099 {offsets = [6, 0], sizes = [1, 8], strides = [1, 1]} : vector<8x8xf32> to vector<1x8xf32>
    %1461 = vector.broadcast %1460 : vector<1x8xf32> to vector<8x8xf32>
    %1462 = vector.broadcast %1444 : vector<8x1xf32> to vector<8x8xf32>
    %1463 = arith.mulf %1461, %1462 : vector<8x8xf32>
    %1464 = arith.addf %1442, %1463 : vector<8x8xf32>
    %1465 = vector.extract_strided_slice %2 {offsets = [7, 0, 0], sizes = [1, 8, 1], strides = [1, 1, 1]} : vector<8x8x1xf32> to vector<1x8x1xf32>
    %1466 = vector.shape_cast %1465 : vector<1x8x1xf32> to vector<8x1xf32>
    %1467 = vector.extract_strided_slice %3 {offsets = [7, 0, 0], sizes = [1, 8, 1], strides = [1, 1, 1]} : vector<8x8x1xf32> to vector<1x8x1xf32>
    %1468 = vector.shape_cast %1467 : vector<1x8x1xf32> to vector<8x1xf32>
    %1469 = vector.extract_strided_slice %1308 {offsets = [7, 0], sizes = [1, 8], strides = [1, 1]} : vector<8x8xf32> to vector<1x8xf32>
    %1470 = vector.broadcast %1468 : vector<8x1xf32> to vector<8x8xf32>
    %1471 = vector.broadcast %1469 : vector<1x8xf32> to vector<8x8xf32>
    %1472 = arith.mulf %1470, %1471 : vector<8x8xf32>
    %1473 = arith.addf %1451, %1472 : vector<8x8xf32>
    %1474 = vector.extract_strided_slice %1283 {offsets = [7, 0], sizes = [1, 8], strides = [1, 1]} : vector<8x8xf32> to vector<1x8xf32>
    %1475 = vector.broadcast %1466 : vector<8x1xf32> to vector<8x8xf32>
    %1476 = vector.broadcast %1474 : vector<1x8xf32> to vector<8x8xf32>
    %1477 = arith.addf %1475, %1476 : vector<8x8xf32>
    %1478 = arith.cmpf ogt, %1477, %1457 : vector<8x8xf32>
    %1479 = arith.select %1478, %1477, %1457 : vector<8x8xi1>, vector<8x8xf32>
    %c7_i32_131 = arith.constant 7 : i32
    %1480 = vector.broadcast %c7_i32_131 : i32 to vector<8x8xi32>
    %1481 = arith.select %1478, %1480, %1459 : vector<8x8xi1>, vector<8x8xi32>
    %1482 = vector.extract_strided_slice %1099 {offsets = [7, 0], sizes = [1, 8], strides = [1, 1]} : vector<8x8xf32> to vector<1x8xf32>
    %1483 = vector.broadcast %1482 : vector<1x8xf32> to vector<8x8xf32>
    %1484 = vector.broadcast %1466 : vector<8x1xf32> to vector<8x8xf32>
    %1485 = arith.mulf %1483, %1484 : vector<8x8xf32>
    %1486 = arith.addf %1464, %1485 : vector<8x8xf32>
    %1487 = vector.broadcast %1305 : vector<1x8xf32> to vector<8x8xf32>
    %1488 = arith.addf %1300, %1487 : vector<8x8xf32>
    %1489 = math.log %1473 : vector<8x8xf32>
    %1490 = arith.addf %1488, %1489 : vector<8x8xf32>
    %1491 = vector.shape_cast %1303 : vector<1x8xi1> to vector<1x8xi1>
    %1492 = vector.broadcast %1491 : vector<1x8xi1> to vector<8x8xi1>
    %1493 = arith.select %1492, %1490, %1279 : vector<8x8xi1>, vector<8x8xf32>
    %1494 = arith.addf %1300, %1479 : vector<8x8xf32>
    %1495 = vector.shape_cast %1303 : vector<1x8xi1> to vector<1x8xi1>
    %1496 = vector.broadcast %1495 : vector<1x8xi1> to vector<8x8xi1>
    %1497 = arith.select %1496, %1494, %1283 : vector<8x8xi1>, vector<8x8xf32>
    %1498 = vector.shape_cast %1303 : vector<1x8xi1> to vector<1x8xi1>
    %1499 = vector.broadcast %1498 : vector<1x8xi1> to vector<8x8xi1>
    %1500 = arith.select %1499, %1481, %4 : vector<8x8xi1>, vector<8x8xi32>
    %c7_132 = arith.constant 7 : index
    %c0_133 = arith.constant 0 : index
    %c0_134 = arith.constant 0 : index
    %1501 = vector.load %arg9[%c7_132, %c0_133, %c0_134] : memref<10x8x8xi32, #tpu.memory_space<vmem>>, vector<1x8x8xi32>
    %1502 = vector.shape_cast %1501 : vector<1x8x8xi32> to vector<8x8xi32>
    %1503 = vector.shape_cast %1500 : vector<8x8xi32> to vector<1x8x8xi32>
    tpu.vector_store %arg9[%c7_132, %c0_133, %c0_134], %1503 {strides = array<i32>} : memref<10x8x8xi32, #tpu.memory_space<vmem>>, vector<1x8x8xi32>,
    %1504 = arith.sitofp %1301 : vector<1x8xi32> to vector<1x8xf32>
    %1505 = vector.broadcast %1504 : vector<1x8xf32> to vector<8x8xf32>
    %1506 = arith.mulf %1505, %1313 : vector<8x8xf32>
    %1507 = arith.addf %1486, %1300 : vector<8x8xf32>
    %1508 = arith.mulf %1506, %1507 : vector<8x8xf32>
    %1509 = arith.addf %1295, %1508 : vector<8x8xf32>
    %1510 = vector.shape_cast %1303 : vector<1x8xi1> to vector<1x8xi1>
    %1511 = vector.broadcast %1510 : vector<1x8xi1> to vector<8x8xi1>
    %1512 = arith.select %1511, %1313, %1298 : vector<8x8xi1>, vector<8x8xf32>
    %c8 = arith.constant 8 : index
    %c0_135 = arith.constant 0 : index
    %c0_136 = arith.constant 0 : index
    %1513 = vector.load %arg1[%c8, %c0_135, %c0_136] : memref<10x8x8xf32, #tpu.memory_space<vmem>>, vector<1x8x8xf32>
    %1514 = vector.shape_cast %1513 : vector<1x8x8xf32> to vector<8x8xf32>
    %c8_137 = arith.constant 8 : index
    %c0_138 = arith.constant 0 : index
    %1515 = vector.load %arg2[%c8_137, %c0_138] : memref<10x8xi32, #tpu.memory_space<vmem>>, vector<1x8xi32>
    %c1_i32_139 = arith.constant 1 : i32
    %1516 = vector.broadcast %c1_i32_139 : i32 to vector<1x8xi32>
    %1517 = arith.cmpi eq, %1515, %1516 : vector<1x8xi32>
    %cst_140 = arith.constant dense<0xFF800000> : vector<8xf32>
    %1518 = vector.multi_reduction <maximumf>, %1493, %cst_140 [0] : vector<8x8xf32> to vector<8xf32>
    %1519 = vector.shape_cast %1518 : vector<8xf32> to vector<1x8xf32>
    %1520 = vector.broadcast %1519 : vector<1x8xf32> to vector<8x8xf32>
    %1521 = arith.subf %1493, %1520 : vector<8x8xf32>
    %1522 = math.exp %1521 : vector<8x8xf32>
    %c8_141 = arith.constant 8 : index
    %c0_142 = arith.constant 0 : index
    %1523 = vector.load %arg3[%c8_141, %c0_142] : memref<10x8xi32, #tpu.memory_space<vmem>>, vector<1x8xi32>
    %1524 = vector.broadcast %1523 : vector<1x8xi32> to vector<8x8xi32>
    %1525 = arith.cmpi eq, %4, %1524 : vector<8x8xi32>
    %1526 = arith.extui %1525 : vector<8x8xi1> to vector<8x8xi32>
    %1527 = arith.sitofp %1526 : vector<8x8xi32> to vector<8x8xf32>
    %1528 = vector.extract_strided_slice %3 {offsets = [0, 0, 0], sizes = [1, 8, 1], strides = [1, 1, 1]} : vector<8x8x1xf32> to vector<1x8x1xf32>
    %1529 = vector.shape_cast %1528 : vector<1x8x1xf32> to vector<8x1xf32>
    %1530 = vector.extract_strided_slice %1522 {offsets = [0, 0], sizes = [1, 8], strides = [1, 1]} : vector<8x8xf32> to vector<1x8xf32>
    %1531 = vector.broadcast %1529 : vector<8x1xf32> to vector<8x8xf32>
    %1532 = vector.broadcast %1530 : vector<1x8xf32> to vector<8x8xf32>
    %1533 = arith.mulf %1531, %1532 : vector<8x8xf32>
    %1534 = vector.extract_strided_slice %2 {offsets = [0, 0, 0], sizes = [1, 8, 1], strides = [1, 1, 1]} : vector<8x8x1xf32> to vector<1x8x1xf32>
    %1535 = vector.shape_cast %1534 : vector<1x8x1xf32> to vector<8x1xf32>
    %1536 = vector.extract_strided_slice %1497 {offsets = [0, 0], sizes = [1, 8], strides = [1, 1]} : vector<8x8xf32> to vector<1x8xf32>
    %1537 = vector.broadcast %1535 : vector<8x1xf32> to vector<8x8xf32>
    %1538 = vector.broadcast %1536 : vector<1x8xf32> to vector<8x8xf32>
    %1539 = arith.addf %1537, %1538 : vector<8x8xf32>
    %c0_i32_143 = arith.constant 0 : i32
    %1540 = vector.broadcast %c0_i32_143 : i32 to vector<8x8xi32>
    %1541 = vector.extract_strided_slice %1313 {offsets = [0, 0], sizes = [1, 8], strides = [1, 1]} : vector<8x8xf32> to vector<1x8xf32>
    %1542 = vector.extract_strided_slice %2 {offsets = [0, 0, 0], sizes = [1, 8, 1], strides = [1, 1, 1]} : vector<8x8x1xf32> to vector<1x8x1xf32>
    %1543 = vector.shape_cast %1542 : vector<1x8x1xf32> to vector<8x1xf32>
    %1544 = vector.broadcast %1541 : vector<1x8xf32> to vector<8x8xf32>
    %1545 = vector.broadcast %1543 : vector<8x1xf32> to vector<8x8xf32>
    %1546 = arith.mulf %1544, %1545 : vector<8x8xf32>
    %1547 = vector.extract_strided_slice %2 {offsets = [1, 0, 0], sizes = [1, 8, 1], strides = [1, 1, 1]} : vector<8x8x1xf32> to vector<1x8x1xf32>
    %1548 = vector.shape_cast %1547 : vector<1x8x1xf32> to vector<8x1xf32>
    %1549 = vector.extract_strided_slice %3 {offsets = [1, 0, 0], sizes = [1, 8, 1], strides = [1, 1, 1]} : vector<8x8x1xf32> to vector<1x8x1xf32>
    %1550 = vector.shape_cast %1549 : vector<1x8x1xf32> to vector<8x1xf32>
    %1551 = vector.extract_strided_slice %1522 {offsets = [1, 0], sizes = [1, 8], strides = [1, 1]} : vector<8x8xf32> to vector<1x8xf32>
    %1552 = vector.broadcast %1550 : vector<8x1xf32> to vector<8x8xf32>
    %1553 = vector.broadcast %1551 : vector<1x8xf32> to vector<8x8xf32>
    %1554 = arith.mulf %1552, %1553 : vector<8x8xf32>
    %1555 = arith.addf %1533, %1554 : vector<8x8xf32>
    %1556 = vector.extract_strided_slice %1497 {offsets = [1, 0], sizes = [1, 8], strides = [1, 1]} : vector<8x8xf32> to vector<1x8xf32>
    %1557 = vector.broadcast %1548 : vector<8x1xf32> to vector<8x8xf32>
    %1558 = vector.broadcast %1556 : vector<1x8xf32> to vector<8x8xf32>
    %1559 = arith.addf %1557, %1558 : vector<8x8xf32>
    %1560 = arith.cmpf ogt, %1559, %1539 : vector<8x8xf32>
    %1561 = arith.select %1560, %1559, %1539 : vector<8x8xi1>, vector<8x8xf32>
    %c1_i32_144 = arith.constant 1 : i32
    %1562 = vector.broadcast %c1_i32_144 : i32 to vector<8x8xi32>
    %1563 = arith.select %1560, %1562, %1540 : vector<8x8xi1>, vector<8x8xi32>
    %1564 = vector.extract_strided_slice %1313 {offsets = [1, 0], sizes = [1, 8], strides = [1, 1]} : vector<8x8xf32> to vector<1x8xf32>
    %1565 = vector.broadcast %1564 : vector<1x8xf32> to vector<8x8xf32>
    %1566 = vector.broadcast %1548 : vector<8x1xf32> to vector<8x8xf32>
    %1567 = arith.mulf %1565, %1566 : vector<8x8xf32>
    %1568 = arith.addf %1546, %1567 : vector<8x8xf32>
    %1569 = vector.extract_strided_slice %2 {offsets = [2, 0, 0], sizes = [1, 8, 1], strides = [1, 1, 1]} : vector<8x8x1xf32> to vector<1x8x1xf32>
    %1570 = vector.shape_cast %1569 : vector<1x8x1xf32> to vector<8x1xf32>
    %1571 = vector.extract_strided_slice %3 {offsets = [2, 0, 0], sizes = [1, 8, 1], strides = [1, 1, 1]} : vector<8x8x1xf32> to vector<1x8x1xf32>
    %1572 = vector.shape_cast %1571 : vector<1x8x1xf32> to vector<8x1xf32>
    %1573 = vector.extract_strided_slice %1522 {offsets = [2, 0], sizes = [1, 8], strides = [1, 1]} : vector<8x8xf32> to vector<1x8xf32>
    %1574 = vector.broadcast %1572 : vector<8x1xf32> to vector<8x8xf32>
    %1575 = vector.broadcast %1573 : vector<1x8xf32> to vector<8x8xf32>
    %1576 = arith.mulf %1574, %1575 : vector<8x8xf32>
    %1577 = arith.addf %1555, %1576 : vector<8x8xf32>
    %1578 = vector.extract_strided_slice %1497 {offsets = [2, 0], sizes = [1, 8], strides = [1, 1]} : vector<8x8xf32> to vector<1x8xf32>
    %1579 = vector.broadcast %1570 : vector<8x1xf32> to vector<8x8xf32>
    %1580 = vector.broadcast %1578 : vector<1x8xf32> to vector<8x8xf32>
    %1581 = arith.addf %1579, %1580 : vector<8x8xf32>
    %1582 = arith.cmpf ogt, %1581, %1561 : vector<8x8xf32>
    %1583 = arith.select %1582, %1581, %1561 : vector<8x8xi1>, vector<8x8xf32>
    %c2_i32_145 = arith.constant 2 : i32
    %1584 = vector.broadcast %c2_i32_145 : i32 to vector<8x8xi32>
    %1585 = arith.select %1582, %1584, %1563 : vector<8x8xi1>, vector<8x8xi32>
    %1586 = vector.extract_strided_slice %1313 {offsets = [2, 0], sizes = [1, 8], strides = [1, 1]} : vector<8x8xf32> to vector<1x8xf32>
    %1587 = vector.broadcast %1586 : vector<1x8xf32> to vector<8x8xf32>
    %1588 = vector.broadcast %1570 : vector<8x1xf32> to vector<8x8xf32>
    %1589 = arith.mulf %1587, %1588 : vector<8x8xf32>
    %1590 = arith.addf %1568, %1589 : vector<8x8xf32>
    %1591 = vector.extract_strided_slice %2 {offsets = [3, 0, 0], sizes = [1, 8, 1], strides = [1, 1, 1]} : vector<8x8x1xf32> to vector<1x8x1xf32>
    %1592 = vector.shape_cast %1591 : vector<1x8x1xf32> to vector<8x1xf32>
    %1593 = vector.extract_strided_slice %3 {offsets = [3, 0, 0], sizes = [1, 8, 1], strides = [1, 1, 1]} : vector<8x8x1xf32> to vector<1x8x1xf32>
    %1594 = vector.shape_cast %1593 : vector<1x8x1xf32> to vector<8x1xf32>
    %1595 = vector.extract_strided_slice %1522 {offsets = [3, 0], sizes = [1, 8], strides = [1, 1]} : vector<8x8xf32> to vector<1x8xf32>
    %1596 = vector.broadcast %1594 : vector<8x1xf32> to vector<8x8xf32>
    %1597 = vector.broadcast %1595 : vector<1x8xf32> to vector<8x8xf32>
    %1598 = arith.mulf %1596, %1597 : vector<8x8xf32>
    %1599 = arith.addf %1577, %1598 : vector<8x8xf32>
    %1600 = vector.extract_strided_slice %1497 {offsets = [3, 0], sizes = [1, 8], strides = [1, 1]} : vector<8x8xf32> to vector<1x8xf32>
    %1601 = vector.broadcast %1592 : vector<8x1xf32> to vector<8x8xf32>
    %1602 = vector.broadcast %1600 : vector<1x8xf32> to vector<8x8xf32>
    %1603 = arith.addf %1601, %1602 : vector<8x8xf32>
    %1604 = arith.cmpf ogt, %1603, %1583 : vector<8x8xf32>
    %1605 = arith.select %1604, %1603, %1583 : vector<8x8xi1>, vector<8x8xf32>
    %c3_i32_146 = arith.constant 3 : i32
    %1606 = vector.broadcast %c3_i32_146 : i32 to vector<8x8xi32>
    %1607 = arith.select %1604, %1606, %1585 : vector<8x8xi1>, vector<8x8xi32>
    %1608 = vector.extract_strided_slice %1313 {offsets = [3, 0], sizes = [1, 8], strides = [1, 1]} : vector<8x8xf32> to vector<1x8xf32>
    %1609 = vector.broadcast %1608 : vector<1x8xf32> to vector<8x8xf32>
    %1610 = vector.broadcast %1592 : vector<8x1xf32> to vector<8x8xf32>
    %1611 = arith.mulf %1609, %1610 : vector<8x8xf32>
    %1612 = arith.addf %1590, %1611 : vector<8x8xf32>
    %1613 = vector.extract_strided_slice %2 {offsets = [4, 0, 0], sizes = [1, 8, 1], strides = [1, 1, 1]} : vector<8x8x1xf32> to vector<1x8x1xf32>
    %1614 = vector.shape_cast %1613 : vector<1x8x1xf32> to vector<8x1xf32>
    %1615 = vector.extract_strided_slice %3 {offsets = [4, 0, 0], sizes = [1, 8, 1], strides = [1, 1, 1]} : vector<8x8x1xf32> to vector<1x8x1xf32>
    %1616 = vector.shape_cast %1615 : vector<1x8x1xf32> to vector<8x1xf32>
    %1617 = vector.extract_strided_slice %1522 {offsets = [4, 0], sizes = [1, 8], strides = [1, 1]} : vector<8x8xf32> to vector<1x8xf32>
    %1618 = vector.broadcast %1616 : vector<8x1xf32> to vector<8x8xf32>
    %1619 = vector.broadcast %1617 : vector<1x8xf32> to vector<8x8xf32>
    %1620 = arith.mulf %1618, %1619 : vector<8x8xf32>
    %1621 = arith.addf %1599, %1620 : vector<8x8xf32>
    %1622 = vector.extract_strided_slice %1497 {offsets = [4, 0], sizes = [1, 8], strides = [1, 1]} : vector<8x8xf32> to vector<1x8xf32>
    %1623 = vector.broadcast %1614 : vector<8x1xf32> to vector<8x8xf32>
    %1624 = vector.broadcast %1622 : vector<1x8xf32> to vector<8x8xf32>
    %1625 = arith.addf %1623, %1624 : vector<8x8xf32>
    %1626 = arith.cmpf ogt, %1625, %1605 : vector<8x8xf32>
    %1627 = arith.select %1626, %1625, %1605 : vector<8x8xi1>, vector<8x8xf32>
    %c4_i32_147 = arith.constant 4 : i32
    %1628 = vector.broadcast %c4_i32_147 : i32 to vector<8x8xi32>
    %1629 = arith.select %1626, %1628, %1607 : vector<8x8xi1>, vector<8x8xi32>
    %1630 = vector.extract_strided_slice %1313 {offsets = [4, 0], sizes = [1, 8], strides = [1, 1]} : vector<8x8xf32> to vector<1x8xf32>
    %1631 = vector.broadcast %1630 : vector<1x8xf32> to vector<8x8xf32>
    %1632 = vector.broadcast %1614 : vector<8x1xf32> to vector<8x8xf32>
    %1633 = arith.mulf %1631, %1632 : vector<8x8xf32>
    %1634 = arith.addf %1612, %1633 : vector<8x8xf32>
    %1635 = vector.extract_strided_slice %2 {offsets = [5, 0, 0], sizes = [1, 8, 1], strides = [1, 1, 1]} : vector<8x8x1xf32> to vector<1x8x1xf32>
    %1636 = vector.shape_cast %1635 : vector<1x8x1xf32> to vector<8x1xf32>
    %1637 = vector.extract_strided_slice %3 {offsets = [5, 0, 0], sizes = [1, 8, 1], strides = [1, 1, 1]} : vector<8x8x1xf32> to vector<1x8x1xf32>
    %1638 = vector.shape_cast %1637 : vector<1x8x1xf32> to vector<8x1xf32>
    %1639 = vector.extract_strided_slice %1522 {offsets = [5, 0], sizes = [1, 8], strides = [1, 1]} : vector<8x8xf32> to vector<1x8xf32>
    %1640 = vector.broadcast %1638 : vector<8x1xf32> to vector<8x8xf32>
    %1641 = vector.broadcast %1639 : vector<1x8xf32> to vector<8x8xf32>
    %1642 = arith.mulf %1640, %1641 : vector<8x8xf32>
    %1643 = arith.addf %1621, %1642 : vector<8x8xf32>
    %1644 = vector.extract_strided_slice %1497 {offsets = [5, 0], sizes = [1, 8], strides = [1, 1]} : vector<8x8xf32> to vector<1x8xf32>
    %1645 = vector.broadcast %1636 : vector<8x1xf32> to vector<8x8xf32>
    %1646 = vector.broadcast %1644 : vector<1x8xf32> to vector<8x8xf32>
    %1647 = arith.addf %1645, %1646 : vector<8x8xf32>
    %1648 = arith.cmpf ogt, %1647, %1627 : vector<8x8xf32>
    %1649 = arith.select %1648, %1647, %1627 : vector<8x8xi1>, vector<8x8xf32>
    %c5_i32_148 = arith.constant 5 : i32
    %1650 = vector.broadcast %c5_i32_148 : i32 to vector<8x8xi32>
    %1651 = arith.select %1648, %1650, %1629 : vector<8x8xi1>, vector<8x8xi32>
    %1652 = vector.extract_strided_slice %1313 {offsets = [5, 0], sizes = [1, 8], strides = [1, 1]} : vector<8x8xf32> to vector<1x8xf32>
    %1653 = vector.broadcast %1652 : vector<1x8xf32> to vector<8x8xf32>
    %1654 = vector.broadcast %1636 : vector<8x1xf32> to vector<8x8xf32>
    %1655 = arith.mulf %1653, %1654 : vector<8x8xf32>
    %1656 = arith.addf %1634, %1655 : vector<8x8xf32>
    %1657 = vector.extract_strided_slice %2 {offsets = [6, 0, 0], sizes = [1, 8, 1], strides = [1, 1, 1]} : vector<8x8x1xf32> to vector<1x8x1xf32>
    %1658 = vector.shape_cast %1657 : vector<1x8x1xf32> to vector<8x1xf32>
    %1659 = vector.extract_strided_slice %3 {offsets = [6, 0, 0], sizes = [1, 8, 1], strides = [1, 1, 1]} : vector<8x8x1xf32> to vector<1x8x1xf32>
    %1660 = vector.shape_cast %1659 : vector<1x8x1xf32> to vector<8x1xf32>
    %1661 = vector.extract_strided_slice %1522 {offsets = [6, 0], sizes = [1, 8], strides = [1, 1]} : vector<8x8xf32> to vector<1x8xf32>
    %1662 = vector.broadcast %1660 : vector<8x1xf32> to vector<8x8xf32>
    %1663 = vector.broadcast %1661 : vector<1x8xf32> to vector<8x8xf32>
    %1664 = arith.mulf %1662, %1663 : vector<8x8xf32>
    %1665 = arith.addf %1643, %1664 : vector<8x8xf32>
    %1666 = vector.extract_strided_slice %1497 {offsets = [6, 0], sizes = [1, 8], strides = [1, 1]} : vector<8x8xf32> to vector<1x8xf32>
    %1667 = vector.broadcast %1658 : vector<8x1xf32> to vector<8x8xf32>
    %1668 = vector.broadcast %1666 : vector<1x8xf32> to vector<8x8xf32>
    %1669 = arith.addf %1667, %1668 : vector<8x8xf32>
    %1670 = arith.cmpf ogt, %1669, %1649 : vector<8x8xf32>
    %1671 = arith.select %1670, %1669, %1649 : vector<8x8xi1>, vector<8x8xf32>
    %c6_i32_149 = arith.constant 6 : i32
    %1672 = vector.broadcast %c6_i32_149 : i32 to vector<8x8xi32>
    %1673 = arith.select %1670, %1672, %1651 : vector<8x8xi1>, vector<8x8xi32>
    %1674 = vector.extract_strided_slice %1313 {offsets = [6, 0], sizes = [1, 8], strides = [1, 1]} : vector<8x8xf32> to vector<1x8xf32>
    %1675 = vector.broadcast %1674 : vector<1x8xf32> to vector<8x8xf32>
    %1676 = vector.broadcast %1658 : vector<8x1xf32> to vector<8x8xf32>
    %1677 = arith.mulf %1675, %1676 : vector<8x8xf32>
    %1678 = arith.addf %1656, %1677 : vector<8x8xf32>
    %1679 = vector.extract_strided_slice %2 {offsets = [7, 0, 0], sizes = [1, 8, 1], strides = [1, 1, 1]} : vector<8x8x1xf32> to vector<1x8x1xf32>
    %1680 = vector.shape_cast %1679 : vector<1x8x1xf32> to vector<8x1xf32>
    %1681 = vector.extract_strided_slice %3 {offsets = [7, 0, 0], sizes = [1, 8, 1], strides = [1, 1, 1]} : vector<8x8x1xf32> to vector<1x8x1xf32>
    %1682 = vector.shape_cast %1681 : vector<1x8x1xf32> to vector<8x1xf32>
    %1683 = vector.extract_strided_slice %1522 {offsets = [7, 0], sizes = [1, 8], strides = [1, 1]} : vector<8x8xf32> to vector<1x8xf32>
    %1684 = vector.broadcast %1682 : vector<8x1xf32> to vector<8x8xf32>
    %1685 = vector.broadcast %1683 : vector<1x8xf32> to vector<8x8xf32>
    %1686 = arith.mulf %1684, %1685 : vector<8x8xf32>
    %1687 = arith.addf %1665, %1686 : vector<8x8xf32>
    %1688 = vector.extract_strided_slice %1497 {offsets = [7, 0], sizes = [1, 8], strides = [1, 1]} : vector<8x8xf32> to vector<1x8xf32>
    %1689 = vector.broadcast %1680 : vector<8x1xf32> to vector<8x8xf32>
    %1690 = vector.broadcast %1688 : vector<1x8xf32> to vector<8x8xf32>
    %1691 = arith.addf %1689, %1690 : vector<8x8xf32>
    %1692 = arith.cmpf ogt, %1691, %1671 : vector<8x8xf32>
    %1693 = arith.select %1692, %1691, %1671 : vector<8x8xi1>, vector<8x8xf32>
    %c7_i32_150 = arith.constant 7 : i32
    %1694 = vector.broadcast %c7_i32_150 : i32 to vector<8x8xi32>
    %1695 = arith.select %1692, %1694, %1673 : vector<8x8xi1>, vector<8x8xi32>
    %1696 = vector.extract_strided_slice %1313 {offsets = [7, 0], sizes = [1, 8], strides = [1, 1]} : vector<8x8xf32> to vector<1x8xf32>
    %1697 = vector.broadcast %1696 : vector<1x8xf32> to vector<8x8xf32>
    %1698 = vector.broadcast %1680 : vector<8x1xf32> to vector<8x8xf32>
    %1699 = arith.mulf %1697, %1698 : vector<8x8xf32>
    %1700 = arith.addf %1678, %1699 : vector<8x8xf32>
    %1701 = vector.broadcast %1519 : vector<1x8xf32> to vector<8x8xf32>
    %1702 = arith.addf %1514, %1701 : vector<8x8xf32>
    %1703 = math.log %1687 : vector<8x8xf32>
    %1704 = arith.addf %1702, %1703 : vector<8x8xf32>
    %1705 = vector.shape_cast %1517 : vector<1x8xi1> to vector<1x8xi1>
    %1706 = vector.broadcast %1705 : vector<1x8xi1> to vector<8x8xi1>
    %1707 = arith.select %1706, %1704, %1493 : vector<8x8xi1>, vector<8x8xf32>
    %1708 = arith.addf %1514, %1693 : vector<8x8xf32>
    %1709 = vector.shape_cast %1517 : vector<1x8xi1> to vector<1x8xi1>
    %1710 = vector.broadcast %1709 : vector<1x8xi1> to vector<8x8xi1>
    %1711 = arith.select %1710, %1708, %1497 : vector<8x8xi1>, vector<8x8xf32>
    %1712 = vector.shape_cast %1517 : vector<1x8xi1> to vector<1x8xi1>
    %1713 = vector.broadcast %1712 : vector<1x8xi1> to vector<8x8xi1>
    %1714 = arith.select %1713, %1695, %4 : vector<8x8xi1>, vector<8x8xi32>
    %c8_151 = arith.constant 8 : index
    %c0_152 = arith.constant 0 : index
    %c0_153 = arith.constant 0 : index
    %1715 = vector.load %arg9[%c8_151, %c0_152, %c0_153] : memref<10x8x8xi32, #tpu.memory_space<vmem>>, vector<1x8x8xi32>
    %1716 = vector.shape_cast %1715 : vector<1x8x8xi32> to vector<8x8xi32>
    %1717 = vector.shape_cast %1714 : vector<8x8xi32> to vector<1x8x8xi32>
    tpu.vector_store %arg9[%c8_151, %c0_152, %c0_153], %1717 {strides = array<i32>} : memref<10x8x8xi32, #tpu.memory_space<vmem>>, vector<1x8x8xi32>,
    %1718 = arith.sitofp %1515 : vector<1x8xi32> to vector<1x8xf32>
    %1719 = vector.broadcast %1718 : vector<1x8xf32> to vector<8x8xf32>
    %1720 = arith.mulf %1719, %1527 : vector<8x8xf32>
    %1721 = arith.addf %1700, %1514 : vector<8x8xf32>
    %1722 = arith.mulf %1720, %1721 : vector<8x8xf32>
    %1723 = arith.addf %1509, %1722 : vector<8x8xf32>
    %1724 = vector.shape_cast %1517 : vector<1x8xi1> to vector<1x8xi1>
    %1725 = vector.broadcast %1724 : vector<1x8xi1> to vector<8x8xi1>
    %1726 = arith.select %1725, %1527, %1512 : vector<8x8xi1>, vector<8x8xf32>
    %c9 = arith.constant 9 : index
    %c0_154 = arith.constant 0 : index
    %c0_155 = arith.constant 0 : index
    %1727 = vector.load %arg1[%c9, %c0_154, %c0_155] : memref<10x8x8xf32, #tpu.memory_space<vmem>>, vector<1x8x8xf32>
    %1728 = vector.shape_cast %1727 : vector<1x8x8xf32> to vector<8x8xf32>
    %c9_156 = arith.constant 9 : index
    %c0_157 = arith.constant 0 : index
    %1729 = vector.load %arg2[%c9_156, %c0_157] : memref<10x8xi32, #tpu.memory_space<vmem>>, vector<1x8xi32>
    %c1_i32_158 = arith.constant 1 : i32
    %1730 = vector.broadcast %c1_i32_158 : i32 to vector<1x8xi32>
    %1731 = arith.cmpi eq, %1729, %1730 : vector<1x8xi32>
    %cst_159 = arith.constant dense<0xFF800000> : vector<8xf32>
    %1732 = vector.multi_reduction <maximumf>, %1707, %cst_159 [0] : vector<8x8xf32> to vector<8xf32>
    %1733 = vector.shape_cast %1732 : vector<8xf32> to vector<1x8xf32>
    %1734 = vector.broadcast %1733 : vector<1x8xf32> to vector<8x8xf32>
    %1735 = arith.subf %1707, %1734 : vector<8x8xf32>
    %1736 = math.exp %1735 : vector<8x8xf32>
    %c9_160 = arith.constant 9 : index
    %c0_161 = arith.constant 0 : index
    %1737 = vector.load %arg3[%c9_160, %c0_161] : memref<10x8xi32, #tpu.memory_space<vmem>>, vector<1x8xi32>
    %1738 = vector.broadcast %1737 : vector<1x8xi32> to vector<8x8xi32>
    %1739 = arith.cmpi eq, %4, %1738 : vector<8x8xi32>
    %1740 = arith.extui %1739 : vector<8x8xi1> to vector<8x8xi32>
    %1741 = arith.sitofp %1740 : vector<8x8xi32> to vector<8x8xf32>
    %1742 = vector.extract_strided_slice %3 {offsets = [0, 0, 0], sizes = [1, 8, 1], strides = [1, 1, 1]} : vector<8x8x1xf32> to vector<1x8x1xf32>
    %1743 = vector.shape_cast %1742 : vector<1x8x1xf32> to vector<8x1xf32>
    %1744 = vector.extract_strided_slice %1736 {offsets = [0, 0], sizes = [1, 8], strides = [1, 1]} : vector<8x8xf32> to vector<1x8xf32>
    %1745 = vector.broadcast %1743 : vector<8x1xf32> to vector<8x8xf32>
    %1746 = vector.broadcast %1744 : vector<1x8xf32> to vector<8x8xf32>
    %1747 = arith.mulf %1745, %1746 : vector<8x8xf32>
    %1748 = vector.extract_strided_slice %2 {offsets = [0, 0, 0], sizes = [1, 8, 1], strides = [1, 1, 1]} : vector<8x8x1xf32> to vector<1x8x1xf32>
    %1749 = vector.shape_cast %1748 : vector<1x8x1xf32> to vector<8x1xf32>
    %1750 = vector.extract_strided_slice %1711 {offsets = [0, 0], sizes = [1, 8], strides = [1, 1]} : vector<8x8xf32> to vector<1x8xf32>
    %1751 = vector.broadcast %1749 : vector<8x1xf32> to vector<8x8xf32>
    %1752 = vector.broadcast %1750 : vector<1x8xf32> to vector<8x8xf32>
    %1753 = arith.addf %1751, %1752 : vector<8x8xf32>
    %c0_i32_162 = arith.constant 0 : i32
    %1754 = vector.broadcast %c0_i32_162 : i32 to vector<8x8xi32>
    %1755 = vector.extract_strided_slice %1527 {offsets = [0, 0], sizes = [1, 8], strides = [1, 1]} : vector<8x8xf32> to vector<1x8xf32>
    %1756 = vector.extract_strided_slice %2 {offsets = [0, 0, 0], sizes = [1, 8, 1], strides = [1, 1, 1]} : vector<8x8x1xf32> to vector<1x8x1xf32>
    %1757 = vector.shape_cast %1756 : vector<1x8x1xf32> to vector<8x1xf32>
    %1758 = vector.broadcast %1755 : vector<1x8xf32> to vector<8x8xf32>
    %1759 = vector.broadcast %1757 : vector<8x1xf32> to vector<8x8xf32>
    %1760 = arith.mulf %1758, %1759 : vector<8x8xf32>
    %1761 = vector.extract_strided_slice %2 {offsets = [1, 0, 0], sizes = [1, 8, 1], strides = [1, 1, 1]} : vector<8x8x1xf32> to vector<1x8x1xf32>
    %1762 = vector.shape_cast %1761 : vector<1x8x1xf32> to vector<8x1xf32>
    %1763 = vector.extract_strided_slice %3 {offsets = [1, 0, 0], sizes = [1, 8, 1], strides = [1, 1, 1]} : vector<8x8x1xf32> to vector<1x8x1xf32>
    %1764 = vector.shape_cast %1763 : vector<1x8x1xf32> to vector<8x1xf32>
    %1765 = vector.extract_strided_slice %1736 {offsets = [1, 0], sizes = [1, 8], strides = [1, 1]} : vector<8x8xf32> to vector<1x8xf32>
    %1766 = vector.broadcast %1764 : vector<8x1xf32> to vector<8x8xf32>
    %1767 = vector.broadcast %1765 : vector<1x8xf32> to vector<8x8xf32>
    %1768 = arith.mulf %1766, %1767 : vector<8x8xf32>
    %1769 = arith.addf %1747, %1768 : vector<8x8xf32>
    %1770 = vector.extract_strided_slice %1711 {offsets = [1, 0], sizes = [1, 8], strides = [1, 1]} : vector<8x8xf32> to vector<1x8xf32>
    %1771 = vector.broadcast %1762 : vector<8x1xf32> to vector<8x8xf32>
    %1772 = vector.broadcast %1770 : vector<1x8xf32> to vector<8x8xf32>
    %1773 = arith.addf %1771, %1772 : vector<8x8xf32>
    %1774 = arith.cmpf ogt, %1773, %1753 : vector<8x8xf32>
    %1775 = arith.select %1774, %1773, %1753 : vector<8x8xi1>, vector<8x8xf32>
    %c1_i32_163 = arith.constant 1 : i32
    %1776 = vector.broadcast %c1_i32_163 : i32 to vector<8x8xi32>
    %1777 = arith.select %1774, %1776, %1754 : vector<8x8xi1>, vector<8x8xi32>
    %1778 = vector.extract_strided_slice %1527 {offsets = [1, 0], sizes = [1, 8], strides = [1, 1]} : vector<8x8xf32> to vector<1x8xf32>
    %1779 = vector.broadcast %1778 : vector<1x8xf32> to vector<8x8xf32>
    %1780 = vector.broadcast %1762 : vector<8x1xf32> to vector<8x8xf32>
    %1781 = arith.mulf %1779, %1780 : vector<8x8xf32>
    %1782 = arith.addf %1760, %1781 : vector<8x8xf32>
    %1783 = vector.extract_strided_slice %2 {offsets = [2, 0, 0], sizes = [1, 8, 1], strides = [1, 1, 1]} : vector<8x8x1xf32> to vector<1x8x1xf32>
    %1784 = vector.shape_cast %1783 : vector<1x8x1xf32> to vector<8x1xf32>
    %1785 = vector.extract_strided_slice %3 {offsets = [2, 0, 0], sizes = [1, 8, 1], strides = [1, 1, 1]} : vector<8x8x1xf32> to vector<1x8x1xf32>
    %1786 = vector.shape_cast %1785 : vector<1x8x1xf32> to vector<8x1xf32>
    %1787 = vector.extract_strided_slice %1736 {offsets = [2, 0], sizes = [1, 8], strides = [1, 1]} : vector<8x8xf32> to vector<1x8xf32>
    %1788 = vector.broadcast %1786 : vector<8x1xf32> to vector<8x8xf32>
    %1789 = vector.broadcast %1787 : vector<1x8xf32> to vector<8x8xf32>
    %1790 = arith.mulf %1788, %1789 : vector<8x8xf32>
    %1791 = arith.addf %1769, %1790 : vector<8x8xf32>
    %1792 = vector.extract_strided_slice %1711 {offsets = [2, 0], sizes = [1, 8], strides = [1, 1]} : vector<8x8xf32> to vector<1x8xf32>
    %1793 = vector.broadcast %1784 : vector<8x1xf32> to vector<8x8xf32>
    %1794 = vector.broadcast %1792 : vector<1x8xf32> to vector<8x8xf32>
    %1795 = arith.addf %1793, %1794 : vector<8x8xf32>
    %1796 = arith.cmpf ogt, %1795, %1775 : vector<8x8xf32>
    %1797 = arith.select %1796, %1795, %1775 : vector<8x8xi1>, vector<8x8xf32>
    %c2_i32_164 = arith.constant 2 : i32
    %1798 = vector.broadcast %c2_i32_164 : i32 to vector<8x8xi32>
    %1799 = arith.select %1796, %1798, %1777 : vector<8x8xi1>, vector<8x8xi32>
    %1800 = vector.extract_strided_slice %1527 {offsets = [2, 0], sizes = [1, 8], strides = [1, 1]} : vector<8x8xf32> to vector<1x8xf32>
    %1801 = vector.broadcast %1800 : vector<1x8xf32> to vector<8x8xf32>
    %1802 = vector.broadcast %1784 : vector<8x1xf32> to vector<8x8xf32>
    %1803 = arith.mulf %1801, %1802 : vector<8x8xf32>
    %1804 = arith.addf %1782, %1803 : vector<8x8xf32>
    %1805 = vector.extract_strided_slice %2 {offsets = [3, 0, 0], sizes = [1, 8, 1], strides = [1, 1, 1]} : vector<8x8x1xf32> to vector<1x8x1xf32>
    %1806 = vector.shape_cast %1805 : vector<1x8x1xf32> to vector<8x1xf32>
    %1807 = vector.extract_strided_slice %3 {offsets = [3, 0, 0], sizes = [1, 8, 1], strides = [1, 1, 1]} : vector<8x8x1xf32> to vector<1x8x1xf32>
    %1808 = vector.shape_cast %1807 : vector<1x8x1xf32> to vector<8x1xf32>
    %1809 = vector.extract_strided_slice %1736 {offsets = [3, 0], sizes = [1, 8], strides = [1, 1]} : vector<8x8xf32> to vector<1x8xf32>
    %1810 = vector.broadcast %1808 : vector<8x1xf32> to vector<8x8xf32>
    %1811 = vector.broadcast %1809 : vector<1x8xf32> to vector<8x8xf32>
    %1812 = arith.mulf %1810, %1811 : vector<8x8xf32>
    %1813 = arith.addf %1791, %1812 : vector<8x8xf32>
    %1814 = vector.extract_strided_slice %1711 {offsets = [3, 0], sizes = [1, 8], strides = [1, 1]} : vector<8x8xf32> to vector<1x8xf32>
    %1815 = vector.broadcast %1806 : vector<8x1xf32> to vector<8x8xf32>
    %1816 = vector.broadcast %1814 : vector<1x8xf32> to vector<8x8xf32>
    %1817 = arith.addf %1815, %1816 : vector<8x8xf32>
    %1818 = arith.cmpf ogt, %1817, %1797 : vector<8x8xf32>
    %1819 = arith.select %1818, %1817, %1797 : vector<8x8xi1>, vector<8x8xf32>
    %c3_i32_165 = arith.constant 3 : i32
    %1820 = vector.broadcast %c3_i32_165 : i32 to vector<8x8xi32>
    %1821 = arith.select %1818, %1820, %1799 : vector<8x8xi1>, vector<8x8xi32>
    %1822 = vector.extract_strided_slice %1527 {offsets = [3, 0], sizes = [1, 8], strides = [1, 1]} : vector<8x8xf32> to vector<1x8xf32>
    %1823 = vector.broadcast %1822 : vector<1x8xf32> to vector<8x8xf32>
    %1824 = vector.broadcast %1806 : vector<8x1xf32> to vector<8x8xf32>
    %1825 = arith.mulf %1823, %1824 : vector<8x8xf32>
    %1826 = arith.addf %1804, %1825 : vector<8x8xf32>
    %1827 = vector.extract_strided_slice %2 {offsets = [4, 0, 0], sizes = [1, 8, 1], strides = [1, 1, 1]} : vector<8x8x1xf32> to vector<1x8x1xf32>
    %1828 = vector.shape_cast %1827 : vector<1x8x1xf32> to vector<8x1xf32>
    %1829 = vector.extract_strided_slice %3 {offsets = [4, 0, 0], sizes = [1, 8, 1], strides = [1, 1, 1]} : vector<8x8x1xf32> to vector<1x8x1xf32>
    %1830 = vector.shape_cast %1829 : vector<1x8x1xf32> to vector<8x1xf32>
    %1831 = vector.extract_strided_slice %1736 {offsets = [4, 0], sizes = [1, 8], strides = [1, 1]} : vector<8x8xf32> to vector<1x8xf32>
    %1832 = vector.broadcast %1830 : vector<8x1xf32> to vector<8x8xf32>
    %1833 = vector.broadcast %1831 : vector<1x8xf32> to vector<8x8xf32>
    %1834 = arith.mulf %1832, %1833 : vector<8x8xf32>
    %1835 = arith.addf %1813, %1834 : vector<8x8xf32>
    %1836 = vector.extract_strided_slice %1711 {offsets = [4, 0], sizes = [1, 8], strides = [1, 1]} : vector<8x8xf32> to vector<1x8xf32>
    %1837 = vector.broadcast %1828 : vector<8x1xf32> to vector<8x8xf32>
    %1838 = vector.broadcast %1836 : vector<1x8xf32> to vector<8x8xf32>
    %1839 = arith.addf %1837, %1838 : vector<8x8xf32>
    %1840 = arith.cmpf ogt, %1839, %1819 : vector<8x8xf32>
    %1841 = arith.select %1840, %1839, %1819 : vector<8x8xi1>, vector<8x8xf32>
    %c4_i32_166 = arith.constant 4 : i32
    %1842 = vector.broadcast %c4_i32_166 : i32 to vector<8x8xi32>
    %1843 = arith.select %1840, %1842, %1821 : vector<8x8xi1>, vector<8x8xi32>
    %1844 = vector.extract_strided_slice %1527 {offsets = [4, 0], sizes = [1, 8], strides = [1, 1]} : vector<8x8xf32> to vector<1x8xf32>
    %1845 = vector.broadcast %1844 : vector<1x8xf32> to vector<8x8xf32>
    %1846 = vector.broadcast %1828 : vector<8x1xf32> to vector<8x8xf32>
    %1847 = arith.mulf %1845, %1846 : vector<8x8xf32>
    %1848 = arith.addf %1826, %1847 : vector<8x8xf32>
    %1849 = vector.extract_strided_slice %2 {offsets = [5, 0, 0], sizes = [1, 8, 1], strides = [1, 1, 1]} : vector<8x8x1xf32> to vector<1x8x1xf32>
    %1850 = vector.shape_cast %1849 : vector<1x8x1xf32> to vector<8x1xf32>
    %1851 = vector.extract_strided_slice %3 {offsets = [5, 0, 0], sizes = [1, 8, 1], strides = [1, 1, 1]} : vector<8x8x1xf32> to vector<1x8x1xf32>
    %1852 = vector.shape_cast %1851 : vector<1x8x1xf32> to vector<8x1xf32>
    %1853 = vector.extract_strided_slice %1736 {offsets = [5, 0], sizes = [1, 8], strides = [1, 1]} : vector<8x8xf32> to vector<1x8xf32>
    %1854 = vector.broadcast %1852 : vector<8x1xf32> to vector<8x8xf32>
    %1855 = vector.broadcast %1853 : vector<1x8xf32> to vector<8x8xf32>
    %1856 = arith.mulf %1854, %1855 : vector<8x8xf32>
    %1857 = arith.addf %1835, %1856 : vector<8x8xf32>
    %1858 = vector.extract_strided_slice %1711 {offsets = [5, 0], sizes = [1, 8], strides = [1, 1]} : vector<8x8xf32> to vector<1x8xf32>
    %1859 = vector.broadcast %1850 : vector<8x1xf32> to vector<8x8xf32>
    %1860 = vector.broadcast %1858 : vector<1x8xf32> to vector<8x8xf32>
    %1861 = arith.addf %1859, %1860 : vector<8x8xf32>
    %1862 = arith.cmpf ogt, %1861, %1841 : vector<8x8xf32>
    %1863 = arith.select %1862, %1861, %1841 : vector<8x8xi1>, vector<8x8xf32>
    %c5_i32_167 = arith.constant 5 : i32
    %1864 = vector.broadcast %c5_i32_167 : i32 to vector<8x8xi32>
    %1865 = arith.select %1862, %1864, %1843 : vector<8x8xi1>, vector<8x8xi32>
    %1866 = vector.extract_strided_slice %1527 {offsets = [5, 0], sizes = [1, 8], strides = [1, 1]} : vector<8x8xf32> to vector<1x8xf32>
    %1867 = vector.broadcast %1866 : vector<1x8xf32> to vector<8x8xf32>
    %1868 = vector.broadcast %1850 : vector<8x1xf32> to vector<8x8xf32>
    %1869 = arith.mulf %1867, %1868 : vector<8x8xf32>
    %1870 = arith.addf %1848, %1869 : vector<8x8xf32>
    %1871 = vector.extract_strided_slice %2 {offsets = [6, 0, 0], sizes = [1, 8, 1], strides = [1, 1, 1]} : vector<8x8x1xf32> to vector<1x8x1xf32>
    %1872 = vector.shape_cast %1871 : vector<1x8x1xf32> to vector<8x1xf32>
    %1873 = vector.extract_strided_slice %3 {offsets = [6, 0, 0], sizes = [1, 8, 1], strides = [1, 1, 1]} : vector<8x8x1xf32> to vector<1x8x1xf32>
    %1874 = vector.shape_cast %1873 : vector<1x8x1xf32> to vector<8x1xf32>
    %1875 = vector.extract_strided_slice %1736 {offsets = [6, 0], sizes = [1, 8], strides = [1, 1]} : vector<8x8xf32> to vector<1x8xf32>
    %1876 = vector.broadcast %1874 : vector<8x1xf32> to vector<8x8xf32>
    %1877 = vector.broadcast %1875 : vector<1x8xf32> to vector<8x8xf32>
    %1878 = arith.mulf %1876, %1877 : vector<8x8xf32>
    %1879 = arith.addf %1857, %1878 : vector<8x8xf32>
    %1880 = vector.extract_strided_slice %1711 {offsets = [6, 0], sizes = [1, 8], strides = [1, 1]} : vector<8x8xf32> to vector<1x8xf32>
    %1881 = vector.broadcast %1872 : vector<8x1xf32> to vector<8x8xf32>
    %1882 = vector.broadcast %1880 : vector<1x8xf32> to vector<8x8xf32>
    %1883 = arith.addf %1881, %1882 : vector<8x8xf32>
    %1884 = arith.cmpf ogt, %1883, %1863 : vector<8x8xf32>
    %1885 = arith.select %1884, %1883, %1863 : vector<8x8xi1>, vector<8x8xf32>
    %c6_i32_168 = arith.constant 6 : i32
    %1886 = vector.broadcast %c6_i32_168 : i32 to vector<8x8xi32>
    %1887 = arith.select %1884, %1886, %1865 : vector<8x8xi1>, vector<8x8xi32>
    %1888 = vector.extract_strided_slice %1527 {offsets = [6, 0], sizes = [1, 8], strides = [1, 1]} : vector<8x8xf32> to vector<1x8xf32>
    %1889 = vector.broadcast %1888 : vector<1x8xf32> to vector<8x8xf32>
    %1890 = vector.broadcast %1872 : vector<8x1xf32> to vector<8x8xf32>
    %1891 = arith.mulf %1889, %1890 : vector<8x8xf32>
    %1892 = arith.addf %1870, %1891 : vector<8x8xf32>
    %1893 = vector.extract_strided_slice %2 {offsets = [7, 0, 0], sizes = [1, 8, 1], strides = [1, 1, 1]} : vector<8x8x1xf32> to vector<1x8x1xf32>
    %1894 = vector.shape_cast %1893 : vector<1x8x1xf32> to vector<8x1xf32>
    %1895 = vector.extract_strided_slice %3 {offsets = [7, 0, 0], sizes = [1, 8, 1], strides = [1, 1, 1]} : vector<8x8x1xf32> to vector<1x8x1xf32>
    %1896 = vector.shape_cast %1895 : vector<1x8x1xf32> to vector<8x1xf32>
    %1897 = vector.extract_strided_slice %1736 {offsets = [7, 0], sizes = [1, 8], strides = [1, 1]} : vector<8x8xf32> to vector<1x8xf32>
    %1898 = vector.broadcast %1896 : vector<8x1xf32> to vector<8x8xf32>
    %1899 = vector.broadcast %1897 : vector<1x8xf32> to vector<8x8xf32>
    %1900 = arith.mulf %1898, %1899 : vector<8x8xf32>
    %1901 = arith.addf %1879, %1900 : vector<8x8xf32>
    %1902 = vector.extract_strided_slice %1711 {offsets = [7, 0], sizes = [1, 8], strides = [1, 1]} : vector<8x8xf32> to vector<1x8xf32>
    %1903 = vector.broadcast %1894 : vector<8x1xf32> to vector<8x8xf32>
    %1904 = vector.broadcast %1902 : vector<1x8xf32> to vector<8x8xf32>
    %1905 = arith.addf %1903, %1904 : vector<8x8xf32>
    %1906 = arith.cmpf ogt, %1905, %1885 : vector<8x8xf32>
    %1907 = arith.select %1906, %1905, %1885 : vector<8x8xi1>, vector<8x8xf32>
    %c7_i32_169 = arith.constant 7 : i32
    %1908 = vector.broadcast %c7_i32_169 : i32 to vector<8x8xi32>
    %1909 = arith.select %1906, %1908, %1887 : vector<8x8xi1>, vector<8x8xi32>
    %1910 = vector.extract_strided_slice %1527 {offsets = [7, 0], sizes = [1, 8], strides = [1, 1]} : vector<8x8xf32> to vector<1x8xf32>
    %1911 = vector.broadcast %1910 : vector<1x8xf32> to vector<8x8xf32>
    %1912 = vector.broadcast %1894 : vector<8x1xf32> to vector<8x8xf32>
    %1913 = arith.mulf %1911, %1912 : vector<8x8xf32>
    %1914 = arith.addf %1892, %1913 : vector<8x8xf32>
    %1915 = vector.broadcast %1733 : vector<1x8xf32> to vector<8x8xf32>
    %1916 = arith.addf %1728, %1915 : vector<8x8xf32>
    %1917 = math.log %1901 : vector<8x8xf32>
    %1918 = arith.addf %1916, %1917 : vector<8x8xf32>
    %1919 = vector.shape_cast %1731 : vector<1x8xi1> to vector<1x8xi1>
    %1920 = vector.broadcast %1919 : vector<1x8xi1> to vector<8x8xi1>
    %1921 = arith.select %1920, %1918, %1707 : vector<8x8xi1>, vector<8x8xf32>
    %1922 = arith.addf %1728, %1907 : vector<8x8xf32>
    %1923 = vector.shape_cast %1731 : vector<1x8xi1> to vector<1x8xi1>
    %1924 = vector.broadcast %1923 : vector<1x8xi1> to vector<8x8xi1>
    %1925 = arith.select %1924, %1922, %1711 : vector<8x8xi1>, vector<8x8xf32>
    %1926 = vector.shape_cast %1731 : vector<1x8xi1> to vector<1x8xi1>
    %1927 = vector.broadcast %1926 : vector<1x8xi1> to vector<8x8xi1>
    %1928 = arith.select %1927, %1909, %4 : vector<8x8xi1>, vector<8x8xi32>
    %c9_170 = arith.constant 9 : index
    %c0_171 = arith.constant 0 : index
    %c0_172 = arith.constant 0 : index
    %1929 = vector.load %arg9[%c9_170, %c0_171, %c0_172] : memref<10x8x8xi32, #tpu.memory_space<vmem>>, vector<1x8x8xi32>
    %1930 = vector.shape_cast %1929 : vector<1x8x8xi32> to vector<8x8xi32>
    %1931 = vector.shape_cast %1928 : vector<8x8xi32> to vector<1x8x8xi32>
    tpu.vector_store %arg9[%c9_170, %c0_171, %c0_172], %1931 {strides = array<i32>} : memref<10x8x8xi32, #tpu.memory_space<vmem>>, vector<1x8x8xi32>,
    %1932 = arith.sitofp %1729 : vector<1x8xi32> to vector<1x8xf32>
    %1933 = vector.broadcast %1932 : vector<1x8xf32> to vector<8x8xf32>
    %1934 = arith.mulf %1933, %1741 : vector<8x8xf32>
    %1935 = arith.addf %1914, %1728 : vector<8x8xf32>
    %1936 = arith.mulf %1934, %1935 : vector<8x8xf32>
    %1937 = arith.addf %1723, %1936 : vector<8x8xf32>
    %1938 = vector.shape_cast %1731 : vector<1x8xi1> to vector<1x8xi1>
    %1939 = vector.broadcast %1938 : vector<1x8xi1> to vector<8x8xi1>
    %1940 = arith.select %1939, %1741, %1726 : vector<8x8xi1>, vector<8x8xf32>
    %1941 = vector.broadcast %1 : vector<8x1xf32> to vector<8x8xf32>
    %1942 = arith.mulf %1940, %1941 : vector<8x8xf32>
    %1943 = arith.addf %1937, %1942 : vector<8x8xf32>
    %cst_173 = arith.constant dense<0.000000e+00> : vector<8xf32>
    %1944 = vector.multi_reduction <add>, %1943, %cst_173 [0] : vector<8x8xf32> to vector<8xf32>
    %1945 = vector.shape_cast %1944 : vector<8xf32> to vector<1x8xf32>
    %1946 = vector.broadcast %1 : vector<8x1xf32> to vector<8x8xf32>
    %1947 = arith.addf %1921, %1946 : vector<8x8xf32>
    %cst_174 = arith.constant dense<0xFF800000> : vector<8xf32>
    %1948 = vector.multi_reduction <maximumf>, %1947, %cst_174 [0] : vector<8x8xf32> to vector<8xf32>
    %1949 = vector.shape_cast %1948 : vector<8xf32> to vector<1x8xf32>
    %1950 = vector.broadcast %1949 : vector<1x8xf32> to vector<8x8xf32>
    %1951 = arith.subf %1947, %1950 : vector<8x8xf32>
    %1952 = math.exp %1951 : vector<8x8xf32>
    %cst_175 = arith.constant dense<0.000000e+00> : vector<8xf32>
    %1953 = vector.multi_reduction <add>, %1952, %cst_175 [0] : vector<8x8xf32> to vector<8xf32>
    %1954 = vector.shape_cast %1953 : vector<8xf32> to vector<1x8xf32>
    %1955 = math.log %1954 : vector<1x8xf32>
    %1956 = arith.addf %1949, %1955 : vector<1x8xf32>
    %1957 = arith.subf %1945, %1956 : vector<1x8xf32>
    %c0_176 = arith.constant 0 : index
    %c0_177 = arith.constant 0 : index
    %1958 = vector.load %arg8[%c0_176, %c0_177] : memref<1x8xf32, #tpu.memory_space<vmem>>, vector<1x8xf32>
    tpu.vector_store %arg8[%c0_176, %c0_177], %1957 {strides = array<i32>} : memref<1x8xf32, #tpu.memory_space<vmem>>, vector<1x8xf32>,
    %1959 = vector.broadcast %1 : vector<8x1xf32> to vector<8x8xf32>
    %1960 = arith.addf %1925, %1959 : vector<8x8xf32>
    %cst_178 = arith.constant dense<0xFF800000> : vector<8xf32>
    %1961 = vector.multi_reduction <maximumf>, %1960, %cst_178 [0] : vector<8x8xf32> to vector<8xf32>
    %1962 = vector.shape_cast %1961 : vector<8xf32> to vector<1x8xf32>
    %1963 = vector.broadcast %1962 : vector<1x8xf32> to vector<8x8xf32>
    %1964 = arith.cmpf oge, %1960, %1963 : vector<8x8xf32>
    %c8_i32 = arith.constant 8 : i32
    %1965 = vector.broadcast %c8_i32 : i32 to vector<8x8xi32>
    %1966 = arith.select %1964, %4, %1965 : vector<8x8xi1>, vector<8x8xi32>
    %cst_179 = arith.constant dense<2147483647> : vector<8xi32>
    %1967 = vector.multi_reduction <minsi>, %1966, %cst_179 [0] : vector<8x8xi32> to vector<8xi32>
    %1968 = vector.shape_cast %1967 : vector<8xi32> to vector<1x8xi32>
    %c9_180 = arith.constant 9 : index
    %c0_181 = arith.constant 0 : index
    %1969 = vector.load %arg2[%c9_180, %c0_181] : memref<10x8xi32, #tpu.memory_space<vmem>>, vector<1x8xi32>
    %c1_i32_182 = arith.constant 1 : i32
    %1970 = vector.broadcast %c1_i32_182 : i32 to vector<1x8xi32>
    %1971 = arith.cmpi eq, %1969, %1970 : vector<1x8xi32>
    %c0_i32_183 = arith.constant 0 : i32
    %1972 = vector.broadcast %c0_i32_183 : i32 to vector<1x8xi32>
    %1973 = arith.select %1971, %1968, %1972 : vector<1x8xi1>, vector<1x8xi32>
    %c9_184 = arith.constant 9 : index
    %c0_185 = arith.constant 0 : index
    %1974 = vector.load %arg7[%c9_184, %c0_185] : memref<10x8xi32, #tpu.memory_space<vmem>>, vector<1x8xi32>
    tpu.vector_store %arg7[%c9_184, %c0_185], %1973 {strides = array<i32>} : memref<10x8xi32, #tpu.memory_space<vmem>>, vector<1x8xi32>,
    %c9_186 = arith.constant 9 : index
    %c0_187 = arith.constant 0 : index
    %c0_188 = arith.constant 0 : index
    %1975 = vector.load %arg9[%c9_186, %c0_187, %c0_188] : memref<10x8x8xi32, #tpu.memory_space<vmem>>, vector<1x8x8xi32>
    %1976 = vector.shape_cast %1975 : vector<1x8x8xi32> to vector<8x8xi32>
    %1977 = vector.broadcast %1968 : vector<1x8xi32> to vector<8x8xi32>
    %1978 = arith.cmpi eq, %4, %1977 : vector<8x8xi32>
    %c0_i32_189 = arith.constant 0 : i32
    %1979 = vector.broadcast %c0_i32_189 : i32 to vector<8x8xi32>
    %1980 = arith.select %1978, %1976, %1979 : vector<8x8xi1>, vector<8x8xi32>
    %cst_190 = arith.constant dense<-2147483648> : vector<8xi32>
    %1981 = vector.multi_reduction <maxsi>, %1980, %cst_190 [0] : vector<8x8xi32> to vector<8xi32>
    %1982 = vector.shape_cast %1981 : vector<8xi32> to vector<1x8xi32>
    %c8_191 = arith.constant 8 : index
    %c0_192 = arith.constant 0 : index
    %1983 = vector.load %arg2[%c8_191, %c0_192] : memref<10x8xi32, #tpu.memory_space<vmem>>, vector<1x8xi32>
    %c1_i32_193 = arith.constant 1 : i32
    %1984 = vector.broadcast %c1_i32_193 : i32 to vector<1x8xi32>
    %1985 = arith.cmpi eq, %1983, %1984 : vector<1x8xi32>
    %c0_i32_194 = arith.constant 0 : i32
    %1986 = vector.broadcast %c0_i32_194 : i32 to vector<1x8xi32>
    %1987 = arith.select %1985, %1982, %1986 : vector<1x8xi1>, vector<1x8xi32>
    %c8_195 = arith.constant 8 : index
    %c0_196 = arith.constant 0 : index
    %1988 = vector.load %arg7[%c8_195, %c0_196] : memref<10x8xi32, #tpu.memory_space<vmem>>, vector<1x8xi32>
    tpu.vector_store %arg7[%c8_195, %c0_196], %1987 {strides = array<i32>} : memref<10x8xi32, #tpu.memory_space<vmem>>, vector<1x8xi32>,
    %c8_197 = arith.constant 8 : index
    %c0_198 = arith.constant 0 : index
    %c0_199 = arith.constant 0 : index
    %1989 = vector.load %arg9[%c8_197, %c0_198, %c0_199] : memref<10x8x8xi32, #tpu.memory_space<vmem>>, vector<1x8x8xi32>
    %1990 = vector.shape_cast %1989 : vector<1x8x8xi32> to vector<8x8xi32>
    %1991 = vector.broadcast %1982 : vector<1x8xi32> to vector<8x8xi32>
    %1992 = arith.cmpi eq, %4, %1991 : vector<8x8xi32>
    %c0_i32_200 = arith.constant 0 : i32
    %1993 = vector.broadcast %c0_i32_200 : i32 to vector<8x8xi32>
    %1994 = arith.select %1992, %1990, %1993 : vector<8x8xi1>, vector<8x8xi32>
    %cst_201 = arith.constant dense<-2147483648> : vector<8xi32>
    %1995 = vector.multi_reduction <maxsi>, %1994, %cst_201 [0] : vector<8x8xi32> to vector<8xi32>
    %1996 = vector.shape_cast %1995 : vector<8xi32> to vector<1x8xi32>
    %c7_202 = arith.constant 7 : index
    %c0_203 = arith.constant 0 : index
    %1997 = vector.load %arg2[%c7_202, %c0_203] : memref<10x8xi32, #tpu.memory_space<vmem>>, vector<1x8xi32>
    %c1_i32_204 = arith.constant 1 : i32
    %1998 = vector.broadcast %c1_i32_204 : i32 to vector<1x8xi32>
    %1999 = arith.cmpi eq, %1997, %1998 : vector<1x8xi32>
    %c0_i32_205 = arith.constant 0 : i32
    %2000 = vector.broadcast %c0_i32_205 : i32 to vector<1x8xi32>
    %2001 = arith.select %1999, %1996, %2000 : vector<1x8xi1>, vector<1x8xi32>
    %c7_206 = arith.constant 7 : index
    %c0_207 = arith.constant 0 : index
    %2002 = vector.load %arg7[%c7_206, %c0_207] : memref<10x8xi32, #tpu.memory_space<vmem>>, vector<1x8xi32>
    tpu.vector_store %arg7[%c7_206, %c0_207], %2001 {strides = array<i32>} : memref<10x8xi32, #tpu.memory_space<vmem>>, vector<1x8xi32>,
    %c7_208 = arith.constant 7 : index
    %c0_209 = arith.constant 0 : index
    %c0_210 = arith.constant 0 : index
    %2003 = vector.load %arg9[%c7_208, %c0_209, %c0_210] : memref<10x8x8xi32, #tpu.memory_space<vmem>>, vector<1x8x8xi32>
    %2004 = vector.shape_cast %2003 : vector<1x8x8xi32> to vector<8x8xi32>
    %2005 = vector.broadcast %1996 : vector<1x8xi32> to vector<8x8xi32>
    %2006 = arith.cmpi eq, %4, %2005 : vector<8x8xi32>
    %c0_i32_211 = arith.constant 0 : i32
    %2007 = vector.broadcast %c0_i32_211 : i32 to vector<8x8xi32>
    %2008 = arith.select %2006, %2004, %2007 : vector<8x8xi1>, vector<8x8xi32>
    %cst_212 = arith.constant dense<-2147483648> : vector<8xi32>
    %2009 = vector.multi_reduction <maxsi>, %2008, %cst_212 [0] : vector<8x8xi32> to vector<8xi32>
    %2010 = vector.shape_cast %2009 : vector<8xi32> to vector<1x8xi32>
    %c6_213 = arith.constant 6 : index
    %c0_214 = arith.constant 0 : index
    %2011 = vector.load %arg2[%c6_213, %c0_214] : memref<10x8xi32, #tpu.memory_space<vmem>>, vector<1x8xi32>
    %c1_i32_215 = arith.constant 1 : i32
    %2012 = vector.broadcast %c1_i32_215 : i32 to vector<1x8xi32>
    %2013 = arith.cmpi eq, %2011, %2012 : vector<1x8xi32>
    %c0_i32_216 = arith.constant 0 : i32
    %2014 = vector.broadcast %c0_i32_216 : i32 to vector<1x8xi32>
    %2015 = arith.select %2013, %2010, %2014 : vector<1x8xi1>, vector<1x8xi32>
    %c6_217 = arith.constant 6 : index
    %c0_218 = arith.constant 0 : index
    %2016 = vector.load %arg7[%c6_217, %c0_218] : memref<10x8xi32, #tpu.memory_space<vmem>>, vector<1x8xi32>
    tpu.vector_store %arg7[%c6_217, %c0_218], %2015 {strides = array<i32>} : memref<10x8xi32, #tpu.memory_space<vmem>>, vector<1x8xi32>,
    %c6_219 = arith.constant 6 : index
    %c0_220 = arith.constant 0 : index
    %c0_221 = arith.constant 0 : index
    %2017 = vector.load %arg9[%c6_219, %c0_220, %c0_221] : memref<10x8x8xi32, #tpu.memory_space<vmem>>, vector<1x8x8xi32>
    %2018 = vector.shape_cast %2017 : vector<1x8x8xi32> to vector<8x8xi32>
    %2019 = vector.broadcast %2010 : vector<1x8xi32> to vector<8x8xi32>
    %2020 = arith.cmpi eq, %4, %2019 : vector<8x8xi32>
    %c0_i32_222 = arith.constant 0 : i32
    %2021 = vector.broadcast %c0_i32_222 : i32 to vector<8x8xi32>
    %2022 = arith.select %2020, %2018, %2021 : vector<8x8xi1>, vector<8x8xi32>
    %cst_223 = arith.constant dense<-2147483648> : vector<8xi32>
    %2023 = vector.multi_reduction <maxsi>, %2022, %cst_223 [0] : vector<8x8xi32> to vector<8xi32>
    %2024 = vector.shape_cast %2023 : vector<8xi32> to vector<1x8xi32>
    %c5_224 = arith.constant 5 : index
    %c0_225 = arith.constant 0 : index
    %2025 = vector.load %arg2[%c5_224, %c0_225] : memref<10x8xi32, #tpu.memory_space<vmem>>, vector<1x8xi32>
    %c1_i32_226 = arith.constant 1 : i32
    %2026 = vector.broadcast %c1_i32_226 : i32 to vector<1x8xi32>
    %2027 = arith.cmpi eq, %2025, %2026 : vector<1x8xi32>
    %c0_i32_227 = arith.constant 0 : i32
    %2028 = vector.broadcast %c0_i32_227 : i32 to vector<1x8xi32>
    %2029 = arith.select %2027, %2024, %2028 : vector<1x8xi1>, vector<1x8xi32>
    %c5_228 = arith.constant 5 : index
    %c0_229 = arith.constant 0 : index
    %2030 = vector.load %arg7[%c5_228, %c0_229] : memref<10x8xi32, #tpu.memory_space<vmem>>, vector<1x8xi32>
    tpu.vector_store %arg7[%c5_228, %c0_229], %2029 {strides = array<i32>} : memref<10x8xi32, #tpu.memory_space<vmem>>, vector<1x8xi32>,
    %c5_230 = arith.constant 5 : index
    %c0_231 = arith.constant 0 : index
    %c0_232 = arith.constant 0 : index
    %2031 = vector.load %arg9[%c5_230, %c0_231, %c0_232] : memref<10x8x8xi32, #tpu.memory_space<vmem>>, vector<1x8x8xi32>
    %2032 = vector.shape_cast %2031 : vector<1x8x8xi32> to vector<8x8xi32>
    %2033 = vector.broadcast %2024 : vector<1x8xi32> to vector<8x8xi32>
    %2034 = arith.cmpi eq, %4, %2033 : vector<8x8xi32>
    %c0_i32_233 = arith.constant 0 : i32
    %2035 = vector.broadcast %c0_i32_233 : i32 to vector<8x8xi32>
    %2036 = arith.select %2034, %2032, %2035 : vector<8x8xi1>, vector<8x8xi32>
    %cst_234 = arith.constant dense<-2147483648> : vector<8xi32>
    %2037 = vector.multi_reduction <maxsi>, %2036, %cst_234 [0] : vector<8x8xi32> to vector<8xi32>
    %2038 = vector.shape_cast %2037 : vector<8xi32> to vector<1x8xi32>
    %c4_235 = arith.constant 4 : index
    %c0_236 = arith.constant 0 : index
    %2039 = vector.load %arg2[%c4_235, %c0_236] : memref<10x8xi32, #tpu.memory_space<vmem>>, vector<1x8xi32>
    %c1_i32_237 = arith.constant 1 : i32
    %2040 = vector.broadcast %c1_i32_237 : i32 to vector<1x8xi32>
    %2041 = arith.cmpi eq, %2039, %2040 : vector<1x8xi32>
    %c0_i32_238 = arith.constant 0 : i32
    %2042 = vector.broadcast %c0_i32_238 : i32 to vector<1x8xi32>
    %2043 = arith.select %2041, %2038, %2042 : vector<1x8xi1>, vector<1x8xi32>
    %c4_239 = arith.constant 4 : index
    %c0_240 = arith.constant 0 : index
    %2044 = vector.load %arg7[%c4_239, %c0_240] : memref<10x8xi32, #tpu.memory_space<vmem>>, vector<1x8xi32>
    tpu.vector_store %arg7[%c4_239, %c0_240], %2043 {strides = array<i32>} : memref<10x8xi32, #tpu.memory_space<vmem>>, vector<1x8xi32>,
    %c4_241 = arith.constant 4 : index
    %c0_242 = arith.constant 0 : index
    %c0_243 = arith.constant 0 : index
    %2045 = vector.load %arg9[%c4_241, %c0_242, %c0_243] : memref<10x8x8xi32, #tpu.memory_space<vmem>>, vector<1x8x8xi32>
    %2046 = vector.shape_cast %2045 : vector<1x8x8xi32> to vector<8x8xi32>
    %2047 = vector.broadcast %2038 : vector<1x8xi32> to vector<8x8xi32>
    %2048 = arith.cmpi eq, %4, %2047 : vector<8x8xi32>
    %c0_i32_244 = arith.constant 0 : i32
    %2049 = vector.broadcast %c0_i32_244 : i32 to vector<8x8xi32>
    %2050 = arith.select %2048, %2046, %2049 : vector<8x8xi1>, vector<8x8xi32>
    %cst_245 = arith.constant dense<-2147483648> : vector<8xi32>
    %2051 = vector.multi_reduction <maxsi>, %2050, %cst_245 [0] : vector<8x8xi32> to vector<8xi32>
    %2052 = vector.shape_cast %2051 : vector<8xi32> to vector<1x8xi32>
    %c3_246 = arith.constant 3 : index
    %c0_247 = arith.constant 0 : index
    %2053 = vector.load %arg2[%c3_246, %c0_247] : memref<10x8xi32, #tpu.memory_space<vmem>>, vector<1x8xi32>
    %c1_i32_248 = arith.constant 1 : i32
    %2054 = vector.broadcast %c1_i32_248 : i32 to vector<1x8xi32>
    %2055 = arith.cmpi eq, %2053, %2054 : vector<1x8xi32>
    %c0_i32_249 = arith.constant 0 : i32
    %2056 = vector.broadcast %c0_i32_249 : i32 to vector<1x8xi32>
    %2057 = arith.select %2055, %2052, %2056 : vector<1x8xi1>, vector<1x8xi32>
    %c3_250 = arith.constant 3 : index
    %c0_251 = arith.constant 0 : index
    %2058 = vector.load %arg7[%c3_250, %c0_251] : memref<10x8xi32, #tpu.memory_space<vmem>>, vector<1x8xi32>
    tpu.vector_store %arg7[%c3_250, %c0_251], %2057 {strides = array<i32>} : memref<10x8xi32, #tpu.memory_space<vmem>>, vector<1x8xi32>,
    %c3_252 = arith.constant 3 : index
    %c0_253 = arith.constant 0 : index
    %c0_254 = arith.constant 0 : index
    %2059 = vector.load %arg9[%c3_252, %c0_253, %c0_254] : memref<10x8x8xi32, #tpu.memory_space<vmem>>, vector<1x8x8xi32>
    %2060 = vector.shape_cast %2059 : vector<1x8x8xi32> to vector<8x8xi32>
    %2061 = vector.broadcast %2052 : vector<1x8xi32> to vector<8x8xi32>
    %2062 = arith.cmpi eq, %4, %2061 : vector<8x8xi32>
    %c0_i32_255 = arith.constant 0 : i32
    %2063 = vector.broadcast %c0_i32_255 : i32 to vector<8x8xi32>
    %2064 = arith.select %2062, %2060, %2063 : vector<8x8xi1>, vector<8x8xi32>
    %cst_256 = arith.constant dense<-2147483648> : vector<8xi32>
    %2065 = vector.multi_reduction <maxsi>, %2064, %cst_256 [0] : vector<8x8xi32> to vector<8xi32>
    %2066 = vector.shape_cast %2065 : vector<8xi32> to vector<1x8xi32>
    %c2_257 = arith.constant 2 : index
    %c0_258 = arith.constant 0 : index
    %2067 = vector.load %arg2[%c2_257, %c0_258] : memref<10x8xi32, #tpu.memory_space<vmem>>, vector<1x8xi32>
    %c1_i32_259 = arith.constant 1 : i32
    %2068 = vector.broadcast %c1_i32_259 : i32 to vector<1x8xi32>
    %2069 = arith.cmpi eq, %2067, %2068 : vector<1x8xi32>
    %c0_i32_260 = arith.constant 0 : i32
    %2070 = vector.broadcast %c0_i32_260 : i32 to vector<1x8xi32>
    %2071 = arith.select %2069, %2066, %2070 : vector<1x8xi1>, vector<1x8xi32>
    %c2_261 = arith.constant 2 : index
    %c0_262 = arith.constant 0 : index
    %2072 = vector.load %arg7[%c2_261, %c0_262] : memref<10x8xi32, #tpu.memory_space<vmem>>, vector<1x8xi32>
    tpu.vector_store %arg7[%c2_261, %c0_262], %2071 {strides = array<i32>} : memref<10x8xi32, #tpu.memory_space<vmem>>, vector<1x8xi32>,
    %c2_263 = arith.constant 2 : index
    %c0_264 = arith.constant 0 : index
    %c0_265 = arith.constant 0 : index
    %2073 = vector.load %arg9[%c2_263, %c0_264, %c0_265] : memref<10x8x8xi32, #tpu.memory_space<vmem>>, vector<1x8x8xi32>
    %2074 = vector.shape_cast %2073 : vector<1x8x8xi32> to vector<8x8xi32>
    %2075 = vector.broadcast %2066 : vector<1x8xi32> to vector<8x8xi32>
    %2076 = arith.cmpi eq, %4, %2075 : vector<8x8xi32>
    %c0_i32_266 = arith.constant 0 : i32
    %2077 = vector.broadcast %c0_i32_266 : i32 to vector<8x8xi32>
    %2078 = arith.select %2076, %2074, %2077 : vector<8x8xi1>, vector<8x8xi32>
    %cst_267 = arith.constant dense<-2147483648> : vector<8xi32>
    %2079 = vector.multi_reduction <maxsi>, %2078, %cst_267 [0] : vector<8x8xi32> to vector<8xi32>
    %2080 = vector.shape_cast %2079 : vector<8xi32> to vector<1x8xi32>
    %c1_268 = arith.constant 1 : index
    %c0_269 = arith.constant 0 : index
    %2081 = vector.load %arg2[%c1_268, %c0_269] : memref<10x8xi32, #tpu.memory_space<vmem>>, vector<1x8xi32>
    %c1_i32_270 = arith.constant 1 : i32
    %2082 = vector.broadcast %c1_i32_270 : i32 to vector<1x8xi32>
    %2083 = arith.cmpi eq, %2081, %2082 : vector<1x8xi32>
    %c0_i32_271 = arith.constant 0 : i32
    %2084 = vector.broadcast %c0_i32_271 : i32 to vector<1x8xi32>
    %2085 = arith.select %2083, %2080, %2084 : vector<1x8xi1>, vector<1x8xi32>
    %c1_272 = arith.constant 1 : index
    %c0_273 = arith.constant 0 : index
    %2086 = vector.load %arg7[%c1_272, %c0_273] : memref<10x8xi32, #tpu.memory_space<vmem>>, vector<1x8xi32>
    tpu.vector_store %arg7[%c1_272, %c0_273], %2085 {strides = array<i32>} : memref<10x8xi32, #tpu.memory_space<vmem>>, vector<1x8xi32>,
    %c1_274 = arith.constant 1 : index
    %c0_275 = arith.constant 0 : index
    %c0_276 = arith.constant 0 : index
    %2087 = vector.load %arg9[%c1_274, %c0_275, %c0_276] : memref<10x8x8xi32, #tpu.memory_space<vmem>>, vector<1x8x8xi32>
    %2088 = vector.shape_cast %2087 : vector<1x8x8xi32> to vector<8x8xi32>
    %2089 = vector.broadcast %2080 : vector<1x8xi32> to vector<8x8xi32>
    %2090 = arith.cmpi eq, %4, %2089 : vector<8x8xi32>
    %c0_i32_277 = arith.constant 0 : i32
    %2091 = vector.broadcast %c0_i32_277 : i32 to vector<8x8xi32>
    %2092 = arith.select %2090, %2088, %2091 : vector<8x8xi1>, vector<8x8xi32>
    %cst_278 = arith.constant dense<-2147483648> : vector<8xi32>
    %2093 = vector.multi_reduction <maxsi>, %2092, %cst_278 [0] : vector<8x8xi32> to vector<8xi32>
    %2094 = vector.shape_cast %2093 : vector<8xi32> to vector<1x8xi32>
    %c0_279 = arith.constant 0 : index
    %c0_280 = arith.constant 0 : index
    %2095 = vector.load %arg2[%c0_279, %c0_280] : memref<10x8xi32, #tpu.memory_space<vmem>>, vector<1x8xi32>
    %c1_i32_281 = arith.constant 1 : i32
    %2096 = vector.broadcast %c1_i32_281 : i32 to vector<1x8xi32>
    %2097 = arith.cmpi eq, %2095, %2096 : vector<1x8xi32>
    %c0_i32_282 = arith.constant 0 : i32
    %2098 = vector.broadcast %c0_i32_282 : i32 to vector<1x8xi32>
    %2099 = arith.select %2097, %2094, %2098 : vector<1x8xi1>, vector<1x8xi32>
    %c0_283 = arith.constant 0 : index
    %c0_284 = arith.constant 0 : index
    %2100 = vector.load %arg7[%c0_283, %c0_284] : memref<10x8xi32, #tpu.memory_space<vmem>>, vector<1x8xi32>
    tpu.vector_store %arg7[%c0_283, %c0_284], %2099 {strides = array<i32>} : memref<10x8xi32, #tpu.memory_space<vmem>>, vector<1x8xi32>,
    return
  }
  func.func @transform_0(%arg0: i32) -> (i32, i32, i32) {
    %c0_i32 = arith.constant 0 : i32
    %c0_i32_0 = arith.constant 0 : i32
    %c0_i32_1 = arith.constant 0 : i32
    return %c0_i32, %c0_i32_0, %arg0 : i32, i32, i32
  }
  func.func @transform_1(%arg0: i32) -> (i32, i32) {
    %c0_i32 = arith.constant 0 : i32
    %c0_i32_0 = arith.constant 0 : i32
    return %c0_i32, %arg0 : i32, i32
  }
  func.func @transform_2(%arg0: i32) -> (i32, i32) {
    %c0_i32 = arith.constant 0 : i32
    %c0_i32_0 = arith.constant 0 : i32
    return %c0_i32, %arg0 : i32, i32
  }
  func.func @transform_3(%arg0: i32) -> (i32, i32) {
    %c0_i32 = arith.constant 0 : i32
    %c0_i32_0 = arith.constant 0 : i32
    %c0_i32_1 = arith.constant 0 : i32
    return %c0_i32, %c0_i32_0 : i32, i32
  }
  func.func @transform_4(%arg0: i32) -> (i32, i32) {
    %c0_i32 = arith.constant 0 : i32
    %c0_i32_0 = arith.constant 0 : i32
    %c0_i32_1 = arith.constant 0 : i32
    return %c0_i32, %c0_i32_0 : i32, i32
  }
  func.func @transform_5(%arg0: i32) -> (i32, i32, i32) {
    %c0_i32 = arith.constant 0 : i32
    %c0_i32_0 = arith.constant 0 : i32
    %c0_i32_1 = arith.constant 0 : i32
    %c0_i32_2 = arith.constant 0 : i32
    return %c0_i32, %c0_i32_0, %c0_i32_1 : i32, i32, i32
  }
  func.func @transform_6(%arg0: i32) -> (i32, i32) {
    %c0_i32 = arith.constant 0 : i32
    %c0_i32_0 = arith.constant 0 : i32
    return %c0_i32, %arg0 : i32, i32
  }
  func.func @transform_7(%arg0: i32) -> (i32, i32) {
    %c0_i32 = arith.constant 0 : i32
    %c0_i32_0 = arith.constant 0 : i32
    return %c0_i32, %arg0 : i32, i32
  }
}

</mosaic_0001>

<bundles_post_ra>
// kernel: tpu_custom_call.1
= control target key start
LH: loop header
LB: loop body
LE: loop exit
PB: predicated region body
PF: predicated region fallthrough
CT: control target
= control target key end

     0   :  { %v2867_v3 = vmov 0   ;;  %s2857_s0 = inlined_call_operand.vmem [shape: f32[10,8,8], index: 0, kind: input, shape index: {}]   ;;  %s2858_s1 = inlined_call_operand.vmem [shape: s32[10,8], index: 1, kind: input, shape index: {}]   ;;  %s2859_s2 = inlined_call_operand.vmem [shape: s32[10,8], index: 2, kind: input, shape index: {}]   ;;  %s2860_s3 = inlined_call_operand.vmem [shape: f32[8,1], index: 3, kind: input, shape index: {}]   ;;  %s2861_s4 = inlined_call_operand.vmem [shape: f32[8,1], index: 4, kind: input, shape index: {}]   ;;  %s2862_s5 = inlined_call_operand.vmem [shape: f32[8,8,1], index: 5, kind: input, shape index: {}]   ;;  %s2863_s6 = inlined_call_operand.vmem [shape: s32[10,8], index: 6, kind: output, shape index: {0}]   ;;  %s2864_s7 = inlined_call_operand.hbm [shape: f32[1,8], index: 7, kind: output, shape index: {1}]  }
   0x1   :  { %v26_v0 = vld [vmem:[%s2860_s3] sm:$0xff]  ;;  %v31_v1 = vld [vmem:[%s2862_s5 + $0x18] sm:$0xff]  ;;  %v29_v2 = vld [vmem:[%s2862_s5 + $0x8] sm:$0xff]  ;;  %1503 = vset.pattern.permute.xlu0 %v2867_v3  ;;  %1505 = vset.pattern.permute.xlu2 %v2867_v3 }
   0x2   :  { %v42_v4 = vmul.f32 1.442695, %v31_v1  ;;  %v38_v5 = vmul.f32 1.442695, %v29_v2  ;;  %v28_v6 = vld [vmem:[%s2862_s5] sm:$0xff]  ;;  %57 = vperm.xlu0 %1503, %v26_v0   ;;  %1504 = vset.pattern.permute.xlu1 %v2867_v3  ;;  %v30_v9 = vld [vmem:[%s2862_s5 + $0x10] sm:$0xff] }
   0x3   :  { %v32_v7 = vld [vmem:[%s2862_s5 + $0x20] sm:$0xff]  ;;  %v36_v8 = vmul.f32 1.442695, %v28_v6  ;;  %v33_v10 = vld [vmem:[%s2862_s5 + $0x28] sm:$0xff]  ;;  %v40_v12 = vmul.f32 1.442695, %v30_v9 }
   0x4   :  { %1516 = vpow2.f32 %v42_v4  ;;  %v44_v11 = vmul.f32 1.442695, %v32_v7  ;;  %v46_v13 = vmul.f32 1.442695, %v33_v10 }
   0x5   :  { %1518 = vpow2.f32 %v38_v5 }
   0x6   :  { %1520 = vpow2.f32 %v36_v8 }
   0x7   :  { %13 = vsyncpa [#allocation4], 0  ;;  %1522 = vpow2.f32 %v44_v11  ;;  %v35_v16 = vld [vmem:[%s2862_s5 + $0x38] sm:$0xff]  ;;  %v34_v18 = vld [vmem:[%s2862_s5 + $0x30] sm:$0xff]  ;;  %v52_v28 = vlaneseq  ;;  %vm71_vm4 = vcmask 64512   ;;  %v2865_v47 = vmov 0.0  }
   0x8   :  { %1524 = vpow2.f32 %v40_v12  ;;  %v50_v19 = vmul.f32 1.442695, %v35_v16  ;;  %v48_v20 = vmul.f32 1.442695, %v34_v18  ;;  %v27_v26 = vld [vmem:[%s2861_s4] sm:$0xff]  ;;  %s1470_s26 = sshll.u32 %s2864_s7, 4  ;;  %s1471_s26 = int_to_ptr.hbm [resolvable:$true] %s1470_s26 }
   0x9   :  { %1526 = vpow2.f32 %v46_v13  ;;  %v1687_v29 = vld [vmem:[%s2858_s1 + $0x1] sm:$0x1]  ;;  %v1694_v31 = vld [vmem:[%s2858_s1 + $0x2] sm:$0x1]  ;;  %v1696_v32 = vshrl.u32 %v52_v28, 7 }
   0xa   :  { %v1517_v14 = vpop.eup %1516  ;;  %1528 = vpow2.f32 %v50_v19  ;;  %v1506_v33 = vld [vmem:[%s2859_s2] ss:$0 sm:$0xff]  ;;  %vm70_vm0 = vcmp.eq.s32.totalorder %v1687_v29, 1  ;;  %vm273_vm1 = vcmp.eq.s32.totalorder %v1694_v31, 1  ;;  %v1706_v34 = vld [vmem:[%s2858_s1 + $0x3] sm:$0x1] }
   0xb   :  { %v1519_v15 = vpop.eup %1518  ;;  %147 = vperm.xlu2 %1505, %v1517_v14   ;;  %1530 = vpow2.f32 %v48_v20  ;;  %v54_v35 = vld [vmem:[%s2857_s0] sm:$0xff]  ;;  %vm63_vm2 = vcmp.eq.s32.totalorder %v1696_v32, %v1506_v33  ;;  %v1721_v38 = vsel %vm70_vm0, 1, %v2867_v3  ;;  %v1727_v40 = vsel %vm273_vm1, 1, %v2867_v3 }
   0xc   :  { %v1521_v17 = vpop.eup %1520  ;;  %105 = vperm.xlu1 %1504, %v1519_v15   ;;  %v1714_v36 = vld [vmem:[%s2858_s1 + $0x4] sm:$0x1]  ;;  %v1507_v37 = vld [vmem:[%s2859_s2 + $0x1] ss:$0 sm:$0xff]  ;;  %v1508_v39 = vld [vmem:[%s2859_s2 + $0x2] ss:$0 sm:$0xff] }
   0xd   :  { %89 = vperm.xlu0 %1503, %v1521_v17   ;;  %v1523_v21 = vpop.eup %1522  ;;  %vm395_vm3 = vcmp.eq.s32.totalorder %v1706_v34, 1  ;;  %v1509_v41 = vld [vmem:[%s2859_s2 + $0x3] ss:$0 sm:$0xff]  ;;  %v1510_v42 = vld [vmem:[%s2859_s2 + $0x4] ss:$0 sm:$0xff]  ;;  %vm517_vm5 = vcmp.eq.s32.totalorder %v1714_v36, 1  ;;  %vm84_vm6 = vcmp.eq.s32.totalorder %v1696_v32, %v1507_v37  ;;  %vm286_vm7 = vcmp.eq.s32.totalorder %v1696_v32, %v1508_v39 }
   0xe   :  { %v1525_v22 = vpop.eup %1524  ;;  %v1511_v43 = vld [vmem:[%s2859_s2 + $0x5] ss:$0 sm:$0xff]  ;;  %v1512_v44 = vld [vmem:[%s2859_s2 + $0x6] ss:$0 sm:$0xff]  ;;  %v1746_v48 = vsel %vm63_vm2, 1.0, %v2865_v47  ;;  %v1764_v54 = vsel %vm395_vm3, 1, %v2867_v3  ;;  %vm408_vm8 = vcmp.eq.s32.totalorder %v1696_v32, %v1509_v41  ;;  %vm530_vm9 = vcmp.eq.s32.totalorder %v1696_v32, %v1510_v42 }
   0xf   :  { %v1527_v23 = vpop.eup %1526  ;;  %2900 = vst [vmem:[#allocation9_spill] sm:$0xff] %v1746_v48  ;;  %v1752_v50 = vld [vmem:[%s2858_s1 + $0x5] sm:$0x1]  ;;  %v1513_v51 = vld [vmem:[%s2859_s2 + $0x7] ss:$0 sm:$0xff]  ;;  %v1772_v55 = vsel %vm517_vm5, 1, %v2867_v3  ;;  %vm652_vm11 = vcmp.eq.s32.totalorder %v1696_v32, %v1511_v43  ;;  %vm774_vm12 = vcmp.eq.s32.totalorder %v1696_v32, %v1512_v44  ;;  %v629_v28 = vcvt.s32.f32 %v1714_v36 }
  0x10   :  { %v1529_v24 = vpop.eup %1528  ;;  %2901 = vst [vmem:[#allocation10_spill] sm:$0xff] %v1764_v54  ;;  %vm639_vm10 = vcmp.eq.s32.totalorder %v1752_v50, 1  ;;  %v1780_v58 = vsel %vm84_vm6, 1.0, %v2865_v47  ;;  %vm896_vm13 = vcmp.eq.s32.totalorder %v1696_v32, %v1513_v51  ;;  %v1785_v60 = vsel %vm286_vm7, 1.0, %v2865_v47  ;;  %v760_v33 = vld [vmem:[%s2858_s1 + $0x6] sm:$0x1] }
  0x11   :  { %v1531_v25 = vpop.eup %1530  ;;  %2902 = vst [vmem:[#allocation11_spill] sm:$0xff] %v1772_v55  ;;  %v1788_v61 = vsel %vm408_vm8, 1.0, %v2865_v47  ;;  %v1791_v62 = vsel %vm530_vm9, 1.0, %v2865_v47  ;;  %v1801_v4 = vsel %vm774_vm12, 1.0, %v2865_v47  ;;  %v1807_v8 = vsel %vm896_vm13, 1.0, %v2865_v47 }
  0x12   :  { %2903 = vst [vmem:[#allocation12_spill] sm:$0xff] %v1780_v58  ;;  %v751_v39 = vcvt.s32.f32 %v1752_v50  ;;  %v873_v41 = vcvt.s32.f32 %v760_v33  ;;  %v630_v51 = vperm.slane %v629_v28, 0  ;;  %v325_v53 = vperm.slane %v1780_v58, 3 }
  0x13   :  { %168 = vperm.xlu2 %1505, %v1523_v21   ;;  %2904 = vst [vmem:[#allocation13_spill] sm:$0xff] %v1785_v60  ;;  %v142_v21 = vperm.slane %v1746_v48, 2 }
  0x14   :  { %126 = vperm.xlu1 %1504, %v1525_v22   ;;  %2905 = vst [vmem:[#allocation14_spill] sm:$0xff] %v1788_v61  ;;  %v205_v22 = vperm.slane %v1746_v48, 5  ;;  %v1877_v63 = vmul.f32 %v1791_v62, %v630_v51 }
  0x15   :  { %189 = vperm.xlu0 %1503, %v1527_v23   ;;  %2906 = vst [vmem:[#allocation15_spill] sm:$0xff] %v1791_v62 }
  0x16   :  { %2909 = vst [vmem:[#allocation18_spill] sm:$0xff] %v1801_v4 }
  0x17   :  { %2910 = vst [vmem:[#allocation19_spill] sm:$0xff] %v1807_v8 }
  0x1b   :  { %231 = vperm.xlu2 %1505, %v1529_v24   ;;  %v263_v24 = vcvt.s32.f32 %v1687_v29 }
  0x1c   :  { %210 = vperm.xlu1 %1504, %v1531_v25   ;;  %v385_v25 = vcvt.s32.f32 %v1694_v31  ;;  %v314_v31 = vperm.slane %v1780_v58, 2 }
  0x1d   :  { %96 = vperm.xlu0 %1503, %v28_v6   ;;  %v264_v29 = vperm.slane %v263_v24, 0  ;;  %v1849_v24 = vld [vmem:[%s2857_s0 + $0x8] sm:$0xff] }
  0x1e   :  { %v386_v44 = vperm.slane %v385_v25, 0  ;;  %v469_v25 = vperm.slane %v1785_v60, 5 }
  0x1f   :  { %v1861_v28 = vmul.f32 %v1780_v58, %v264_v29 }
  0x23   :  { %134 = vperm.xlu2 %1505, %v30_v9  }
  0x24   :  { %113 = vperm.xlu1 %1504, %v29_v2   ;;  %v1798_v2 = vsel %vm639_vm10, 1, %v2867_v3 }
  0x25   :  { %155 = vperm.xlu0 %1503, %v31_v1   ;;  %v1795_v1 = vsel %vm652_vm11, 1.0, %v2865_v47  ;;  %2908 = vst [vmem:[#allocation17_spill] sm:$0xff] %v1798_v2 }
  0x26   :  { %2907 = vst [vmem:[#allocation16_spill] sm:$0xff] %v1795_v1 }
  0x2b   :  { %197 = vperm.xlu2 %1505, %v33_v10  }
  0x2c   :  { %176 = vperm.xlu1 %1504, %v32_v7  }
  0x2d   :  { %218 = vperm.xlu0 %1503, %v34_v18  }
  0x33   :  { %1248 = vperm.xlu2 %1505, %v27_v26   ;;  %v507_v26 = vcvt.s32.f32 %v1706_v34  ;;  %v347_v34 = vperm.slane %v1780_v58, 5 }
  0x34   :  { %239 = vperm.xlu1 %1504, %v35_v16   ;;  %v591_v16 = vperm.slane %v1788_v61, 5 }
  0x65   :  { %v1682_v27 = vpop.permute.xlu2 %147 }
  0x66   :  { %2897 = vst [vmem:[#allocation6_spill] sm:$0xff] %v1682_v27 }
  0x6d   :  { %v1689_v30 = vpop.permute.xlu2 %168 }
  0x6e   :  { %2898 = vst [vmem:[#allocation7_spill] sm:$0xff] %v1689_v30 }
  0x74   :  { %v58_v46 = vpop.permute.xlu0 %57 }
  0x75   :  { %v1743_v45 = vpop.permute.xlu2 %231  ;;  %v1757_v52 = vadd.f32 %v58_v46, %v54_v35  ;;  %v882_v35 = vld [vmem:[%s2858_s1 + $0x7] sm:$0x1]  ;;  %v508_v46 = vperm.slane %v507_v26, 0 }
  0x76   :  { %2899 = vst [vmem:[#allocation8_spill] sm:$0xff] %v1743_v45  ;;  %v995_v42 = vcvt.s32.f32 %v882_v35 }
  0x77   :  { %v72_v56 = vsel %vm71_vm4, %v1757_v52, -inf  ;;  %v137_v7 = vperm.slane %v1757_v52, 2  ;;  %v200_v12 = vperm.slane %v1757_v52, 5  ;;  %v1820_v17 = vmul.f32 %v1746_v48, %v1757_v52 }
  0x78   :  { %v73_v57 = vrot.slane %v72_v56, 4  ;;  %v1874_v47 = vmul.f32 %v1788_v61, %v508_v46  ;;  %v121_v46 = vperm.slane %v1746_v48, 1 }
  0x7a   :  { %v74_v0 = vmax.f32 %v72_v56, %v73_v57  ;;  %v752_v57 = vperm.slane %v751_v39, 0  ;;  %v558_v39 = vperm.slane %v1788_v61, 2 }
  0x7c   :  { %v75_v9 = vrot.slane %v74_v0, 2  ;;  %v1880_v29 = vmul.f32 %v1795_v1, %v752_v57 }
  0x7d   :  { %v1812_v13 = vpop.permute.xlu2 %134 }
  0x7e   :  { %v1814_v14 = vpop.permute.xlu1 %105  ;;  %v76_v19 = vmax.f32 %v74_v0, %v75_v9  ;;  %v1843_v56 = vadd.f32 %v137_v7, %v1812_v13  ;;  %v874_v0 = vperm.slane %v873_v41, 0  ;;  %v996_v9 = vperm.slane %v995_v42, 0  ;;  %2913 = vst [vmem:[#allocation22_spill] sm:$0xff] %v1880_v29 }
  0x7f   :  { %v1823_v20 = vpop.permute.xlu0 %89  ;;  %v1852_v33 = vmul.f32 %v142_v21, %v1812_v13  ;;  %v1864_v35 = vmul.f32 %v314_v31, %v1812_v13  ;;  %v1871_v42 = vmul.f32 %v1785_v60, %v386_v44  ;;  %v1915_v15 = vmul.f32 %v558_v39, %v1812_v13 }
  0x80   :  { %v77_v37 = vrot.slane %v76_v19, 1  ;;  %v1883_v31 = vmul.f32 %v1801_v4, %v874_v0  ;;  %v1886_v59 = vmul.f32 %v1807_v8, %v996_v9  ;;  %v303_v0 = vperm.slane %v1780_v58, 1 }
  0x82   :  { %v78_v43 = vmax.f32 %v76_v19, %v77_v37  ;;  %v436_v19 = vperm.slane %v1785_v60, 2  ;;  %2914 = vst [vmem:[#allocation23_spill] sm:$0xff] %v1883_v31 }
  0x83   :  { %2915 = vst [vmem:[#allocation24_spill] sm:$0xff] %v1886_v59 }
  0x84   :  { %v79_v50 = vsub.f32 %v1757_v52, %v78_v43 }
  0x85   :  { %v1856_v26 = vpop.permute.xlu2 %197 }
  0x86   :  { %v1858_v7 = vpop.permute.xlu1 %126  ;;  %v80_v21 = vmul.f32 1.442695, %v79_v50  ;;  %v1889_v50 = vadd.f32 %v1849_v24, %v78_v43  ;;  %v1892_v44 = vadd.f32 %v200_v12, %v1856_v26  ;;  %v1897_v57 = vmul.f32 %v205_v22, %v1856_v26 }
  0x87   :  { %2911 = vst [vmem:[#allocation20_spill] sm:$0xff] %v1858_v7  ;;  %v1868_v41 = vpop.permute.xlu0 %189  ;;  %v1902_v9 = vmul.f32 %v347_v34, %v1856_v26  ;;  %v425_v43 = vperm.slane %v1785_v60, 1  ;;  %v1911_v49 = vmul.f32 %v469_v25, %v1856_v26  ;;  %v1928_v39 = vmul.f32 %v591_v16, %v1856_v26 }
  0x88   :  { %2912 = vst [vmem:[#allocation21_spill] sm:$0xff] %v1868_v41  ;;  %1532 = vpow2.f32 %v80_v21  ;;  %v1906_v21 = vmul.f32 %v436_v19, %v1812_v13 }
  0x8e   :  { %v1922_v51 = vpop.permute.xlu1 %210  ;;  %v1533_v34 = vpop.eup %1532 }
  0x8f   :  { %2916 = vst [vmem:[#allocation25_spill] sm:$0xff] %v1922_v51  ;;  %v1930_v6 = vpop.permute.xlu0 %96  ;;  %v108_v37 = vperm.slane %v1533_v34, 1  ;;  %v92_v25 = vperm.slane %v1533_v34, 0  ;;  %v129_v36 = vperm.slane %v1533_v34, 2  ;;  %v150_v10 = vperm.slane %v1533_v34, 3 }
  0x90   :  { %v171_v23 = vperm.slane %v1533_v34, 4  ;;  %v192_v22 = vperm.slane %v1533_v34, 5  ;;  %v213_v18 = vperm.slane %v1533_v34, 6  ;;  %v234_v16 = vperm.slane %v1533_v34, 7 }
  0x91   :  { %v109_v5 = vmul.f32 %v108_v37, %v1814_v14  ;;  %v93_v2 = vmul.f32 %v92_v25, %v1823_v20  ;;  %v130_v3 = vmul.f32 %v129_v36, %v1858_v7  ;;  %v151_v12 = vmul.f32 %v150_v10, %v1682_v27 }
  0x92   :  { %v172_v11 = vmul.f32 %v171_v23, %v1689_v30  ;;  %v193_v59 = vmul.f32 %v192_v22, %v1868_v41  ;;  %v214_v55 = vmul.f32 %v213_v18, %v1922_v51  ;;  %v235_v8 = vmul.f32 %v234_v16, %v1743_v45 }
  0x93   :  { %v110_v31 = vadd.f32 %v109_v5, %v93_v2  ;;  %v2917_v37 = vperm.slane %v1757_v52, 0  ;;  %v2918_v36 = vperm.slane %v1746_v48, 0  ;;  %v2919_v10 = vperm.slane %v1780_v58, 0 }
  0x94   :  { %v2920_v2 = vperm.slane %v1785_v60, 0 }
  0x95   :  { %v100_v34 = vadd.f32 %v2917_v37, %v1930_v6  ;;  %v102_v25 = vmul.f32 %v2918_v36, %v1930_v6  ;;  %v294_v23 = vmul.f32 %v2919_v10, %v1930_v6  ;;  %v131_v18 = vadd.f32 %v130_v3, %v110_v31 }
  0x96   :  { %v416_v5 = vmul.f32 %v2920_v2, %v1930_v6  ;;  %v1959_v16 = vpop.permute.xlu1 %113  ;;  %v2921_v36 = vperm.slane %v1788_v61, 0  ;;  %v2922_v10 = vperm.slane %v1757_v52, 1  ;;  %v2923_v37 = vperm.slane %v1757_v52, 3 }
  0x97   :  { %v1969_v22 = vpop.permute.xlu0 %155  ;;  %v122_v29 = vmul.f32 %v121_v46, %v1959_v16  ;;  %v304_v3 = vmul.f32 %v303_v0, %v1959_v16  ;;  %v426_v31 = vmul.f32 %v425_v43, %v1959_v16  ;;  %v152_v2 = vadd.f32 %v151_v12, %v131_v18 }
  0x98   :  { %v538_v4 = vmul.f32 %v2921_v36, %v1930_v6  ;;  %v117_v54 = vadd.f32 %v2922_v10, %v1959_v16  ;;  %v159_v45 = vadd.f32 %v2923_v37, %v1969_v22  ;;  %v2924_v36 = vperm.slane %v1746_v48, 3 }
  0x99   :  { %v326_v51 = vmul.f32 %v325_v53, %v1969_v22  ;;  %v123_v10 = vadd.f32 %v122_v29, %v102_v25  ;;  %v305_v41 = vadd.f32 %v304_v3, %v294_v23  ;;  %v427_v30 = vadd.f32 %v426_v31, %v416_v5 }
  0x9a   :  { %v164_v19 = vmul.f32 %v2924_v36, %v1969_v22  ;;  %vm118_vm14 = vcmp.gt.f32.partialorder %v117_v54, %v100_v34  ;;  %v173_v46 = vadd.f32 %v172_v11, %v152_v2  ;;  %v2925_v0 = vmov 0  }
  0x9b   :  { %v119_v27 = vsel %vm118_vm14, %v117_v54, %v100_v34  ;;  %v120_v7 = vsel %vm118_vm14, 1, %v2925_v0  ;;  %v2926_v43 = vperm.slane %v1785_v60, 3  ;;  %v144_v18 = vadd.f32 %v1852_v33, %v123_v10 }
  0x9c   :  { %vm139_vm15 = vcmp.gt.f32.partialorder %v1843_v56, %v119_v27  ;;  %v316_v37 = vadd.f32 %v1864_v35, %v305_v41  ;;  %v438_v53 = vadd.f32 %v1906_v21, %v427_v30  ;;  %v194_v36 = vadd.f32 %v193_v59, %v173_v46 }
  0x9d   :  { %v448_v12 = vmul.f32 %v2926_v43, %v1969_v22  ;;  %v140_v29 = vsel %vm139_vm15, %v1843_v56, %v119_v27  ;;  %v141_v25 = vsel %vm139_vm15, 2, %v120_v7  ;;  %v2927_v54 = vperm.slane %v1788_v61, 1 }
  0x9e   :  { %vm160_vm0 = vcmp.gt.f32.partialorder %v159_v45, %v140_v29  ;;  %v165_v34 = vadd.f32 %v164_v19, %v144_v18  ;;  %v327_v23 = vadd.f32 %v326_v51, %v316_v37  ;;  %v215_v3 = vadd.f32 %v214_v55, %v194_v36  ;;  %v1993_v31 = vpop.permute.xlu1 %176 }
  0x9f   :  { %v548_v11 = vmul.f32 %v2927_v54, %v1959_v16  ;;  %v449_v5 = vadd.f32 %v448_v12, %v438_v53  ;;  %v161_v33 = vsel %vm160_vm0, %v159_v45, %v140_v29  ;;  %v162_v2 = vsel %vm160_vm0, 3, %v141_v25  ;;  %v1998_v27 = vpop.permute.xlu0 %218 }
  0xa0   :  { %v2928_v30 = vperm.slane %v1757_v52, 4  ;;  %v2929_v56 = vperm.slane %v1746_v48, 4  ;;  %v2930_v41 = vperm.slane %v1780_v58, 4  ;;  %v2931_v55 = vperm.slane %v1785_v60, 4 }
  0xa1   :  { %v549_v35 = vadd.f32 %v548_v11, %v538_v4  ;;  %v236_v21 = vadd.f32 %v235_v8, %v215_v3  ;;  %v2932_v4 = vperm.slane %v1757_v52, 6  ;;  %v2933_v10 = vperm.slane %v1746_v48, 6 }
  0xa2   :  { %v180_v59 = vadd.f32 %v2928_v30, %v1993_v31  ;;  %v185_v7 = vmul.f32 %v2929_v56, %v1993_v31  ;;  %v337_v51 = vmul.f32 %v2930_v41, %v1993_v31  ;;  %v459_v45 = vmul.f32 %v2931_v55, %v1993_v31 }
  0xa3   :  { %v222_v19 = vadd.f32 %v2932_v4, %v1998_v27  ;;  %v227_v46 = vmul.f32 %v2933_v10, %v1998_v27  ;;  %v2934_v43 = vperm.slane %v1780_v58, 6  ;;  %v2935_v36 = vperm.slane %v1721_v38, 0 }
  0xa4   :  { %vm181_vm1 = vcmp.gt.f32.partialorder %v180_v59, %v161_v33  ;;  %v186_v18 = vadd.f32 %v185_v7, %v165_v34  ;;  %v338_v37 = vadd.f32 %v337_v51, %v327_v23  ;;  %v460_v53 = vadd.f32 %v459_v45, %v449_v5 }
  0xa5   :  { %v359_v12 = vmul.f32 %v2934_v43, %v1998_v27  ;;  %vm2020_vm2 = vcmp.eq.s32.totalorder %v2935_v36, 1  ;;  %v2936_v8 = vmov 0  ;;  %1534 = vlog2.f32 %v236_v21 }
  0xa6   :  { %v2937_v8 = vsel %vm2020_vm2, 4294967295, %v2936_v8  ;;  %v182_v29 = vsel %vm181_vm1, %v180_v59, %v161_v33  ;;  %v183_v25 = vsel %vm181_vm1, 4, %v162_v2  ;;  %v2939_v54 = vperm.slane %v1785_v60, 6 }
  0xa7   :  { %2938 = vst [vmem:[#allocation26_spill] sm:$0xff] %v2937_v8  ;;  %vm202_vm3 = vcmp.gt.f32.partialorder %v1892_v44, %v182_v29  ;;  %v207_v3 = vadd.f32 %v1897_v57, %v186_v18  ;;  %v349_v34 = vadd.f32 %v1902_v9, %v338_v37  ;;  %v471_v23 = vadd.f32 %v1911_v49, %v460_v53  ;;  %v2039_v9 = vpop.permute.xlu1 %239 }
  0xa8   :  { %v481_v11 = vmul.f32 %v2939_v54, %v1998_v27  ;;  %v203_v38 = vsel %vm202_vm3, %v1892_v44, %v182_v29  ;;  %v204_v5 = vsel %vm202_vm3, 5, %v183_v25  ;;  %v560_v30 = vadd.f32 %v1915_v15, %v549_v35  ;;  %v2065_v54 = vld [vmem:[%s2857_s0 + $0x10] sm:$0xff] }
  0xa9   :  { %v2940_v33 = vperm.slane %v1788_v61, 3  ;;  %vm223_vm5 = vcmp.gt.f32.partialorder %v222_v19, %v203_v38  ;;  %v228_v59 = vadd.f32 %v227_v46, %v207_v3  ;;  %v360_v56 = vadd.f32 %v359_v12, %v349_v34 }
  0xaa   :  { %v2941_v7 = vperm.slane %v1791_v62, 0  ;;  %v225_v41 = vsel %vm223_vm5, 6, %v204_v5  ;;  %v482_v49 = vadd.f32 %v481_v11, %v471_v23  ;;  %v2942_v44 = vperm.slane %v1788_v61, 4  ;;  %v2070_v11 = vld [vmem:[%s2857_s0 + $0x18] sm:$0xff] }
  0xab   :  { %v570_v2 = vmul.f32 %v2940_v33, %v1969_v22  ;;  %v2943_v35 = vperm.slane %v1757_v52, 7  ;;  %v2944_v45 = vperm.slane %v1746_v48, 7  ;;  %v2945_v4 = vperm.slane %v1780_v58, 7  ;;  %v1535_v12 = vpop.eup %1534 }
  0xac   :  { %v660_v57 = vmul.f32 %v2941_v7, %v1930_v6  ;;  %v581_v15 = vmul.f32 %v2942_v44, %v1993_v31  ;;  %v2946_v46 = vperm.slane %v1785_v60, 7  ;;  %v224_v18 = vsel %vm223_vm5, %v222_v19, %v203_v38 }
  0xad   :  { %v571_v51 = vadd.f32 %v570_v2, %v560_v30  ;;  %v243_v55 = vadd.f32 %v2943_v35, %v2039_v9  ;;  %v248_v21 = vmul.f32 %v2944_v45, %v2039_v9  ;;  %v370_v10 = vmul.f32 %v2945_v4, %v2039_v9 }
  0xae   :  { %v492_v43 = vmul.f32 %v2946_v46, %v2039_v9  ;;  %v2947_v53 = vperm.slane %v1788_v61, 6  ;;  %v2948_v29 = vperm.slane %v1791_v62, 1  ;;  %v252_v19 = vmul.f32 0.6931472, %v1535_v12 }
  0xaf   :  { %v582_v37 = vadd.f32 %v581_v15, %v571_v51  ;;  %vm244_vm6 = vcmp.gt.f32.partialorder %v243_v55, %v224_v18  ;;  %v249_v3 = vadd.f32 %v248_v21, %v228_v59  ;;  %v371_v34 = vadd.f32 %v370_v10, %v360_v56 }
  0xb0   :  { %v603_v36 = vmul.f32 %v2947_v53, %v1998_v27  ;;  %v670_v25 = vmul.f32 %v2948_v29, %v1959_v16  ;;  %v245_v23 = vsel %vm244_vm6, %v243_v55, %v224_v18  ;;  %v246_v38 = vsel %vm244_vm6, 7, %v225_v41 }
  0xb1   :  { %v493_v5 = vadd.f32 %v492_v43, %v482_v49  ;;  %v593_v30 = vadd.f32 %v1928_v39, %v582_v37  ;;  %v253_v33 = vadd.f32 %v252_v19, %v1889_v50  ;;  %v258_v2 = vadd.f32 %v1849_v24, %v245_v23 }
  0xb2   :  { %v260_v7 = vsel %vm2020_vm2, %v246_v38, %v1696_v32  ;;  %v266_v51 = vadd.f32 %v1849_v24, %v249_v3  ;;  %v388_v59 = vadd.f32 %v2065_v54, %v371_v34  ;;  %v2949_v39 = vperm.slane %v1788_v61, 7  ;;  %v2119_v34 = vld [vmem:[%s2857_s0 + $0x20] sm:$0xff] }
  0xb3   :  { %262 = vst.msk [vmem:[#allocation2 + $0x8] sm:$0xff] %vm71_vm4, %v260_v7  ;;  %v510_v56 = vadd.f32 %v2070_v11, %v493_v5  ;;  %v604_v41 = vadd.f32 %v603_v36, %v593_v30  ;;  %v2088_v50 = vsel %vm2020_vm2, %v253_v33, %v1757_v52  ;;  %v2093_v24 = vsel %vm2020_vm2, %v258_v2, %v1757_v52 }
  0xb4   :  { %v614_v49 = vmul.f32 %v2949_v39, %v2039_v9  ;;  %v267_v44 = vmul.f32 %v266_v51, %v1861_v28  ;;  %v671_v15 = vadd.f32 %v670_v25, %v660_v57  ;;  %v274_v35 = vsel %vm71_vm4, %v2088_v50, -inf }
  0xb5   :  { %v291_v55 = vperm.slane %v2093_v24, 0  ;;  %v298_v45 = vperm.slane %v2093_v24, 1  ;;  %v309_v21 = vperm.slane %v2093_v24, 2  ;;  %v275_v4 = vrot.slane %v274_v35, 4 }
  0xb6   :  { %v320_v10 = vperm.slane %v2093_v24, 3  ;;  %v331_v46 = vperm.slane %v2093_v24, 4  ;;  %v342_v52 = vperm.slane %v2093_v24, 5  ;;  %v353_v57 = vperm.slane %v2093_v24, 6 }
  0xb7   :  { %v292_v43 = vadd.f32 %v291_v55, %v1930_v6  ;;  %v299_v28 = vadd.f32 %v298_v45, %v1959_v16  ;;  %v2950_v12 = vperm.slane %v1791_v62, 2  ;;  %v276_v37 = vmax.f32 %v274_v35, %v275_v4 }
  0xb8   :  { %v310_v53 = vadd.f32 %v309_v21, %v1812_v13  ;;  %v321_v36 = vadd.f32 %v320_v10, %v1969_v22  ;;  %v332_v29 = vadd.f32 %v331_v46, %v1993_v31  ;;  %v343_v25 = vadd.f32 %v342_v52, %v1856_v26 }
  0xb9   :  { %v681_v18 = vmul.f32 %v2950_v12, %v1812_v13  ;;  %vm300_vm7 = vcmp.gt.f32.partialorder %v299_v28, %v292_v43  ;;  %v354_v19 = vadd.f32 %v353_v57, %v1998_v27  ;;  %v268_v3 = vadd.f32 %v267_v44, %v1820_v17 }
  0xba   :  { %v277_v23 = vrot.slane %v276_v37, 2  ;;  %v301_v38 = vsel %vm300_vm7, %v299_v28, %v292_v43  ;;  %v302_v5 = vsel %vm300_vm7, 1, %v2925_v0  ;;  %v389_v30 = vmul.f32 %v388_v59, %v1871_v42 }
  0xbb   :  { %vm311_vm8 = vcmp.gt.f32.partialorder %v310_v53, %v301_v38  ;;  %v364_v33 = vperm.slane %v2093_v24, 7  ;;  %v511_v2 = vmul.f32 %v510_v56, %v1874_v47  ;;  %v615_v7 = vadd.f32 %v614_v49, %v604_v41 }
  0xbc   :  { %v278_v51 = vmax.f32 %v276_v37, %v277_v23  ;;  %v312_v39 = vsel %vm311_vm8, %v310_v53, %v301_v38  ;;  %v313_v17 = vsel %vm311_vm8, 2, %v302_v5  ;;  %v390_v44 = vadd.f32 %v389_v30, %v268_v3 }
  0xbd   :  { %vm322_vm9 = vcmp.gt.f32.partialorder %v321_v36, %v312_v39  ;;  %v632_v35 = vadd.f32 %v2119_v34, %v615_v7  ;;  %v682_v55 = vadd.f32 %v681_v18, %v671_v15  ;;  %v691_v45 = vperm.slane %v1791_v62, 3 }
  0xbe   :  { %v2951_v21 = vperm.slane %v1727_v40, 0  ;;  %v279_v59 = vrot.slane %v278_v51, 1  ;;  %v323_v4 = vsel %vm322_vm9, %v321_v36, %v312_v39  ;;  %v324_v47 = vsel %vm322_vm9, 3, %v313_v17 }
  0xbf   :  { %v512_v56 = vadd.f32 %v511_v2, %v390_v44  ;;  %vm333_vm11 = vcmp.gt.f32.partialorder %v332_v29, %v323_v4  ;;  %v633_v41 = vmul.f32 %v632_v35, %v1877_v63  ;;  %v692_v49 = vmul.f32 %v691_v45, %v1969_v22 }
  0xc0   :  { %vm2129_vm10 = vcmp.eq.s32.totalorder %v2951_v21, 1  ;;  %v702_v10 = vperm.slane %v1791_v62, 4  ;;  %v2136_v15 = vmax.f32 %v278_v51, %v279_v59  ;;  %v334_v46 = vsel %vm333_vm11, %v332_v29, %v323_v4 }
  0xc1   :  { %v335_v52 = vsel %vm333_vm11, 4, %v324_v47  ;;  %v365_v40 = vadd.f32 %v364_v33, %v2039_v9  ;;  %vm344_vm12 = vcmp.gt.f32.partialorder %v343_v25, %v334_v46  ;;  %v2139_v43 = vadd.f32 %v633_v41, %v512_v56 }
  0xc2   :  { %v693_v28 = vadd.f32 %v692_v49, %v682_v55  ;;  %v703_v57 = vmul.f32 %v702_v10, %v1993_v31  ;;  %v281_v12 = vsub.f32 %v2088_v50, %v2136_v15  ;;  %v345_v63 = vsel %vm344_vm12, %v343_v25, %v334_v46 }
  0xc3   :  { %v346_v18 = vsel %vm344_vm12, 5, %v335_v52  ;;  %v2954_v37 = vperm.slane %v1791_v62, 5  ;;  %vm355_vm13 = vcmp.gt.f32.partialorder %v354_v19, %v345_v63  ;;  %v724_v29 = vperm.slane %v1791_v62, 6 }
  0xc4   :  { %v704_v36 = vadd.f32 %v703_v57, %v693_v28  ;;  %v735_v3 = vperm.slane %v1791_v62, 7  ;;  %v282_v23 = vmul.f32 1.442695, %v281_v12  ;;  %v356_v38 = vsel %vm355_vm13, %v354_v19, %v345_v63 }
  0xc5   :  { %v714_v53 = vmul.f32 %v2954_v37, %v1856_v26  ;;  %v357_v5 = vsel %vm355_vm13, 6, %v346_v18  ;;  %v781_v30 = vperm.slane %v1795_v1, 0  ;;  %vm366_vm14 = vcmp.gt.f32.partialorder %v365_v40, %v356_v38 }
  0xc6   :  { %v725_v25 = vmul.f32 %v724_v29, %v1998_v27  ;;  %v736_v2 = vmul.f32 %v735_v3, %v2039_v9  ;;  %1536 = vpow2.f32 %v282_v23  ;;  %v367_v7 = vsel %vm366_vm14, %v365_v40, %v356_v38 }
  0xc7   :  { %v715_v33 = vadd.f32 %v714_v53, %v704_v36  ;;  %v368_v51 = vsel %vm366_vm14, 7, %v357_v5  ;;  %v782_v39 = vmul.f32 %v781_v30, %v1930_v6  ;;  %v380_v17 = vadd.f32 %v2065_v54, %v367_v7  ;;  %v2955_v7 = vld [vmem:[#allocation20_spill] sm:$0xff] }
  0xc8   :  { %v382_v19 = vsel %vm2129_vm10, %v368_v51, %v1696_v32  ;;  %v791_v35 = vperm.slane %v1795_v1, 1  ;;  %v802_v55 = vperm.slane %v1795_v1, 2  ;;  %v813_v45 = vperm.slane %v1795_v1, 3 }
  0xc9   :  { %v726_v44 = vadd.f32 %v725_v25, %v715_v33  ;;  %384 = vst.msk [vmem:[#allocation2 + $0x10] sm:$0xff] %vm71_vm4, %v382_v19  ;;  %v824_v21 = vperm.slane %v1795_v1, 4  ;;  %v835_v59 = vperm.slane %v1795_v1, 5  ;;  %v2166_v4 = vsel %vm2129_vm10, %v380_v17, %v2093_v24  ;;  %v2956_v17 = vld [vmem:[#allocation6_spill] sm:$0xff] }
  0xca   :  { %v792_v56 = vmul.f32 %v791_v35, %v1959_v16  ;;  %v846_v41 = vperm.slane %v1795_v1, 6  ;;  %v413_v49 = vperm.slane %v2166_v4, 0  ;;  %v420_v10 = vperm.slane %v2166_v4, 1  ;;  %v2957_v35 = vld [vmem:[#allocation7_spill] sm:$0xff] }
  0xcb   :  { %v737_v47 = vadd.f32 %v736_v2, %v726_v44  ;;  %v431_v46 = vperm.slane %v2166_v4, 2  ;;  %v442_v52 = vperm.slane %v2166_v4, 3  ;;  %v453_v40 = vperm.slane %v2166_v4, 4  ;;  %v2189_v44 = vld [vmem:[%s2857_s0 + $0x28] sm:$0xff] }
  0xcc   :  { %v464_v28 = vperm.slane %v2166_v4, 5  ;;  %v475_v24 = vperm.slane %v2166_v4, 6  ;;  %v486_v57 = vperm.slane %v2166_v4, 7  ;;  %v1537_v12 = vpop.eup %1536  ;;  %v414_v63 = vadd.f32 %v413_v49, %v1930_v6 }
  0xcd   :  { %v421_v18 = vadd.f32 %v420_v10, %v1959_v16  ;;  %v432_v37 = vadd.f32 %v431_v46, %v1812_v13  ;;  %v443_v53 = vadd.f32 %v442_v52, %v1969_v22  ;;  %v289_v36 = vperm.slane %v1537_v12, 0  ;;  %v2958_v10 = vld [vmem:[#allocation21_spill] sm:$0xff] }
  0xce   :  { %v295_v29 = vperm.slane %v1537_v12, 1  ;;  %v306_v3 = vperm.slane %v1537_v12, 2  ;;  %v317_v23 = vperm.slane %v1537_v12, 3  ;;  %v328_v38 = vperm.slane %v1537_v12, 4  ;;  %v2959_v52 = vld [vmem:[#allocation25_spill] sm:$0xff] }
  0xcf   :  { %v339_v5 = vperm.slane %v1537_v12, 5  ;;  %v350_v30 = vperm.slane %v1537_v12, 6  ;;  %v361_v33 = vperm.slane %v1537_v12, 7  ;;  %v290_v25 = vmul.f32 %v289_v36, %v1823_v20  ;;  %v2960_v12 = vld [vmem:[#allocation8_spill] sm:$0xff] }
  0xd0   :  { %v296_v2 = vmul.f32 %v295_v29, %v1814_v14  ;;  %v307_v51 = vmul.f32 %v306_v3, %v2955_v7  ;;  %v318_v19 = vmul.f32 %v317_v23, %v2956_v17  ;;  %v329_v49 = vmul.f32 %v328_v38, %v2957_v35 }
  0xd1   :  { %v340_v46 = vmul.f32 %v339_v5, %v2958_v10  ;;  %v351_v62 = vmul.f32 %v350_v30, %v2959_v52  ;;  %v362_v61 = vmul.f32 %v361_v33, %v2960_v12  ;;  %vm422_vm15 = vcmp.gt.f32.partialorder %v421_v18, %v414_v63 }
  0xd2   :  { %v297_v36 = vadd.f32 %v296_v2, %v290_v25  ;;  %v454_v29 = vadd.f32 %v453_v40, %v1993_v31  ;;  %v465_v3 = vadd.f32 %v464_v28, %v1856_v26  ;;  %v423_v23 = vsel %vm422_vm15, %v421_v18, %v414_v63  ;;  %v2961_v28 = vld [vmem:[#allocation22_spill] sm:$0xff] }
  0xd3   :  { %v424_v60 = vsel %vm422_vm15, 1, %v2925_v0  ;;  %v476_v8 = vadd.f32 %v475_v24, %v1998_v27  ;;  %v487_v58 = vadd.f32 %v486_v57, %v2039_v9  ;;  %vm433_vm0 = vcmp.gt.f32.partialorder %v432_v37, %v423_v23  ;;  %v2962_v24 = vld [vmem:[#allocation10_spill] sm:$0xff] }
  0xd4   :  { %v308_v38 = vadd.f32 %v307_v51, %v297_v36  ;;  %v754_v5 = vadd.f32 %v2189_v44, %v737_v47  ;;  %v793_v30 = vadd.f32 %v792_v56, %v782_v39  ;;  %v434_v48 = vsel %vm433_vm0, %v432_v37, %v423_v23  ;;  %v2966_v23 = vld [vmem:[#allocation18_spill] sm:$0xff] }
  0xd5   :  { %v435_v33 = vsel %vm433_vm0, 2, %v424_v60  ;;  %v803_v25 = vmul.f32 %v802_v55, %v1812_v13  ;;  %v814_v40 = vmul.f32 %v813_v45, %v1969_v22  ;;  %vm444_vm1 = vcmp.gt.f32.partialorder %v443_v53, %v434_v48  ;;  %v2995_v57 = vld [vmem:[#allocation18_spill] sm:$0xff] }
  0xd6   :  { %v319_v2 = vadd.f32 %v318_v19, %v308_v38  ;;  %v755_v63 = vmul.f32 %v754_v5, %v2961_v28  ;;  %v825_v18 = vmul.f32 %v824_v21, %v1993_v31  ;;  %v2963_v12 = vperm.slane %v2962_v24, 0 }
  0xd7   :  { %v445_v47 = vsel %vm444_vm1, %v443_v53, %v434_v48  ;;  %v446_v39 = vsel %vm444_vm1, 3, %v435_v33  ;;  %v804_v56 = vadd.f32 %v803_v25, %v793_v30  ;;  %v836_v60 = vmul.f32 %v835_v59, %v1856_v26 }
  0xd8   :  { %vm2207_vm3 = vcmp.eq.s32.totalorder %v2963_v12, 1  ;;  %v330_v55 = vadd.f32 %v329_v49, %v319_v2  ;;  %vm455_vm5 = vcmp.gt.f32.partialorder %v454_v29, %v445_v47  ;;  %v2213_v45 = vadd.f32 %v755_v63, %v2139_v43 }
  0xd9   :  { %v847_v37 = vmul.f32 %v846_v41, %v1998_v27  ;;  %v456_v51 = vsel %vm455_vm5, %v454_v29, %v445_v47  ;;  %v457_v21 = vsel %vm455_vm5, 4, %v446_v39  ;;  %v815_v19 = vadd.f32 %v814_v40, %v804_v56 }
  0xda   :  { %v857_v12 = vperm.slane %v1795_v1, 7  ;;  %v341_v36 = vadd.f32 %v340_v46, %v330_v55  ;;  %vm466_vm6 = vcmp.gt.f32.partialorder %v465_v3, %v456_v51  ;;  %v903_v48 = vperm.slane %v2966_v23, 0  ;;  %v1515_v1 = vld [vmem:[%s2859_s2 + $0x9] ss:$0 sm:$0xff] }
  0xdb   :  { %v913_v53 = vperm.slane %v2966_v23, 1  ;;  %v467_v38 = vsel %vm466_vm6, %v465_v3, %v456_v51  ;;  %v468_v59 = vsel %vm466_vm6, 5, %v457_v21  ;;  %v826_v49 = vadd.f32 %v825_v18, %v815_v19 }
  0xdc   :  { %v858_v5 = vmul.f32 %v857_v12, %v2039_v9  ;;  %v352_v43 = vadd.f32 %v351_v62, %v341_v36  ;;  %vm477_vm7 = vcmp.gt.f32.partialorder %v476_v8, %v467_v38  ;;  %v904_v41 = vmul.f32 %v903_v48, %v1930_v6  ;;  %v2249_v12 = vld [vmem:[%s2857_s0 + $0x30] sm:$0xff] }
  0xdd   :  { %v914_v29 = vmul.f32 %v913_v53, %v1959_v16  ;;  %v478_v30 = vsel %vm477_vm7, %v476_v8, %v467_v38  ;;  %v479_v33 = vsel %vm477_vm7, 6, %v468_v59  ;;  %v837_v25 = vadd.f32 %v836_v60, %v826_v49 }
  0xde   :  { %v924_v46 = vperm.slane %v2966_v23, 2  ;;  %v363_v40 = vadd.f32 %v362_v61, %v352_v43  ;;  %vm488_vm8 = vcmp.gt.f32.partialorder %v487_v58, %v478_v30  ;;  %v935_v3 = vperm.slane %v2966_v23, 3 }
  0xdf   :  { %v915_v2 = vadd.f32 %v914_v29, %v904_v41  ;;  %v489_v28 = vsel %vm488_vm8, %v487_v58, %v478_v30  ;;  %v490_v63 = vsel %vm488_vm8, 7, %v479_v33  ;;  %v848_v18 = vadd.f32 %v847_v37, %v837_v25 }
  0xe0   :  { %v925_v62 = vmul.f32 %v924_v46, %v1812_v13  ;;  %v372_v24 = vadd.f32 %v2065_v54, %v2136_v15  ;;  %1538 = vlog2.f32 %v363_v40  ;;  %v502_v8 = vadd.f32 %v2070_v11, %v489_v28 }
  0xe1   :  { %v504_v47 = vsel %vm2207_vm3, %v490_v63, %v1696_v32  ;;  %v859_v61 = vadd.f32 %v858_v5, %v848_v18  ;;  %v936_v58 = vmul.f32 %v935_v3, %v1969_v22  ;;  %v946_v56 = vperm.slane %v2966_v23, 4  ;;  %v2967_v5 = vld [vmem:[#allocation19_spill] sm:$0xff]  ;;  %v2268_v3 = vld [vmem:[%s2859_s2 + $0x8] ss:$0 sm:$0xff] }
  0xe2   :  { %506 = vst.msk [vmem:[#allocation2 + $0x18] sm:$0xff] %vm71_vm4, %v504_v47  ;;  %v926_v39 = vadd.f32 %v925_v62, %v915_v2  ;;  %v2237_v60 = vsel %vm2207_vm3, %v502_v8, %v2166_v4  ;;  %v957_v54 = vperm.slane %v2966_v23, 5  ;;  %v968_v15 = vperm.slane %v2966_v23, 6  ;;  %v2968_v47 = vld [vmem:[#allocation23_spill] sm:$0xff] }
  0xe3   :  { %v979_v55 = vperm.slane %v2966_v23, 7  ;;  %v535_v37 = vperm.slane %v2237_v60, 0  ;;  %v542_v51 = vperm.slane %v2237_v60, 1  ;;  %v553_v21 = vperm.slane %v2237_v60, 2 }
  0xe4   :  { %v564_v19 = vperm.slane %v2237_v60, 3  ;;  %v575_v4 = vperm.slane %v2237_v60, 4  ;;  %v586_v36 = vperm.slane %v2237_v60, 5  ;;  %v597_v48 = vperm.slane %v2237_v60, 6 }
  0xe5   :  { %v608_v53 = vperm.slane %v2237_v60, 7  ;;  %v536_v38 = vadd.f32 %v535_v37, %v1930_v6  ;;  %v543_v59 = vadd.f32 %v542_v51, %v1959_v16  ;;  %v554_v49 = vadd.f32 %v553_v21, %v1812_v13 }
  0xe6   :  { %v1025_v43 = vperm.slane %v2967_v5, 0  ;;  %v1539_v41 = vpop.eup %1538  ;;  %v565_v29 = vadd.f32 %v564_v19, %v1969_v22  ;;  %v576_v30 = vadd.f32 %v575_v4, %v1993_v31  ;;  %v587_v33 = vadd.f32 %v586_v36, %v1856_v26 }
  0xe7   :  { %v598_v25 = vadd.f32 %v597_v48, %v1998_v27  ;;  %v374_v46 = vmul.f32 0.6931472, %v1539_v41  ;;  %vm544_vm9 = vcmp.gt.f32.partialorder %v543_v59, %v536_v38  ;;  %v609_v40 = vadd.f32 %v608_v53, %v2039_v9 }
  0xe8   :  { %v876_v2 = vadd.f32 %v2249_v12, %v859_v61  ;;  %v545_v28 = vsel %vm544_vm9, %v543_v59, %v536_v38  ;;  %v546_v63 = vsel %vm544_vm9, 1, %v2925_v0  ;;  %v937_v18 = vadd.f32 %v936_v58, %v926_v39  ;;  %v2969_v58 = vld [vmem:[#allocation11_spill] sm:$0xff] }
  0xe9   :  { %v947_v62 = vmul.f32 %v946_v56, %v1993_v31  ;;  %v375_v8 = vadd.f32 %v374_v46, %v372_v24  ;;  %vm555_vm11 = vcmp.gt.f32.partialorder %v554_v49, %v545_v28  ;;  %v958_v51 = vmul.f32 %v957_v54, %v1856_v26 }
  0xea   :  { %v877_v37 = vmul.f32 %v876_v2, %v2968_v47  ;;  %v556_v21 = vsel %vm555_vm11, %v554_v49, %v545_v28  ;;  %v557_v19 = vsel %vm555_vm11, 2, %v546_v63  ;;  %v969_v4 = vmul.f32 %v968_v15, %v1998_v27  ;;  %v2298_v2 = vld [vmem:[%s2857_s0 + $0x38] sm:$0xff] }
  0xeb   :  { %v948_v61 = vadd.f32 %v947_v62, %v937_v18  ;;  %v2278_v36 = vsel %vm2129_vm10, %v375_v8, %v2088_v50  ;;  %vm566_vm12 = vcmp.gt.f32.partialorder %v565_v29, %v556_v21  ;;  %v980_v24 = vmul.f32 %v979_v55, %v2039_v9 }
  0xec   :  { %v878_v39 = vadd.f32 %v877_v37, %v2213_v45  ;;  %v2970_v56 = vperm.slane %v2969_v58, 0  ;;  %vm1018_vm14 = vcmp.eq.s32.totalorder %v1696_v32, %v2268_v3  ;;  %v396_v54 = vsel %vm71_vm4, %v2278_v36, -inf }
  0xed   :  { %v567_v15 = vsel %vm566_vm12, %v565_v29, %v556_v21  ;;  %v568_v50 = vsel %vm566_vm12, 3, %v557_v19  ;;  %v959_v53 = vadd.f32 %v958_v51, %v948_v61  ;;  %v397_v38 = vrot.slane %v396_v54, 4 }
  0xee   :  { %vm2284_vm13 = vcmp.eq.s32.totalorder %v2970_v56, 1  ;;  %vm577_vm15 = vcmp.gt.f32.partialorder %v576_v30, %v567_v15  ;;  %v1035_v45 = vperm.slane %v2967_v5, 1  ;;  %v1046_v55 = vperm.slane %v2967_v5, 2 }
  0xef   :  { %v578_v59 = vsel %vm577_vm15, %v576_v30, %v567_v15  ;;  %v579_v49 = vsel %vm577_vm15, 4, %v568_v50  ;;  %v970_v41 = vadd.f32 %v969_v4, %v959_v53  ;;  %v1026_v46 = vmul.f32 %v1025_v43, %v1930_v6  ;;  %v2306_v43 = vld [vmem:[%s2858_s1 + $0x8] sm:$0x1] }
  0xf0   :  { %v398_v28 = vmax.f32 %v396_v54, %v397_v38  ;;  %vm588_vm0 = vcmp.gt.f32.partialorder %v587_v33, %v578_v59  ;;  %v1036_v29 = vmul.f32 %v1035_v45, %v1959_v16  ;;  %v1057_v63 = vperm.slane %v2967_v5, 3  ;;  %v2973_v15 = vld [vmem:[#allocation24_spill] sm:$0xff] }
  0xf1   :  { %v589_v18 = vsel %vm588_vm0, %v587_v33, %v578_v59  ;;  %v590_v62 = vsel %vm588_vm0, 5, %v579_v49  ;;  %v981_v8 = vadd.f32 %v980_v24, %v970_v41  ;;  %v1047_v30 = vmul.f32 %v1046_v55, %v1812_v13  ;;  %v2974_v59 = vld [vmem:[#allocation17_spill] sm:$0xff] }
  0xf2   :  { %v399_v47 = vrot.slane %v398_v28, 2  ;;  %vm599_vm1 = vcmp.gt.f32.partialorder %v598_v25, %v589_v18  ;;  %v1037_v37 = vadd.f32 %v1036_v29, %v1026_v46  ;;  %v1068_v51 = vperm.slane %v2967_v5, 4 }
  0xf3   :  { %v1117_v21 = vcvt.s32.f32 %v2306_v43  ;;  %v600_v19 = vsel %vm599_vm1, %v598_v25, %v589_v18  ;;  %v601_v61 = vsel %vm599_vm1, 6, %v590_v62  ;;  %v998_v33 = vadd.f32 %v2298_v2, %v981_v8 }
  0xf4   :  { %v400_v4 = vmax.f32 %v398_v28, %v399_v47  ;;  %vm610_vm5 = vcmp.gt.f32.partialorder %v609_v40, %v600_v19  ;;  %v1048_v24 = vadd.f32 %v1047_v30, %v1037_v37  ;;  %v1058_v58 = vmul.f32 %v1057_v63, %v1969_v22 }
  0xf5   :  { %v611_v56 = vsel %vm610_vm5, %v609_v40, %v600_v19  ;;  %v612_v54 = vsel %vm610_vm5, 7, %v601_v61  ;;  %v999_v50 = vmul.f32 %v998_v33, %v2973_v15  ;;  %v1069_v53 = vmul.f32 %v1068_v51, %v1993_v31 }
  0xf6   :  { %v401_v38 = vrot.slane %v400_v4, 1  ;;  %v624_v45 = vadd.f32 %v2119_v34, %v611_v56  ;;  %v626_v25 = vsel %vm2284_vm13, %v612_v54, %v1696_v32  ;;  %v1079_v55 = vperm.slane %v2967_v5, 5 }
  0xf7   :  { %v743_v49 = vperm.slane %v2974_v59, 0  ;;  %628 = vst.msk [vmem:[#allocation2 + $0x20] sm:$0xff] %vm71_vm4, %v626_v25  ;;  %v2321_v41 = vadd.f32 %v999_v50, %v878_v39  ;;  %v1059_v40 = vadd.f32 %v1058_v58, %v1048_v24  ;;  %v2975_v46 = vmov 0.0   ;;  %v2340_v39 = vld [vmem:[%s2858_s1 + $0x9] sm:$0x1] }
  0xf8   :  { %v2327_v28 = vsel %vm1018_vm14, 1.0, %v2975_v46  ;;  %v2329_v34 = vmax.f32 %v400_v4, %v401_v38  ;;  %v2334_v29 = vsel %vm2284_vm13, %v624_v45, %v2237_v60  ;;  %v1090_v63 = vperm.slane %v2967_v5, 6 }
  0xf9   :  { %v657_v18 = vperm.slane %v2334_v29, 0  ;;  %v664_v3 = vperm.slane %v2334_v29, 1  ;;  %v675_v62 = vperm.slane %v2334_v29, 2  ;;  %v1070_v8 = vadd.f32 %v1069_v53, %v1059_v40 }
  0xfa   :  { %v1118_v30 = vperm.slane %v1117_v21, 0  ;;  %v403_v60 = vsub.f32 %v2278_v36, %v2329_v34  ;;  %v1080_v37 = vmul.f32 %v1079_v55, %v1856_v26  ;;  %v686_v61 = vperm.slane %v2334_v29, 3 }
  0xfb   :  { %v658_v51 = vadd.f32 %v657_v18, %v1930_v6  ;;  %v665_v19 = vadd.f32 %v664_v3, %v1959_v16  ;;  %v1101_v33 = vperm.slane %v2967_v5, 7  ;;  %v697_v24 = vperm.slane %v2334_v29, 4 }
  0xfc   :  { %v404_v4 = vmul.f32 1.442695, %v403_v60  ;;  %v1147_v21 = vperm.slane %v2327_v28, 0  ;;  %v1157_v58 = vperm.slane %v2327_v28, 1  ;;  %v676_v56 = vadd.f32 %v675_v62, %v1812_v13 }
  0xfd   :  { %vm666_vm6 = vcmp.gt.f32.partialorder %v665_v19, %v658_v51  ;;  %v1081_v54 = vadd.f32 %v1080_v37, %v1070_v8  ;;  %v1091_v15 = vmul.f32 %v1090_v63, %v1998_v27  ;;  %v708_v38 = vperm.slane %v2334_v29, 5  ;;  %v2369_v37 = vld [vmem:[%s2857_s0 + $0x40] sm:$0xff] }
  0xfe   :  { %1540 = vpow2.f32 %v404_v4  ;;  %v667_v50 = vsel %vm666_vm6, %v665_v19, %v658_v51  ;;  %v668_v53 = vsel %vm666_vm6, 1, %v2925_v0  ;;  %v687_v45 = vadd.f32 %v686_v61, %v1969_v22 }
  0xff   :  { %vm677_vm7 = vcmp.gt.f32.partialorder %v676_v56, %v667_v50  ;;  %v1092_v25 = vadd.f32 %v1091_v15, %v1081_v54  ;;  %v1102_v55 = vmul.f32 %v1101_v33, %v2039_v9  ;;  %v719_v18 = vperm.slane %v2334_v29, 6 }
 0x100   :  { %v678_v40 = vsel %vm677_vm7, %v676_v56, %v667_v50  ;;  %v730_v3 = vperm.slane %v2334_v29, 7  ;;  %v1158_v62 = vmul.f32 %v1157_v58, %v1959_v16  ;;  %v679_v63 = vsel %vm677_vm7, 2, %v668_v53 }
 0x101   :  { %vm688_vm8 = vcmp.gt.f32.partialorder %v687_v45, %v678_v40  ;;  %v698_v8 = vadd.f32 %v697_v24, %v1993_v31  ;;  %v1103_v60 = vadd.f32 %v1102_v55, %v1092_v25  ;;  %v1148_v19 = vmul.f32 %v1147_v21, %v1930_v6 }
 0x102   :  { %v689_v51 = vsel %vm688_vm8, %v687_v45, %v678_v40  ;;  %v1168_v61 = vperm.slane %v2327_v28, 2  ;;  %v1179_v33 = vperm.slane %v2327_v28, 3  ;;  %v1119_v4 = vmul.f32 %v2327_v28, %v1118_v30 }
 0x103   :  { %vm699_vm9 = vcmp.gt.f32.partialorder %v698_v8, %v689_v51  ;;  %v709_v58 = vadd.f32 %v708_v38, %v1856_v26  ;;  %v1190_v24 = vperm.slane %v2327_v28, 4  ;;  %v690_v54 = vsel %vm688_vm8, 3, %v679_v63 }
 0x104   :  { %v2377_v56 = vpop.eup %1540  ;;  %v720_v15 = vadd.f32 %v719_v18, %v1998_v27  ;;  %v731_v50 = vadd.f32 %v730_v3, %v2039_v9  ;;  %v1159_v53 = vadd.f32 %v1158_v62, %v1148_v19  ;;  %v1120_v30 = vadd.f32 %v2369_v37, %v1103_v60 }
 0x105   :  { %v411_v21 = vperm.slane %v2377_v56, 0  ;;  %v417_v45 = vperm.slane %v2377_v56, 1  ;;  %v428_v25 = vperm.slane %v2377_v56, 2  ;;  %vm2387_vm11 = vcmp.eq.s32.totalorder %v743_v49, 1 }
 0x106   :  { %v439_v55 = vperm.slane %v2377_v56, 3  ;;  %v700_v40 = vsel %vm699_vm9, %v698_v8, %v689_v51  ;;  %v1169_v18 = vmul.f32 %v1168_v61, %v1812_v13  ;;  %v1180_v3 = vmul.f32 %v1179_v33, %v1969_v22 }
 0x107   :  { %v412_v62 = vmul.f32 %v411_v21, %v1823_v20  ;;  %v418_v63 = vmul.f32 %v417_v45, %v1814_v14  ;;  %v701_v60 = vsel %vm699_vm9, 4, %v690_v54  ;;  %v1191_v59 = vmul.f32 %v1190_v24, %v1993_v31 }
 0x108   :  { %v429_v49 = vmul.f32 %v428_v25, %v2955_v7  ;;  %v450_v19 = vperm.slane %v2377_v56, 4  ;;  %v461_v47 = vperm.slane %v2377_v56, 5  ;;  %v1201_v5 = vperm.slane %v2327_v28, 5 }
 0x109   :  { %v419_v23 = vadd.f32 %v418_v63, %v412_v62  ;;  %vm710_vm12 = vcmp.gt.f32.partialorder %v709_v58, %v700_v40  ;;  %v1121_v61 = vmul.f32 %v1120_v30, %v1119_v4  ;;  %v1170_v33 = vadd.f32 %v1169_v18, %v1159_v53 }
 0x10a   :  { %v440_v21 = vmul.f32 %v439_v55, %v2956_v17  ;;  %v472_v45 = vperm.slane %v2377_v56, 6  ;;  %v711_v8 = vsel %vm710_vm12, %v709_v58, %v700_v40  ;;  %v712_v51 = vsel %vm710_vm12, 5, %v701_v60 }
 0x10b   :  { %v430_v54 = vadd.f32 %v429_v49, %v419_v23  ;;  %vm721_vm14 = vcmp.gt.f32.partialorder %v720_v15, %v711_v8  ;;  %v2406_v24 = vadd.f32 %v1121_v61, %v2321_v41  ;;  %v1181_v25 = vadd.f32 %v1180_v3, %v1170_v33 }
 0x10c   :  { %v451_v62 = vmul.f32 %v450_v19, %v2957_v35  ;;  %v483_v4 = vperm.slane %v2377_v56, 7  ;;  %v722_v53 = vsel %vm721_vm14, %v720_v15, %v711_v8  ;;  %v723_v30 = vsel %vm721_vm14, 6, %v712_v51 }
 0x10d   :  { %v441_v55 = vadd.f32 %v440_v21, %v430_v54  ;;  %vm732_vm15 = vcmp.gt.f32.partialorder %v731_v50, %v722_v53  ;;  %v1192_v58 = vadd.f32 %v1191_v59, %v1181_v25  ;;  %v1212_v23 = vperm.slane %v2327_v28, 6 }
 0x10e   :  { %v733_v40 = vsel %vm732_vm15, %v731_v50, %v722_v53  ;;  %v734_v18 = vsel %vm732_vm15, 7, %v723_v30  ;;  %v1202_v41 = vmul.f32 %v1201_v5, %v1856_v26  ;;  %v1223_v3 = vperm.slane %v2327_v28, 7  ;;  %v2446_v30 = vld [vmem:[%s2857_s0 + $0x48] sm:$0xff] }
 0x10f   :  { %v452_v63 = vadd.f32 %v451_v62, %v441_v55  ;;  %v462_v60 = vmul.f32 %v461_v47, %v2958_v10  ;;  %v746_v49 = vadd.f32 %v2189_v44, %v733_v40  ;;  %v748_v56 = vsel %vm2387_vm11, %v734_v18, %v1696_v32  ;;  %v1572_v40 = vld [vmem:[%s2858_s1 + $0x6] sm:$0x1] }
 0x110   :  { %vm1140_vm0 = vcmp.eq.s32.totalorder %v1696_v32, %v1515_v1  ;;  %v2978_v15 = vcvt.s32.f32 %v2340_v39  ;;  %750 = vst.msk [vmem:[#allocation2 + $0x28] sm:$0xff] %vm71_vm4, %v748_v56  ;;  %v1203_v50 = vadd.f32 %v1202_v41, %v1192_v58  ;;  %v473_v19 = vmul.f32 %v472_v45, %v2959_v52  ;;  %v2979_v45 = vld [vmem:[#allocation8_spill] sm:$0xff] }
 0x111   :  { %v463_v5 = vadd.f32 %v462_v60, %v452_v63  ;;  %v2429_v47 = vsel %vm2387_vm11, %v746_v49, %v2334_v29  ;;  %v1213_v44 = vmul.f32 %v1212_v23, %v1998_v27  ;;  %v1224_v21 = vmul.f32 %v1223_v3, %v2039_v9 }
 0x112   :  { %v1240_v59 = vperm.slane %v2978_v15, 0  ;;  %v779_v61 = vperm.slane %v2429_v47, 0  ;;  %v786_v1 = vperm.slane %v2429_v47, 1  ;;  %v797_v33 = vperm.slane %v2429_v47, 2 }
 0x113   :  { %v2437_v8 = vsel %vm1140_vm0, 1.0, %v2975_v46  ;;  %v474_v51 = vadd.f32 %v473_v19, %v463_v5  ;;  %v484_v54 = vmul.f32 %v483_v4, %v2979_v45  ;;  %v808_v62 = vperm.slane %v2429_v47, 3 }
 0x114   :  { %v780_v25 = vadd.f32 %v779_v61, %v1930_v6  ;;  %v787_v29 = vadd.f32 %v786_v1, %v1959_v16  ;;  %v1214_v53 = vadd.f32 %v1213_v44, %v1203_v50  ;;  %v1241_v55 = vmul.f32 %v2437_v8, %v1240_v59 }
 0x115   :  { %v485_v58 = vadd.f32 %v484_v54, %v474_v51  ;;  %v798_v46 = vadd.f32 %v797_v33, %v1812_v13  ;;  %v819_v4 = vperm.slane %v2429_v47, 4  ;;  %vm761_vm5 = vcmp.eq.s32.totalorder %v1572_v40, 1 }
 0x116   :  { %vm788_vm1 = vcmp.gt.f32.partialorder %v787_v29, %v780_v25  ;;  %v1225_v23 = vadd.f32 %v1224_v21, %v1214_v53  ;;  %v809_v3 = vadd.f32 %v808_v62, %v1969_v22  ;;  %v830_v63 = vperm.slane %v2429_v47, 5 }
 0x117   :  { %1542 = vlog2.f32 %v485_v58  ;;  %v789_v18 = vsel %vm788_vm1, %v787_v29, %v780_v25  ;;  %v790_v41 = vsel %vm788_vm1, 1, %v2925_v0  ;;  %v820_v15 = vadd.f32 %v819_v4, %v1993_v31 }
 0x118   :  { %vm799_vm6 = vcmp.gt.f32.partialorder %v798_v46, %v789_v18  ;;  %v1242_v60 = vadd.f32 %v2446_v30, %v1225_v23  ;;  %v841_v59 = vperm.slane %v2429_v47, 6  ;;  %v864_v5 = vsel %vm761_vm5, 1, %v2925_v0 }
 0x119   :  { %v800_v49 = vsel %vm799_vm6, %v798_v46, %v789_v18  ;;  %v801_v56 = vsel %vm799_vm6, 2, %v790_v41  ;;  %v831_v61 = vadd.f32 %v830_v63, %v1856_v26  ;;  %v852_v1 = vperm.slane %v2429_v47, 7 }
 0x11a   :  { %vm810_vm7 = vcmp.gt.f32.partialorder %v809_v3, %v800_v49  ;;  %v1243_v50 = vmul.f32 %v1242_v60, %v1241_v55  ;;  %v494_v25 = vadd.f32 %v2070_v11, %v2329_v34  ;;  %v842_v62 = vadd.f32 %v841_v59, %v1998_v27 }
 0x11b   :  { %v811_v19 = vsel %vm810_vm7, %v809_v3, %v800_v49  ;;  %v812_v44 = vsel %vm810_vm7, 3, %v801_v56  ;;  %v865_v53 = vperm.slane %v864_v5, 0  ;;  %v853_v4 = vadd.f32 %v852_v1, %v2039_v9 }
 0x11c   :  { %vm821_vm8 = vcmp.gt.f32.partialorder %v820_v15, %v811_v19  ;;  %v2464_v33 = vadd.f32 %v1243_v50, %v2406_v24 }
 0x11d   :  { %v1543_v21 = vpop.eup %1542  ;;  %v822_v51 = vsel %vm821_vm8, %v820_v15, %v811_v19  ;;  %v823_v54 = vsel %vm821_vm8, 4, %v812_v44  ;;  %vm2475_vm15 = vcmp.eq.s32.totalorder %v865_v53, 1 }
 0x11e   :  { %v496_v29 = vmul.f32 0.6931472, %v1543_v21  ;;  %vm832_vm9 = vcmp.gt.f32.partialorder %v831_v61, %v822_v51 }
 0x11f   :  { %v833_v55 = vsel %vm832_vm9, %v831_v61, %v822_v51  ;;  %v834_v58 = vsel %vm832_vm9, 5, %v823_v54 }
 0x120   :  { %v497_v46 = vadd.f32 %v496_v29, %v494_v25  ;;  %vm843_vm12 = vcmp.gt.f32.partialorder %v842_v62, %v833_v55  ;;  %v1573_v29 = vld [vmem:[%s2858_s1 + $0x7] sm:$0x1] }
 0x121   :  { %v844_v23 = vsel %vm843_vm12, %v842_v62, %v833_v55  ;;  %v845_v24 = vsel %vm843_vm12, 6, %v834_v58  ;;  %vm883_vm5 = vcmp.eq.s32.totalorder %v1573_v29, 1 }
 0x122   :  { %v2473_v40 = vsel %vm2207_vm3, %v497_v46, %v2278_v36  ;;  %vm854_vm14 = vcmp.gt.f32.partialorder %v853_v4, %v844_v23 }
 0x123   :  { %v518_v34 = vsel %vm71_vm4, %v2473_v40, -inf  ;;  %v855_v18 = vsel %vm854_vm14, %v853_v4, %v844_v23  ;;  %v856_v41 = vsel %vm854_vm14, 7, %v845_v24 }
 0x124   :  { %v519_v3 = vrot.slane %v518_v34, 4  ;;  %v868_v63 = vadd.f32 %v2249_v12, %v855_v18  ;;  %v870_v60 = vsel %vm2475_vm15, %v856_v41, %v1696_v32 }
 0x125   :  { %872 = vst.msk [vmem:[#allocation2 + $0x30] sm:$0xff] %vm71_vm4, %v870_v60 }
 0x126   :  { %v520_v36 = vmax.f32 %v518_v34, %v519_v3  ;;  %v2489_v49 = vsel %vm2475_vm15, %v868_v63, %v2429_v47  ;;  %v986_v34 = vsel %vm883_vm5, 1, %v2925_v0 }
 0x127   :  { %v901_v56 = vperm.slane %v2489_v49, 0  ;;  %v908_v15 = vperm.slane %v2489_v49, 1  ;;  %v919_v59 = vperm.slane %v2489_v49, 2  ;;  %v930_v19 = vperm.slane %v2489_v49, 3 }
 0x128   :  { %v521_v50 = vrot.slane %v520_v36, 2  ;;  %v941_v47 = vperm.slane %v2489_v49, 4  ;;  %v952_v25 = vperm.slane %v2489_v49, 5  ;;  %v963_v46 = vperm.slane %v2489_v49, 6 }
 0x129   :  { %v902_v12 = vadd.f32 %v901_v56, %v1930_v6  ;;  %v909_v5 = vadd.f32 %v908_v15, %v1959_v16  ;;  %v920_v61 = vadd.f32 %v919_v59, %v1812_v13  ;;  %v931_v54 = vadd.f32 %v930_v19, %v1969_v22 }
 0x12a   :  { %v522_v44 = vmax.f32 %v520_v36, %v521_v50  ;;  %v942_v58 = vadd.f32 %v941_v47, %v1993_v31  ;;  %v953_v18 = vadd.f32 %v952_v25, %v1856_v26  ;;  %v974_v41 = vperm.slane %v2489_v49, 7 }
 0x12b   :  { %vm910_vm0 = vcmp.gt.f32.partialorder %v909_v5, %v902_v12  ;;  %v964_v36 = vadd.f32 %v963_v46, %v1998_v27  ;;  %v987_v56 = vperm.slane %v986_v34, 0 }
 0x12c   :  { %v523_v1 = vrot.slane %v522_v44, 1  ;;  %v911_v21 = vsel %vm910_vm0, %v909_v5, %v902_v12  ;;  %v912_v51 = vsel %vm910_vm0, 1, %v2925_v0  ;;  %v975_v50 = vadd.f32 %v974_v41, %v2039_v9 }
 0x12d   :  { %vm921_vm1 = vcmp.gt.f32.partialorder %v920_v61, %v911_v21  ;;  %vm2516_vm14 = vcmp.eq.s32.totalorder %v987_v56, 1 }
 0x12e   :  { %v2505_v62 = vmax.f32 %v522_v44, %v523_v1  ;;  %v922_v53 = vsel %vm921_vm1, %v920_v61, %v911_v21  ;;  %v923_v55 = vsel %vm921_vm1, 2, %v912_v51  ;;  %vm1005_vm1 = vcmp.eq.s32.totalorder %v2306_v43, 1 }
 0x12f   :  { %vm932_vm6 = vcmp.gt.f32.partialorder %v931_v54, %v922_v53 }
 0x130   :  { %v525_v4 = vsub.f32 %v2473_v40, %v2505_v62  ;;  %v933_v23 = vsel %vm932_vm6, %v931_v54, %v922_v53  ;;  %v934_v24 = vsel %vm932_vm6, 3, %v923_v55 }
 0x131   :  { %vm943_vm7 = vcmp.gt.f32.partialorder %v942_v58, %v933_v23 }
 0x132   :  { %v526_v3 = vmul.f32 1.442695, %v525_v4  ;;  %v944_v63 = vsel %vm943_vm7, %v942_v58, %v933_v23  ;;  %v945_v60 = vsel %vm943_vm7, 4, %v934_v24 }
 0x133   :  { %vm954_vm8 = vcmp.gt.f32.partialorder %v953_v18, %v944_v63 }
 0x134   :  { %1544 = vpow2.f32 %v526_v3  ;;  %v955_v15 = vsel %vm954_vm8, %v953_v18, %v944_v63  ;;  %v956_v59 = vsel %vm954_vm8, 5, %v945_v60 }
 0x135   :  { %vm965_vm9 = vcmp.gt.f32.partialorder %v964_v36, %v955_v15 }
 0x136   :  { %v966_v12 = vsel %vm965_vm9, %v964_v36, %v955_v15  ;;  %v967_v5 = vsel %vm965_vm9, 6, %v956_v59 }
 0x137   :  { %vm976_vm12 = vcmp.gt.f32.partialorder %v975_v50, %v966_v12 }
 0x138   :  { %v977_v44 = vsel %vm976_vm12, %v975_v50, %v966_v12  ;;  %v978_v61 = vsel %vm976_vm12, 7, %v967_v5 }
 0x139   :  { %v992_v47 = vsel %vm2516_vm14, %v978_v61, %v1696_v32  ;;  %v990_v25 = vadd.f32 %v2298_v2, %v977_v44 }
 0x13a   :  { %v1545_v1 = vpop.eup %1544  ;;  %994 = vst.msk [vmem:[#allocation2 + $0x38] sm:$0xff] %vm71_vm4, %v992_v47 }
 0x13b   :  { %v533_v21 = vperm.slane %v1545_v1, 0  ;;  %v539_v51 = vperm.slane %v1545_v1, 1  ;;  %v550_v54 = vperm.slane %v1545_v1, 2  ;;  %v561_v55 = vperm.slane %v1545_v1, 3 }
 0x13c   :  { %v572_v4 = vperm.slane %v1545_v1, 4  ;;  %v2531_v23 = vsel %vm2516_vm14, %v990_v25, %v2489_v49  ;;  %v583_v3 = vperm.slane %v1545_v1, 5  ;;  %v594_v15 = vperm.slane %v1545_v1, 6 }
 0x13d   :  { %v534_v29 = vmul.f32 %v533_v21, %v1823_v20  ;;  %v540_v53 = vmul.f32 %v539_v51, %v1814_v14  ;;  %v551_v46 = vmul.f32 %v550_v54, %v2955_v7  ;;  %v1023_v24 = vperm.slane %v2531_v23, 0 }
 0x13e   :  { %v1030_v34 = vperm.slane %v2531_v23, 1  ;;  %v1041_v2 = vperm.slane %v2531_v23, 2  ;;  %v562_v41 = vmul.f32 %v561_v55, %v2956_v17  ;;  %v1052_v36 = vperm.slane %v2531_v23, 3 }
 0x13f   :  { %v541_v58 = vadd.f32 %v540_v53, %v534_v29  ;;  %v1024_v63 = vadd.f32 %v1023_v24, %v1930_v6  ;;  %v573_v49 = vmul.f32 %v572_v4, %v2957_v35  ;;  %v605_v59 = vperm.slane %v1545_v1, 7 }
 0x140   :  { %v1031_v60 = vadd.f32 %v1030_v34, %v1959_v16  ;;  %v1042_v50 = vadd.f32 %v1041_v2, %v1812_v13  ;;  %v1063_v12 = vperm.slane %v2531_v23, 4  ;;  %v584_v44 = vmul.f32 %v583_v3, %v2958_v10 }
 0x141   :  { %v552_v18 = vadd.f32 %v551_v46, %v541_v58  ;;  %v1053_v21 = vadd.f32 %v1052_v36, %v1969_v22  ;;  %v1074_v51 = vperm.slane %v2531_v23, 5  ;;  %v595_v1 = vmul.f32 %v594_v15, %v2959_v52 }
 0x142   :  { %vm1032_vm0 = vcmp.gt.f32.partialorder %v1031_v60, %v1024_v63  ;;  %v1064_v53 = vadd.f32 %v1063_v12, %v1993_v31  ;;  %v1085_v55 = vperm.slane %v2531_v23, 6  ;;  %v606_v46 = vmul.f32 %v605_v59, %v2979_v45 }
 0x143   :  { %v563_v56 = vadd.f32 %v562_v41, %v552_v18  ;;  %v1033_v61 = vsel %vm1032_vm0, %v1031_v60, %v1024_v63  ;;  %v1034_v47 = vsel %vm1032_vm0, 1, %v2925_v0  ;;  %v1108_v24 = vsel %vm1005_vm1, 1, %v2925_v0 }
 0x144   :  { %vm1043_vm5 = vcmp.gt.f32.partialorder %v1042_v50, %v1033_v61  ;;  %v1075_v34 = vadd.f32 %v1074_v51, %v1856_v26  ;;  %v1096_v2 = vperm.slane %v2531_v23, 7  ;;  %v1086_v63 = vadd.f32 %v1085_v55, %v1998_v27 }
 0x145   :  { %v574_v5 = vadd.f32 %v573_v49, %v563_v56  ;;  %v1044_v25 = vsel %vm1043_vm5, %v1042_v50, %v1033_v61  ;;  %v1045_v29 = vsel %vm1043_vm5, 2, %v1034_v47  ;;  %v1109_v60 = vperm.slane %v1108_v24, 0 }
 0x146   :  { %vm1054_vm6 = vcmp.gt.f32.partialorder %v1053_v21, %v1044_v25  ;;  %v1097_v49 = vadd.f32 %v1096_v2, %v2039_v9 }
 0x147   :  { %v585_v54 = vadd.f32 %v584_v44, %v574_v5  ;;  %v1055_v4 = vsel %vm1054_vm6, %v1053_v21, %v1044_v25  ;;  %v1056_v43 = vsel %vm1054_vm6, 3, %v1045_v29  ;;  %vm2557_vm0 = vcmp.eq.s32.totalorder %v1109_v60, 1  ;;  %v1574_v21 = vld [vmem:[%s2857_s0 + $0x20] sm:$0xff] }
 0x148   :  { %vm1065_vm7 = vcmp.gt.f32.partialorder %v1064_v53, %v1055_v4  ;;  %v616_v51 = vadd.f32 %v1574_v21, %v2505_v62  ;;  %vm1127_vm6 = vcmp.eq.s32.totalorder %v2340_v39, 1 }
 0x149   :  { %v596_v58 = vadd.f32 %v595_v1, %v585_v54  ;;  %v1066_v41 = vsel %vm1065_vm7, %v1064_v53, %v1055_v4  ;;  %v1067_v3 = vsel %vm1065_vm7, 4, %v1056_v43 }
 0x14a   :  { %vm1076_vm8 = vcmp.gt.f32.partialorder %v1075_v34, %v1066_v41 }
 0x14b   :  { %v607_v18 = vadd.f32 %v606_v46, %v596_v58  ;;  %v1077_v36 = vsel %vm1076_vm8, %v1075_v34, %v1066_v41  ;;  %v1078_v56 = vsel %vm1076_vm8, 5, %v1067_v3 }
 0x14c   :  { %vm1087_vm9 = vcmp.gt.f32.partialorder %v1086_v63, %v1077_v36 }
 0x14d   :  { %1546 = vlog2.f32 %v607_v18  ;;  %v1088_v15 = vsel %vm1087_vm9, %v1086_v63, %v1077_v36  ;;  %v1089_v59 = vsel %vm1087_vm9, 6, %v1078_v56  ;;  %v1230_v56 = vsel %vm1127_vm6, 1, %v2925_v0 }
 0x14e   :  { %vm1098_vm12 = vcmp.gt.f32.partialorder %v1097_v49, %v1088_v15 }
 0x14f   :  { %v1099_v12 = vsel %vm1098_vm12, %v1097_v49, %v1088_v15  ;;  %v1100_v5 = vsel %vm1098_vm12, 7, %v1089_v59 }
 0x150   :  { %v1112_v44 = vadd.f32 %v2369_v37, %v1099_v12  ;;  %v1114_v61 = vsel %vm2557_vm0, %v1100_v5, %v1696_v32  ;;  %v1231_v5 = vperm.slane %v1230_v56, 0 }
 0x151   :  { %1116 = vst.msk [vmem:[#allocation2 + $0x40] sm:$0xff] %vm71_vm4, %v1114_v61 }
 0x152   :  { %v2573_v1 = vsel %vm2557_vm0, %v1112_v44, %v2531_v23 }
 0x153   :  { %v1547_v47 = vpop.eup %1546  ;;  %v1145_v37 = vperm.slane %v2573_v1, 0  ;;  %v1152_v25 = vperm.slane %v2573_v1, 1  ;;  %v1163_v29 = vperm.slane %v2573_v1, 2  ;;  %v1174_v46 = vperm.slane %v2573_v1, 3 }
 0x154   :  { %v618_v54 = vmul.f32 0.6931472, %v1547_v47  ;;  %v1185_v43 = vperm.slane %v2573_v1, 4  ;;  %v1196_v2 = vperm.slane %v2573_v1, 5  ;;  %v1218_v49 = vperm.slane %v2573_v1, 7 }
 0x155   :  { %v1146_v55 = vadd.f32 %v1145_v37, %v1930_v6  ;;  %v1153_v58 = vadd.f32 %v1152_v25, %v1959_v16  ;;  %v1164_v4 = vadd.f32 %v1163_v29, %v1812_v13  ;;  %v1175_v16 = vadd.f32 %v1174_v46, %v1969_v22 }
 0x156   :  { %v619_v53 = vadd.f32 %v618_v54, %v616_v51  ;;  %v1186_v3 = vadd.f32 %v1185_v43, %v1993_v31  ;;  %v1207_v13 = vperm.slane %v2573_v1, 6  ;;  %v1197_v22 = vadd.f32 %v1196_v2, %v1856_v26 }
 0x157   :  { %vm1154_vm1 = vcmp.gt.f32.partialorder %v1153_v58, %v1146_v55  ;;  %v2601_v47 = vadd.f32 %v1218_v49, %v2039_v9 }
 0x158   :  { %v2584_v62 = vsel %vm2284_vm13, %v619_v53, %v2473_v40  ;;  %v1155_v34 = vsel %vm1154_vm1, %v1153_v58, %v1146_v55  ;;  %v1156_v6 = vsel %vm1154_vm1, 1, %v2925_v0  ;;  %v1208_v12 = vadd.f32 %v1207_v13, %v1998_v27 }
 0x159   :  { %v640_v23 = vsel %vm71_vm4, %v2584_v62, -inf  ;;  %vm1165_vm5 = vcmp.gt.f32.partialorder %v1164_v4, %v1155_v34 }
 0x15a   :  { %v641_v24 = vrot.slane %v640_v23, 4  ;;  %v1166_v18 = vsel %vm1165_vm5, %v1164_v4, %v1155_v34  ;;  %v1167_v41 = vsel %vm1165_vm5, 2, %v1156_v6  ;;  %vm2607_vm5 = vcmp.eq.s32.totalorder %v1231_v5, 1 }
 0x15b   :  { %vm1176_vm7 = vcmp.gt.f32.partialorder %v1175_v16, %v1166_v18 }
 0x15c   :  { %v642_v40 = vmax.f32 %v640_v23, %v641_v24  ;;  %v1177_v60 = vsel %vm1176_vm7, %v1175_v16, %v1166_v18  ;;  %v1178_v36 = vsel %vm1176_vm7, 3, %v1167_v41 }
 0x15d   :  { %vm1187_vm8 = vcmp.gt.f32.partialorder %v1186_v3, %v1177_v60 }
 0x15e   :  { %v643_v63 = vrot.slane %v642_v40, 2  ;;  %v1188_v39 = vsel %vm1187_vm8, %v1186_v3, %v1177_v60  ;;  %v1189_v59 = vsel %vm1187_vm8, 4, %v1178_v36 }
 0x15f   :  { %vm1198_vm9 = vcmp.gt.f32.partialorder %v1197_v22, %v1188_v39 }
 0x160   :  { %v644_v15 = vmax.f32 %v642_v40, %v643_v63  ;;  %v1199_v44 = vsel %vm1198_vm9, %v1197_v22, %v1188_v39  ;;  %v1200_v61 = vsel %vm1198_vm9, 5, %v1189_v59 }
 0x161   :  { %vm1209_vm12 = vcmp.gt.f32.partialorder %v1208_v12, %v1199_v44 }
 0x162   :  { %v645_v31 = vrot.slane %v644_v15, 1  ;;  %v2603_v21 = vsel %vm1209_vm12, %v1208_v12, %v1199_v44  ;;  %v1211_v26 = vsel %vm1209_vm12, 6, %v1200_v61 }
 0x163   :  { %vm1220_vm1 = vcmp.gt.f32.partialorder %v2601_v47, %v2603_v21 }
 0x164   :  { %v646_v0 = vmax.f32 %v644_v15, %v645_v31  ;;  %v1222_v54 = vsel %vm1220_vm1, 7, %v1211_v26  ;;  %v1575_v15 = vld [vmem:[%s2857_s0 + $0x28] sm:$0xff] }
 0x165   :  { %v1236_v9 = vsel %vm2607_vm5, %v1222_v54, %v1696_v32 }
 0x166   :  { %v647_v27 = vsub.f32 %v2584_v62, %v646_v0  ;;  %1238 = vst.msk [vmem:[#allocation2 + $0x48] sm:$0xff] %vm71_vm4, %v1236_v9  ;;  %v738_v39 = vadd.f32 %v1575_v15, %v646_v0 }
 0x168   :  { %v648_v37 = vmul.f32 1.442695, %v647_v27 }
 0x16a   :  { %1548 = vpow2.f32 %v648_v37 }
 0x170   :  { %v1549_v25 = vpop.eup %1548 }
 0x171   :  { %v655_v29 = vperm.slane %v1549_v25, 0  ;;  %v661_v53 = vperm.slane %v1549_v25, 1  ;;  %v672_v55 = vperm.slane %v1549_v25, 2  ;;  %v683_v23 = vperm.slane %v1549_v25, 3 }
 0x172   :  { %v694_v24 = vperm.slane %v1549_v25, 4  ;;  %v705_v16 = vperm.slane %v1549_v25, 5  ;;  %v716_v18 = vperm.slane %v1549_v25, 6  ;;  %v727_v13 = vperm.slane %v1549_v25, 7 }
 0x173   :  { %v656_v58 = vmul.f32 %v655_v29, %v1823_v20  ;;  %v662_v46 = vmul.f32 %v661_v53, %v1814_v14  ;;  %v673_v43 = vmul.f32 %v672_v55, %v2955_v7  ;;  %v684_v6 = vmul.f32 %v683_v23, %v2956_v17 }
 0x174   :  { %v695_v40 = vmul.f32 %v694_v24, %v2957_v35  ;;  %v706_v3 = vmul.f32 %v705_v16, %v2958_v10  ;;  %v717_v60 = vmul.f32 %v716_v18, %v2959_v52  ;;  %v728_v56 = vmul.f32 %v727_v13, %v2979_v45 }
 0x175   :  { %v663_v4 = vadd.f32 %v662_v46, %v656_v58  ;;  %v1221_v16 = vsel %vm1220_vm1, %v2601_v47, %v2603_v21  ;;  %vm1282_vm1 = vcmask 57344  }
 0x177   :  { %v674_v34 = vadd.f32 %v673_v43, %v663_v4 }
 0x179   :  { %v685_v2 = vadd.f32 %v684_v6, %v674_v34 }
 0x17b   :  { %v696_v41 = vadd.f32 %v695_v40, %v685_v2  ;;  %v1234_v2 = vadd.f32 %v2446_v30, %v1221_v16 }
 0x17d   :  { %v707_v63 = vadd.f32 %v706_v3, %v696_v41  ;;  %v2645_v3 = vpop.permute.xlu2 %1248  ;;  %v1235_v13 = vsel %vm2607_vm5, %v1234_v2, %v2573_v1  ;;  %v1308_v2 = vld [vmem:[#allocation2 + $0x48] sm:$0xff] }
 0x17f   :  { %v718_v36 = vadd.f32 %v717_v60, %v707_v63 }
 0x181   :  { %v729_v22 = vadd.f32 %v728_v56, %v718_v36  ;;  %v1284_v56 = vadd.f32 %v2645_v3, %v1235_v13 }
 0x183   :  { %1550 = vlog2.f32 %v729_v22  ;;  %v1285_v30 = vsel %vm71_vm4, %v1284_v56, -inf }
 0x184   :  { %v1286_v21 = vrot.slane %v1285_v30, 4 }
 0x189   :  { %v1551_v49 = vpop.eup %1550 }
 0x18a   :  { %v740_v59 = vmul.f32 0.6931472, %v1551_v49 }
 0x18c   :  { %v741_v12 = vadd.f32 %v740_v59, %v738_v39  ;;  %v1287_v39 = vmax.f32 %v1285_v30, %v1286_v21 }
 0x18e   :  { %v745_v5 = vsel %vm2387_vm11, %v741_v12, %v2584_v62  ;;  %v1288_v12 = vrot.slane %v1287_v39, 2 }
 0x18f   :  { %v762_v31 = vsel %vm71_vm4, %v745_v5, -inf }
 0x190   :  { %v763_v44 = vrot.slane %v762_v31, 4  ;;  %v1289_v1 = vmax.f32 %v1287_v39, %v1288_v12  ;;  %v1321_v39 = vld [vmem:[%s2858_s1 + $0x8] sm:$0x1] }
 0x192   :  { %v764_v61 = vmax.f32 %v762_v31, %v763_v44  ;;  %v1290_v31 = vrot.slane %v1289_v1, 1 }
 0x194   :  { %v765_v26 = vrot.slane %v764_v61, 2  ;;  %v1291_v44 = vmax.f32 %v1289_v1, %v1290_v31 }
 0x196   :  { %v766_v27 = vmax.f32 %v764_v61, %v765_v26  ;;  %v1576_v26 = vld [vmem:[%s2857_s0 + $0x30] sm:$0xff]  ;;  %vm1292_vm6 = vcmp.ge.f32.partialorder %v1284_v56, %v1291_v44 }
 0x198   :  { %v767_v54 = vrot.slane %v766_v27, 1 }
 0x19a   :  { %v768_v9 = vmax.f32 %v766_v27, %v767_v54 }
 0x19c   :  { %v769_v37 = vsub.f32 %v745_v5, %v768_v9  ;;  %v860_v27 = vadd.f32 %v1576_v26, %v768_v9 }
 0x19e   :  { %v770_v25 = vmul.f32 1.442695, %v769_v37  ;;  %v1293_v37 = vsel %vm1292_vm6, %v1696_v32, 8 }
 0x1a0   :  { %1552 = vpow2.f32 %v770_v25 }
 0x1a6   :  { %v1553_v29 = vpop.eup %1552 }
 0x1a7   :  { %v777_v53 = vperm.slane %v1553_v29, 0  ;;  %v783_v0 = vperm.slane %v1553_v29, 1  ;;  %v794_v55 = vperm.slane %v1553_v29, 2  ;;  %v805_v62 = vperm.slane %v1553_v29, 3 }
 0x1a8   :  { %v816_v43 = vperm.slane %v1553_v29, 4  ;;  %v827_v6 = vperm.slane %v1553_v29, 5  ;;  %v838_v41 = vperm.slane %v1553_v29, 6  ;;  %v849_v36 = vperm.slane %v1553_v29, 7 }
 0x1a9   :  { %v778_v58 = vmul.f32 %v777_v53, %v1823_v20  ;;  %v784_v46 = vmul.f32 %v783_v0, %v1814_v14  ;;  %v795_v4 = vmul.f32 %v794_v55, %v2955_v7  ;;  %v806_v34 = vmul.f32 %v805_v62, %v2956_v17 }
 0x1aa   :  { %v817_v18 = vmul.f32 %v816_v43, %v2957_v35  ;;  %v828_v60 = vmul.f32 %v827_v6, %v2958_v10  ;;  %v839_v47 = vmul.f32 %v838_v41, %v2959_v52  ;;  %v850_v15 = vmul.f32 %v849_v36, %v2979_v45 }
 0x1ab   :  { %v785_v23 = vadd.f32 %v784_v46, %v778_v58  ;;  %v1294_v29 = vsel %vm71_vm4, %v1293_v37, 2147483647 }
 0x1ac   :  { %v1295_v53 = vrot.slane %v1294_v29, 4 }
 0x1ad   :  { %v796_v24 = vadd.f32 %v795_v4, %v785_v23 }
 0x1ae   :  { %vm1296_vm7 = vcmp.lt.s32.totalorder %v1294_v29, %v1295_v53 }
 0x1af   :  { %v807_v40 = vadd.f32 %v806_v34, %v796_v24  ;;  %v1297_v46 = vsel %vm1296_vm7, %v1294_v29, %v1295_v53  ;;  %v1304_v34 = vld [vmem:[%s2858_s1 + $0x9] sm:$0x1] }
 0x1b0   :  { %v1298_v62 = vrot.slane %v1297_v46, 2  ;;  %vm1305_vm12 = vcmp.eq.s32.totalorder %v1304_v34, 1 }
 0x1b1   :  { %v818_v63 = vadd.f32 %v817_v18, %v807_v40 }
 0x1b2   :  { %vm1299_vm8 = vcmp.lt.s32.totalorder %v1297_v46, %v1298_v62 }
 0x1b3   :  { %v829_v22 = vadd.f32 %v828_v60, %v818_v63  ;;  %v1300_v4 = vsel %vm1299_vm8, %v1297_v46, %v1298_v62 }
 0x1b4   :  { %v1301_v43 = vrot.slane %v1300_v4, 1 }
 0x1b5   :  { %v840_v49 = vadd.f32 %v839_v47, %v829_v22 }
 0x1b6   :  { %vm1302_vm9 = vcmp.lt.s32.totalorder %v1300_v4, %v1301_v43 }
 0x1b7   :  { %v851_v59 = vadd.f32 %v850_v15, %v840_v49  ;;  %v1303_v6 = vsel %vm1302_vm9, %v1300_v4, %v1301_v43 }
 0x1b8   :  { %v1306_v16 = vsel %vm1305_vm12, %v1303_v6, 0  ;;  %vm1309_vm6 = vcmp.eq.s32.totalorder %v1696_v32, %v1303_v6  ;;  %vm1322_vm12 = vcmp.eq.s32.totalorder %v1321_v39, 1 }
 0x1b9   :  { %1554 = vlog2.f32 %v851_v59  ;;  %1307 = vst.msk [vmem:[%s2863_s6 + $0x9] sm:$0x1] %vm1282_vm1, %v1306_v16  ;;  %v1310_v18 = vsel %vm1309_vm6, %v1308_v2, 0 }
 0x1ba   :  { %v1311_v41 = vsel %vm71_vm4, %v1310_v18, 2147483648  ;;  %v1338_v18 = vld [vmem:[%s2858_s1 + $0x7] sm:$0x1] }
 0x1bb   :  { %v1312_v63 = vrot.slane %v1311_v41, 4 }
 0x1bd   :  { %vm1313_vm7 = vcmp.gt.s32.totalorder %v1311_v41, %v1312_v63 }
 0x1be   :  { %v1314_v36 = vsel %vm1313_vm7, %v1311_v41, %v1312_v63 }
 0x1bf   :  { %v1555_v61 = vpop.eup %1554  ;;  %v1315_v56 = vrot.slane %v1314_v36, 2 }
 0x1c0   :  { %v862_v54 = vmul.f32 0.6931472, %v1555_v61 }
 0x1c1   :  { %vm1316_vm8 = vcmp.gt.s32.totalorder %v1314_v36, %v1315_v56 }
 0x1c2   :  { %v863_v25 = vadd.f32 %v862_v54, %v860_v27  ;;  %v1317_v22 = vsel %vm1316_vm8, %v1314_v36, %v1315_v56  ;;  %v1325_v54 = vld [vmem:[#allocation2 + $0x40] sm:$0xff]  ;;  %v1342_v56 = vld [vmem:[#allocation2 + $0x38] sm:$0xff] }
 0x1c3   :  { %v1318_v47 = vrot.slane %v1317_v22, 1 }
 0x1c4   :  { %v2662_v0 = vsel %vm2475_vm15, %v863_v25, %v745_v5 }
 0x1c5   :  { %v884_v55 = vsel %vm71_vm4, %v2662_v0, -inf  ;;  %vm1319_vm9 = vcmp.gt.s32.totalorder %v1317_v22, %v1318_v47 }
 0x1c6   :  { %v885_v58 = vrot.slane %v884_v55, 4  ;;  %v1320_v26 = vsel %vm1319_vm9, %v1317_v22, %v1318_v47  ;;  %vm1339_vm9 = vcmp.eq.s32.totalorder %v1338_v18, 1  ;;  %v1376_v18 = vld [vmem:[#allocation2 + $0x28] sm:$0xff] }
 0x1c7   :  { %v1323_v27 = vsel %vm1322_vm12, %v1320_v26, 0  ;;  %vm1326_vm6 = vcmp.eq.s32.totalorder %v1696_v32, %v1320_v26 }
 0x1c8   :  { %v886_v9 = vmax.f32 %v884_v55, %v885_v58  ;;  %1324 = vst.msk [vmem:[%s2863_s6 + $0x8] sm:$0x1] %vm1282_vm1, %v1323_v27  ;;  %v1327_v53 = vsel %vm1326_vm6, %v1325_v54, 0 }
 0x1c9   :  { %v1328_v55 = vsel %vm71_vm4, %v1327_v53, 2147483648  ;;  %v1359_v53 = vld [vmem:[#allocation2 + $0x30] sm:$0xff] }
 0x1ca   :  { %v887_v23 = vrot.slane %v886_v9, 2 }
 0x1cc   :  { %v888_v24 = vmax.f32 %v886_v9, %v887_v23  ;;  %v1329_v9 = vrot.slane %v1328_v55, 4 }
 0x1ce   :  { %v889_v5 = vrot.slane %v888_v24, 1  ;;  %vm1330_vm7 = vcmp.gt.s32.totalorder %v1328_v55, %v1329_v9 }
 0x1d0   :  { %v2670_v40 = vmax.f32 %v888_v24, %v889_v5  ;;  %v1331_v24 = vsel %vm1330_vm7, %v1328_v55, %v1329_v9 }
 0x1d1   :  { %v1332_v6 = vrot.slane %v1331_v24, 2 }
 0x1d2   :  { %v891_v13 = vsub.f32 %v2662_v0, %v2670_v40 }
 0x1d3   :  { %vm1333_vm8 = vcmp.gt.s32.totalorder %v1331_v24, %v1332_v6 }
 0x1d4   :  { %v892_v60 = vmul.f32 1.442695, %v891_v13  ;;  %v1334_v41 = vsel %vm1333_vm8, %v1331_v24, %v1332_v6  ;;  %v1372_v24 = vld [vmem:[%s2858_s1 + $0x5] sm:$0x1] }
 0x1d5   :  { %v1335_v63 = vrot.slane %v1334_v41, 1 }
 0x1d6   :  { %1556 = vpow2.f32 %v892_v60 }
 0x1d7   :  { %vm1336_vm12 = vcmp.gt.s32.totalorder %v1334_v41, %v1335_v63 }
 0x1d8   :  { %v1337_v60 = vsel %vm1336_vm12, %v1334_v41, %v1335_v63 }
 0x1d9   :  { %v1340_v36 = vsel %vm1339_vm9, %v1337_v60, 0  ;;  %vm1343_vm6 = vcmp.eq.s32.totalorder %v1696_v32, %v1337_v60 }
 0x1da   :  { %1341 = vst.msk [vmem:[%s2863_s6 + $0x7] sm:$0x1] %vm1282_vm1, %v1340_v36  ;;  %v1344_v22 = vsel %vm1343_vm6, %v1342_v56, 0 }
 0x1db   :  { %v1345_v47 = vsel %vm71_vm4, %v1344_v22, 2147483648 }
 0x1dc   :  { %v1557_v30 = vpop.eup %1556 }
 0x1dd   :  { %v899_v21 = vperm.slane %v1557_v30, 0  ;;  %v905_v49 = vperm.slane %v1557_v30, 1  ;;  %v916_v15 = vperm.slane %v1557_v30, 2  ;;  %v927_v1 = vperm.slane %v1557_v30, 3 }
 0x1de   :  { %v938_v31 = vperm.slane %v1557_v30, 4  ;;  %v949_v29 = vperm.slane %v1557_v30, 5  ;;  %v960_v62 = vperm.slane %v1557_v30, 6  ;;  %v971_v43 = vperm.slane %v1557_v30, 7 }
 0x1df   :  { %v900_v59 = vmul.f32 %v899_v21, %v1823_v20  ;;  %v906_v12 = vmul.f32 %v905_v49, %v1814_v14  ;;  %v917_v61 = vmul.f32 %v916_v15, %v2955_v7  ;;  %v928_v25 = vmul.f32 %v927_v1, %v2956_v17  ;;  %v1577_v49 = vld [vmem:[%s2857_s0 + $0x38] sm:$0xff] }
 0x1e0   :  { %v939_v46 = vmul.f32 %v938_v31, %v2957_v35  ;;  %v950_v4 = vmul.f32 %v949_v29, %v2958_v10  ;;  %v961_v5 = vmul.f32 %v960_v62, %v2959_v52  ;;  %v972_v2 = vmul.f32 %v971_v43, %v2979_v45 }
 0x1e1   :  { %v907_v44 = vadd.f32 %v906_v12, %v900_v59  ;;  %v1346_v30 = vrot.slane %v1345_v47, 4  ;;  %v982_v15 = vadd.f32 %v1577_v49, %v2670_v40 }
 0x1e3   :  { %v918_v37 = vadd.f32 %v917_v61, %v907_v44  ;;  %vm1347_vm7 = vcmp.gt.s32.totalorder %v1345_v47, %v1346_v30  ;;  %v1355_v44 = vld [vmem:[%s2858_s1 + $0x6] sm:$0x1] }
 0x1e4   :  { %v1348_v59 = vsel %vm1347_vm7, %v1345_v47, %v1346_v30  ;;  %vm1356_vm9 = vcmp.eq.s32.totalorder %v1355_v44, 1 }
 0x1e5   :  { %v929_v58 = vadd.f32 %v928_v25, %v918_v37  ;;  %v1349_v1 = vrot.slane %v1348_v59, 2 }
 0x1e7   :  { %v940_v23 = vadd.f32 %v939_v46, %v929_v58  ;;  %vm1350_vm8 = vcmp.gt.s32.totalorder %v1348_v59, %v1349_v1 }
 0x1e8   :  { %v1351_v26 = vsel %vm1350_vm8, %v1348_v59, %v1349_v1 }
 0x1e9   :  { %v951_v34 = vadd.f32 %v950_v4, %v940_v23  ;;  %v1352_v27 = vrot.slane %v1351_v26, 1 }
 0x1eb   :  { %v962_v16 = vadd.f32 %v961_v5, %v951_v34  ;;  %vm1353_vm12 = vcmp.gt.s32.totalorder %v1351_v26, %v1352_v27 }
 0x1ec   :  { %v1354_v37 = vsel %vm1353_vm12, %v1351_v26, %v1352_v27 }
 0x1ed   :  { %v973_v13 = vadd.f32 %v972_v2, %v962_v16  ;;  %v1357_v29 = vsel %vm1356_vm9, %v1354_v37, 0  ;;  %vm1360_vm6 = vcmp.eq.s32.totalorder %v1696_v32, %v1354_v37  ;;  %vm1373_vm9 = vcmp.eq.s32.totalorder %v1372_v24, 1 }
 0x1ee   :  { %1358 = vst.msk [vmem:[%s2863_s6 + $0x6] sm:$0x1] %vm1282_vm1, %v1357_v29 }
 0x1ef   :  { %1558 = vlog2.f32 %v973_v13 }
 0x1f5   :  { %v1559_v21 = vpop.eup %1558 }
 0x1f6   :  { %v984_v39 = vmul.f32 0.6931472, %v1559_v21 }
 0x1f8   :  { %v985_v12 = vadd.f32 %v984_v39, %v982_v15 }
 0x1fa   :  { %v2712_v31 = vsel %vm2516_vm14, %v985_v12, %v2662_v0  ;;  %v1361_v0 = vsel %vm1360_vm6, %v1359_v53, 0 }
 0x1fb   :  { %v1006_v61 = vsel %vm71_vm4, %v2712_v31, -inf  ;;  %v1362_v58 = vsel %vm71_vm4, %v1361_v0, 2147483648 }
 0x1fc   :  { %v1007_v40 = vrot.slane %v1006_v61, 4  ;;  %v1363_v46 = vrot.slane %v1362_v58, 4 }
 0x1fe   :  { %v1008_v54 = vmax.f32 %v1006_v61, %v1007_v40  ;;  %vm1364_vm7 = vcmp.gt.s32.totalorder %v1362_v58, %v1363_v46 }
 0x1ff   :  { %v1365_v23 = vsel %vm1364_vm7, %v1362_v58, %v1363_v46 }
 0x200   :  { %v1009_v25 = vrot.slane %v1008_v54, 2  ;;  %v1366_v4 = vrot.slane %v1365_v23, 2 }
 0x202   :  { %v1010_v55 = vmax.f32 %v1008_v54, %v1009_v25  ;;  %vm1367_vm8 = vcmp.gt.s32.totalorder %v1365_v23, %v1366_v4  ;;  %v1389_v54 = vld [vmem:[%s2858_s1 + $0x4] sm:$0x1] }
 0x203   :  { %v1368_v5 = vsel %vm1367_vm8, %v1365_v23, %v1366_v4 }
 0x204   :  { %v1011_v62 = vrot.slane %v1010_v55, 1  ;;  %v1369_v6 = vrot.slane %v1368_v5, 1 }
 0x206   :  { %v2725_v9 = vmax.f32 %v1010_v55, %v1011_v62  ;;  %vm1370_vm12 = vcmp.gt.s32.totalorder %v1368_v5, %v1369_v6 }
 0x207   :  { %v1371_v16 = vsel %vm1370_vm12, %v1368_v5, %v1369_v6 }
 0x208   :  { %v1013_v43 = vsub.f32 %v2712_v31, %v2725_v9  ;;  %v1374_v2 = vsel %vm1373_vm9, %v1371_v16, 0  ;;  %vm1377_vm6 = vcmp.eq.s32.totalorder %v1696_v32, %v1371_v16  ;;  %vm1390_vm9 = vcmp.eq.s32.totalorder %v1389_v54, 1 }
 0x209   :  { %1375 = vst.msk [vmem:[%s2863_s6 + $0x5] sm:$0x1] %vm1282_vm1, %v1374_v2  ;;  %v1378_v41 = vsel %vm1377_vm6, %v1376_v18, 0  ;;  %v1406_v18 = vld [vmem:[%s2858_s1 + $0x3] sm:$0x1] }
 0x20a   :  { %v1014_v34 = vmul.f32 1.442695, %v1013_v43  ;;  %v1379_v13 = vsel %vm71_vm4, %v1378_v41, 2147483648  ;;  %v1393_v43 = vld [vmem:[#allocation2 + $0x20] sm:$0xff] }
 0x20b   :  { %v1380_v22 = vrot.slane %v1379_v13, 4 }
 0x20c   :  { %1560 = vpow2.f32 %v1014_v34 }
 0x20d   :  { %vm1381_vm7 = vcmp.gt.s32.totalorder %v1379_v13, %v1380_v22 }
 0x20e   :  { %v1382_v59 = vsel %vm1381_vm7, %v1379_v13, %v1380_v22 }
 0x20f   :  { %v1383_v61 = vrot.slane %v1382_v59, 2 }
 0x211   :  { %vm1384_vm8 = vcmp.gt.s32.totalorder %v1382_v59, %v1383_v61 }
 0x212   :  { %v1561_v63 = vpop.eup %1560  ;;  %v1385_v37 = vsel %vm1384_vm8, %v1382_v59, %v1383_v61 }
 0x213   :  { %v1021_v60 = vperm.slane %v1561_v63, 0  ;;  %v1027_v36 = vperm.slane %v1561_v63, 1  ;;  %v1038_v56 = vperm.slane %v1561_v63, 2  ;;  %v1049_v21 = vperm.slane %v1561_v63, 3 }
 0x214   :  { %v1060_v39 = vperm.slane %v1561_v63, 4  ;;  %v1071_v44 = vperm.slane %v1561_v63, 5  ;;  %v1082_v27 = vperm.slane %v1561_v63, 6  ;;  %v1093_v53 = vperm.slane %v1561_v63, 7  ;;  %v1578_v63 = vld [vmem:[%s2857_s0 + $0x40] sm:$0xff] }
 0x215   :  { %v1022_v47 = vmul.f32 %v1021_v60, %v1823_v20  ;;  %v1028_v30 = vmul.f32 %v1027_v36, %v1814_v14  ;;  %v1039_v15 = vmul.f32 %v1038_v56, %v2955_v7  ;;  %v1050_v1 = vmul.f32 %v1049_v21, %v2956_v17 }
 0x216   :  { %v1061_v40 = vmul.f32 %v1060_v39, %v2957_v35  ;;  %v1072_v29 = vmul.f32 %v1071_v44, %v2958_v10  ;;  %v1386_v0 = vrot.slane %v1385_v37, 1  ;;  %v1083_v58 = vmul.f32 %v1082_v27, %v2959_v52 }
 0x217   :  { %v1029_v49 = vadd.f32 %v1028_v30, %v1022_v47  ;;  %v1094_v23 = vmul.f32 %v1093_v53, %v2979_v45  ;;  %v1104_v60 = vadd.f32 %v1578_v63, %v2725_v9 }
 0x218   :  { %vm1387_vm12 = vcmp.gt.s32.totalorder %v1385_v37, %v1386_v0 }
 0x219   :  { %v1040_v12 = vadd.f32 %v1039_v15, %v1029_v49  ;;  %v1388_v46 = vsel %vm1387_vm12, %v1385_v37, %v1386_v0  ;;  %v1410_v49 = vld [vmem:[#allocation2 + $0x18] sm:$0xff] }
 0x21a   :  { %v1391_v4 = vsel %vm1390_vm9, %v1388_v46, 0  ;;  %vm1394_vm6 = vcmp.eq.s32.totalorder %v1696_v32, %v1388_v46  ;;  %vm1407_vm9 = vcmp.eq.s32.totalorder %v1406_v18, 1 }
 0x21b   :  { %v1051_v26 = vadd.f32 %v1050_v1, %v1040_v12  ;;  %1392 = vst.msk [vmem:[%s2863_s6 + $0x4] sm:$0x1] %vm1282_vm1, %v1391_v4  ;;  %v1395_v24 = vsel %vm1394_vm6, %v1393_v43, 0 }
 0x21c   :  { %v1396_v5 = vsel %vm71_vm4, %v1395_v24, 2147483648 }
 0x21d   :  { %v1062_v25 = vadd.f32 %v1061_v40, %v1051_v26  ;;  %v1397_v6 = vrot.slane %v1396_v5, 4  ;;  %v1423_v40 = vld [vmem:[%s2858_s1 + $0x2] sm:$0x1] }
 0x21f   :  { %v1073_v55 = vadd.f32 %v1072_v29, %v1062_v25  ;;  %vm1398_vm7 = vcmp.gt.s32.totalorder %v1396_v5, %v1397_v6 }
 0x220   :  { %v1399_v16 = vsel %vm1398_vm7, %v1396_v5, %v1397_v6 }
 0x221   :  { %v1084_v62 = vadd.f32 %v1083_v58, %v1073_v55  ;;  %v1400_v2 = vrot.slane %v1399_v16, 2  ;;  %v1427_v55 = vld [vmem:[#allocation2 + $0x10] sm:$0xff] }
 0x223   :  { %v1095_v34 = vadd.f32 %v1094_v23, %v1084_v62  ;;  %vm1401_vm8 = vcmp.gt.s32.totalorder %v1399_v16, %v1400_v2 }
 0x224   :  { %v1402_v13 = vsel %vm1401_vm8, %v1399_v16, %v1400_v2 }
 0x225   :  { %1562 = vlog2.f32 %v1095_v34  ;;  %v1403_v56 = vrot.slane %v1402_v13, 1 }
 0x227   :  { %vm1404_vm12 = vcmp.gt.s32.totalorder %v1402_v13, %v1403_v56 }
 0x228   :  { %v1405_v47 = vsel %vm1404_vm12, %v1402_v13, %v1403_v56 }
 0x229   :  { %v1408_v21 = vsel %vm1407_vm9, %v1405_v47, 0  ;;  %vm1411_vm6 = vcmp.eq.s32.totalorder %v1696_v32, %v1405_v47  ;;  %vm1424_vm9 = vcmp.eq.s32.totalorder %v1423_v40, 1 }
 0x22a   :  { %1409 = vst.msk [vmem:[%s2863_s6 + $0x3] sm:$0x1] %vm1282_vm1, %v1408_v21  ;;  %v1412_v9 = vsel %vm1411_vm6, %v1410_v49, 0 }
 0x22b   :  { %v1563_v41 = vpop.eup %1562  ;;  %v1413_v59 = vsel %vm71_vm4, %v1412_v9, 2147483648 }
 0x22c   :  { %v1106_v36 = vmul.f32 0.6931472, %v1563_v41  ;;  %v1414_v12 = vrot.slane %v1413_v59, 4  ;;  %v1440_v41 = vld [vmem:[%s2858_s1 + $0x1] sm:$0x1] }
 0x22e   :  { %v1107_v22 = vadd.f32 %v1106_v36, %v1104_v60  ;;  %vm1415_vm7 = vcmp.gt.s32.totalorder %v1413_v59, %v1414_v12 }
 0x22f   :  { %v1416_v44 = vsel %vm1415_vm7, %v1413_v59, %v1414_v12 }
 0x230   :  { %v2765_v30 = vsel %vm2557_vm0, %v1107_v22, %v2712_v31  ;;  %v1417_v61 = vrot.slane %v1416_v44, 2 }
 0x231   :  { %v1128_v15 = vsel %vm71_vm4, %v2765_v30, -inf }
 0x232   :  { %v1129_v39 = vrot.slane %v1128_v15, 4  ;;  %vm1418_vm8 = vcmp.gt.s32.totalorder %v1416_v44, %v1417_v61 }
 0x233   :  { %v1419_v54 = vsel %vm1418_vm8, %v1416_v44, %v1417_v61 }
 0x234   :  { %v1130_v1 = vmax.f32 %v1128_v15, %v1129_v39  ;;  %v1420_v37 = vrot.slane %v1419_v54, 1  ;;  %v1444_v39 = vld [vmem:[#allocation2 + $0x8] sm:$0xff] }
 0x236   :  { %v1131_v31 = vrot.slane %v1130_v1, 2  ;;  %vm1421_vm12 = vcmp.gt.s32.totalorder %v1419_v54, %v1420_v37 }
 0x237   :  { %v1422_v53 = vsel %vm1421_vm12, %v1419_v54, %v1420_v37 }
 0x238   :  { %v1132_v26 = vmax.f32 %v1130_v1, %v1131_v31  ;;  %v1425_v0 = vsel %vm1424_vm9, %v1422_v53, 0  ;;  %vm1428_vm6 = vcmp.eq.s32.totalorder %v1696_v32, %v1422_v53  ;;  %vm1441_vm9 = vcmp.eq.s32.totalorder %v1440_v41, 1  ;;  %v2989_v53 = vld [vmem:[#allocation12_spill] sm:$0xff] }
 0x239   :  { %1426 = vst.msk [vmem:[%s2863_s6 + $0x2] sm:$0x1] %vm1282_vm1, %v1425_v0  ;;  %v1429_v46 = vsel %vm1428_vm6, %v1427_v55, 0  ;;  %v2994_v41 = vld [vmem:[#allocation16_spill] sm:$0xff] }
 0x23a   :  { %v1133_v27 = vrot.slane %v1132_v26, 1  ;;  %v1430_v62 = vsel %vm71_vm4, %v1429_v46, 2147483648  ;;  %v2991_v46 = vld [vmem:[#allocation13_spill] sm:$0xff] }
 0x23b   :  { %v1431_v23 = vrot.slane %v1430_v62, 4 }
 0x23c   :  { %v2778_v25 = vmax.f32 %v1132_v26, %v1133_v27  ;;  %v1457_v27 = vld [vmem:[%s2858_s1] sm:$0x1] }
 0x23d   :  { %vm1432_vm7 = vcmp.gt.s32.totalorder %v1430_v62, %v1431_v23 }
 0x23e   :  { %v1135_v29 = vsub.f32 %v2765_v30, %v2778_v25  ;;  %v1433_v4 = vsel %vm1432_vm7, %v1430_v62, %v1431_v23  ;;  %v1579_v23 = vld [vmem:[%s2857_s0 + $0x48] sm:$0xff]  ;;  %s1608_s0 = smov [#allocation3]  }
 0x23f   :  { %v1434_v43 = vrot.slane %v1433_v4, 2 }
 0x240   :  { %v1136_v58 = vmul.f32 1.442695, %v1135_v29  ;;  %v2988_v29 = vld [vmem:[#allocation9_spill] sm:$0xff] }
 0x241   :  { %vm1435_vm8 = vcmp.gt.s32.totalorder %v1433_v4, %v1434_v43  ;;  %v269_v0 = vsel %vm2020_vm2, %v2989_v53, %v2988_v29 }
 0x242   :  { %1564 = vpow2.f32 %v1136_v58  ;;  %v1436_v36 = vsel %vm1435_vm8, %v1433_v4, %v1434_v43  ;;  %v391_v62 = vsel %vm2129_vm10, %v2991_v46, %v269_v0  ;;  %v1226_v4 = vadd.f32 %v1579_v23, %v2778_v25 }
 0x243   :  { %v1437_v56 = vrot.slane %v1436_v36, 1 }
 0x245   :  { %vm1438_vm12 = vcmp.gt.s32.totalorder %v1436_v36, %v1437_v56 }
 0x246   :  { %v1439_v15 = vsel %vm1438_vm12, %v1436_v36, %v1437_v56  ;;  %v2996_v56 = vld [vmem:[#allocation19_spill] sm:$0xff] }
 0x247   :  { %v1442_v9 = vsel %vm1441_vm9, %v1439_v15, 0  ;;  %vm1445_vm6 = vcmp.eq.s32.totalorder %v1696_v32, %v1439_v15  ;;  %vm1458_vm9 = vcmp.eq.s32.totalorder %v1457_v27, 1 }
 0x248   :  { %v1565_v24 = vpop.eup %1564  ;;  %1443 = vst.msk [vmem:[%s2863_s6 + $0x1] sm:$0x1] %vm1282_vm1, %v1442_v9 }
 0x249   :  { %v1143_v34 = vperm.slane %v1565_v24, 0  ;;  %v1149_v5 = vperm.slane %v1565_v24, 1  ;;  %v1160_v6 = vperm.slane %v1565_v24, 2  ;;  %v1171_v18 = vperm.slane %v1565_v24, 3 }
 0x24a   :  { %v1182_v60 = vperm.slane %v1565_v24, 4  ;;  %v1193_v21 = vperm.slane %v1565_v24, 5  ;;  %v1204_v49 = vperm.slane %v1565_v24, 6  ;;  %v1215_v12 = vperm.slane %v1565_v24, 7 }
 0x24b   :  { %v1144_v16 = vmul.f32 %v1143_v34, %v1823_v20  ;;  %v1150_v2 = vmul.f32 %v1149_v5, %v1814_v14  ;;  %v1161_v63 = vmul.f32 %v1160_v6, %v2955_v7  ;;  %v1172_v47 = vmul.f32 %v1171_v18, %v2956_v17  ;;  %v2992_v34 = vld [vmem:[#allocation14_spill] sm:$0xff] }
 0x24c   :  { %v1183_v14 = vmul.f32 %v1182_v60, %v2957_v35  ;;  %v1194_v7 = vmul.f32 %v1193_v21, %v2958_v10  ;;  %v1446_v17 = vsel %vm1445_vm6, %v1444_v39, 0  ;;  %v1205_v35 = vmul.f32 %v1204_v49, %v2959_v52 }
 0x24d   :  { %v1151_v13 = vadd.f32 %v1150_v2, %v1144_v16  ;;  %v1447_v1 = vsel %vm71_vm4, %v1446_v17, 2147483648  ;;  %v1216_v26 = vmul.f32 %v1215_v12, %v2979_v45  ;;  %v513_v5 = vsel %vm2207_vm3, %v2992_v34, %v391_v62  ;;  %v2993_v16 = vld [vmem:[#allocation15_spill] sm:$0xff] }
 0x24e   :  { %v1448_v44 = vrot.slane %v1447_v1, 4  ;;  %v635_v25 = vsel %vm2284_vm13, %v2993_v16, %v513_v5 }
 0x24f   :  { %v1162_v22 = vadd.f32 %v1161_v63, %v1151_v13  ;;  %v757_v13 = vsel %vm2387_vm11, %v2994_v41, %v635_v25 }
 0x250   :  { %vm1449_vm7 = vcmp.gt.s32.totalorder %v1447_v1, %v1448_v44  ;;  %v879_v60 = vsel %vm2475_vm15, %v2995_v57, %v757_v13 }
 0x251   :  { %v1173_v20 = vadd.f32 %v1172_v47, %v1162_v22  ;;  %v1450_v32 = vsel %vm1449_vm7, %v1447_v1, %v1448_v44  ;;  %v1001_v22 = vsel %vm2516_vm14, %v2996_v56, %v879_v60 }
 0x252   :  { %v1451_v10 = vrot.slane %v1450_v32, 2  ;;  %v1123_v47 = vsel %vm2557_vm0, %v2327_v28, %v1001_v22 }
 0x253   :  { %v1184_v59 = vadd.f32 %v1183_v14, %v1173_v20  ;;  %v1245_v38 = vsel %vm2607_vm5, %v2437_v8, %v1123_v47 }
 0x254   :  { %vm1452_vm8 = vcmp.gt.s32.totalorder %v1450_v32, %v1451_v10  ;;  %v1251_v11 = vmul.f32 %v2645_v3, %v1245_v38 }
 0x255   :  { %v1195_v31 = vadd.f32 %v1194_v7, %v1184_v59  ;;  %v1453_v54 = vsel %vm1452_vm8, %v1450_v32, %v1451_v10 }
 0x256   :  { %v1454_v37 = vrot.slane %v1453_v54, 1  ;;  %v1252_v49 = vadd.f32 %v1251_v11, %v2464_v33 }
 0x257   :  { %v1206_v61 = vadd.f32 %v1205_v35, %v1195_v31 }
 0x258   :  { %vm1455_vm12 = vcmp.gt.s32.totalorder %v1453_v54, %v1454_v37  ;;  %v1253_v19 = vsel %vm71_vm4, %v1252_v49, 0.0 }
 0x259   :  { %v1217_v40 = vadd.f32 %v1216_v26, %v1206_v61  ;;  %v1456_v45 = vsel %vm1455_vm12, %v1453_v54, %v1454_v37  ;;  %v1254_v50 = vrot.slane %v1253_v19, 4 }
 0x25a   :  { %v1459_v58 = vsel %vm1458_vm9, %v1456_v45, 0 }
 0x25b   :  { %1566 = vlog2.f32 %v1217_v40  ;;  %1460 = vst.msk [vmem:[%s2863_s6] sm:$0x1] %vm1282_vm1, %v1459_v58  ;;  %v1255_v7 = vadd.f32 %v1254_v50, %v1253_v19  ;;  %s1468_s6 = sshll.u32 %s1608_s0, 4  ;;  %s1469_s6 = int_to_ptr.vmem [resolvable:$true] %s1468_s6 }
 0x25d   :  { %v1256_v51 = vrot.slane %v1255_v7, 2 }
 0x25f   :  { %v1257_v1 = vadd.f32 %v1256_v51, %v1255_v7 }
 0x261   :  { %v1567_v55 = vpop.eup %1566 }
 0x262   :  { %v1228_v43 = vmul.f32 0.6931472, %v1567_v55 }
 0x264   :  { %v1229_v24 = vadd.f32 %v1228_v43, %v1226_v4 }
 0x266   :  { %v1233_v42 = vsel %vm2607_vm5, %v1229_v24, %v2765_v30 }
 0x267   :  { %v1260_v6 = vadd.f32 %v2645_v3, %v1233_v42  ;;  %v1258_v3 = vrot.slane %v1257_v1, 1 }
 0x269   :  { %v1261_v2 = vsel %vm71_vm4, %v1260_v6, -inf  ;;  %v1259_v33 = vadd.f32 %v1258_v3, %v1257_v1 }
 0x26a   :  { %v1262_v18 = vrot.slane %v1261_v2, 4 }
 0x26c   :  { %v1263_v63 = vmax.f32 %v1261_v2, %v1262_v18 }
 0x26e   :  { %v1264_v36 = vrot.slane %v1263_v63, 2 }
 0x270   :  { %v1265_v30 = vmax.f32 %v1263_v63, %v1264_v36 }
 0x272   :  { %v1266_v48 = vrot.slane %v1265_v30, 1 }
 0x274   :  { %v1267_v21 = vmax.f32 %v1265_v30, %v1266_v48 }
 0x276   :  { %v1268_v20 = vsub.f32 %v1260_v6, %v1267_v21 }
 0x278   :  { %v1269_v14 = vmul.f32 1.442695, %v1268_v20 }
 0x27a   :  { %1568 = vpow2.f32 %v1269_v14 }
 0x280   :  { %v1569_v15 = vpop.eup %1568 }
 0x281   :  { %v1271_v9 = vsel %vm71_vm4, %v1569_v15, 0.0 }
 0x282   :  { %v1272_v39 = vrot.slane %v1271_v9, 4 }
 0x284   :  { %v1273_v28 = vadd.f32 %v1272_v39, %v1271_v9 }
 0x286   :  { %v1274_v59 = vrot.slane %v1273_v28, 2 }
 0x288   :  { %v1275_v12 = vadd.f32 %v1274_v59, %v1273_v28 }
 0x28a   :  { %v1276_v17 = vrot.slane %v1275_v12, 1 }
 0x28c   :  { %v1277_v8 = vadd.f32 %v1276_v17, %v1275_v12 }
 0x28e   :  { %1570 = vlog2.f32 %v1277_v8 }
 0x294   :  { %v1571_v31 = vpop.eup %1570 }
 0x295   :  { %v1279_v35 = vmul.f32 0.6931472, %v1571_v31 }
 0x297   :  { %v1280_v44 = vadd.f32 %v1279_v35, %v1267_v21 }
 0x299   :  { %v1281_v61 = vsub.f32 %v1259_v33, %v1280_v44 }
 0x29b   :  { %1283 = vst.msk [vmem:[#allocation3] sm:$0x1] %vm1282_vm1, %v1281_v61 }
 0x29c   :  { %1473 = dma.vmem_to_hbm [thread:$0]  %s1469_s6, 16, %s1471_s26, [#allocation4]  }
 0x29d   :  { %1604 = dma.done.wait [#allocation4], 16  }
 0x29e   :  { %1605 = vsyncadd [#allocation4], 4294967280 }
 0x29f   :  { %1480 = vsyncpa [#allocation4], 1 }

</bundles_post_ra>
